<compile_context>
chip_gen: v6e
topology: v6e:2x2x1
jax: 0.10.0
libtpu: 0.0.40
codegen_flags: <defaults>
</compile_context>

<pallas_src>
import functools

import jax
import jax.numpy as jnp
from jax import lax
from jax.experimental import pallas as pl
from jax.experimental.pallas import tpu as pltpu


def _num_tensorcores():
    # v7x has 2 TensorCores per chip; v5e/v6e have 1.
    # TODO(synk): on v7x, consider pltpu.CORE_PARALLEL / pl.core_map if plain
    # "parallel" does not shard the outer grid axis across both cores.
    try:
        kind = jax.devices()[0].device_kind.lower()
    except Exception:
        return 1
    return 2 if "v7" in kind else 1


# ---------------------------------------------------------------------------
# Shared fused MLP body: encoder stand-in (2 shared-MLP layers) + decoder
# stand-in (1 layer) + head (hidden -> hidden -> num_classes).  All
# intermediates stay in vregs/VMEM.  bf16 weights/activations, f32 accum.
# ---------------------------------------------------------------------------
def _mlp_from_refs(feat_ref, w1_ref, b1_ref, w2_ref, b2_ref, wd_ref, bd_ref,
                   wh1_ref, bh1_ref, wh2_ref, bh2_ref):
    def layer(w_ref, b_ref, v, relu=True):
        y = jnp.dot(w_ref[...], v.astype(jnp.bfloat16),
                    preferred_element_type=jnp.float32) + b_ref[...]
        return jnp.maximum(y, 0.0) if relu else y

    x = feat_ref[...]                                   # (Cin_pad, tm) f32
    h = layer(w1_ref, b1_ref, x)
    h = layer(w2_ref, b2_ref, h)
    f = layer(wd_ref, bd_ref, h)                        # (H, tm) decoder out
    hh = layer(wh1_ref, bh1_ref, f)
    logits = layer(wh2_ref, bh2_ref, hh, relu=False)    # (K, tm)
    return f, logits


# ---------------------------------------------------------------------------
# Training kernel: fused MLP + L2-normalize + argmax/correct-mask + per-class
# masked sums & counts accumulated in the (per-core) stats output block across
# the inner "arbitrary" row axis.
# ---------------------------------------------------------------------------
def _fused_train_kernel(feat_ref, lab_ref,
                        w1_ref, b1_ref, w2_ref, b2_ref, wd_ref, bd_ref,
                        wh1_ref, bh1_ref, wh2_ref, bh2_ref,
                        logit_ref, fn_ref, stat_ref, *, num_classes):
    i = pl.program_id(1)                                # reduction (row-tile) axis

    f, logits = _mlp_from_refs(feat_ref, w1_ref, b1_ref, w2_ref, b2_ref,
                               wd_ref, bd_ref, wh1_ref, bh1_ref,
                               wh2_ref, bh2_ref)

    # F.normalize(f, dim=channel), eps=1e-12: rsqrt (EUP) instead of sqrt+div.
    sumsq = jnp.sum(f * f, axis=0, keepdims=True)                    # (1, tm)
    inv = lax.rsqrt(jnp.maximum(sumsq, 1e-24))
    fn = f * inv                                                     # (H, tm)
    fn_ref[...] = fn.astype(fn_ref.dtype)
    logit_ref[...] = logits.astype(logit_ref.dtype)

    # argmax(softmax(logits)) == argmax(logits); first index on ties.
    K = num_classes
    mx = jnp.max(logits, axis=0, keepdims=True)                      # (1, tm)
    kid = lax.broadcasted_iota(jnp.int32, logits.shape, 0)           # (K, tm)
    preds = jnp.min(jnp.where(logits == mx, kid, K), axis=0, keepdims=True)

    labels = lab_ref[...]                                            # (1, tm)
    correct = preds == labels                                        # (1, tm)
    onehot = jnp.where((kid == labels) & correct, 1.0, 0.0)          # (K, tm)
    onehot = onehot.astype(jnp.bfloat16)

    # One matmul: [fn ; ones] (H+1, tm) x onehot^T (tm, K) -> (H+1, K)
    # rows 0..H-1 = per-class masked feature sums, row H = per-class counts.
    # The small 8-row onehot is the transposed operand (cheaper XLU work).
    fn_aug = jnp.concatenate([fn, jnp.ones_like(fn[:1])], axis=0)
    part = lax.dot_general(fn_aug.astype(jnp.bfloat16), onehot,
                           (((1,), (1,)), ((), ())),
                           preferred_element_type=jnp.float32)       # (H+1, K)

    @pl.when(i == 0)
    def _():
        stat_ref[...] = jnp.zeros_like(stat_ref)

    stat_ref[...] += part[None]


def _fused_infer_kernel(feat_ref,
                        w1_ref, b1_ref, w2_ref, b2_ref, wd_ref, bd_ref,
                        wh1_ref, bh1_ref, wh2_ref, bh2_ref,
                        logit_ref):
    _, logits = _mlp_from_refs(feat_ref, w1_ref, b1_ref, w2_ref, b2_ref,
                               wd_ref, bd_ref, wh1_ref, bh1_ref,
                               wh2_ref, bh2_ref)
    logit_ref[...] = logits.astype(logit_ref.dtype)


# ---------------------------------------------------------------------------
# pallas_call wrappers
# ---------------------------------------------------------------------------
_VMEM_LIMIT = 32 * 1024 * 1024   # explicit; safe on v5e/v6e/v7x at tm<=4096


def fused_forward_train(feat, labels_row, params, *, num_classes, hidden,
                        tm, ncore):
    cinp, m_pad = feat.shape
    K, H = num_classes, hidden
    total_tiles = m_pad // tm
    assert total_tiles % ncore == 0
    tpc = total_tiles // ncore

    (w1, b1, w2, b2, wd, bd, wh1, bh1, wh2, bh2) = params

    col = lambda c, i: (0, c * tpc + i)
    rep = lambda c, i: (0, 0)
    acc = lambda c, i: (c, 0, 0)

    kernel = functools.partial(_fused_train_kernel, num_classes=K)
    return pl.pallas_call(
        kernel,
        out_shape=(
            jax.ShapeDtypeStruct((K, m_pad), jnp.float32),
            jax.ShapeDtypeStruct((H, m_pad), jnp.float32),
            jax.ShapeDtypeStruct((ncore, H + 1, K), jnp.float32),
        ),
        grid=(ncore, tpc),
        in_specs=[
            pl.BlockSpec((cinp, tm), col),
            pl.BlockSpec((1, tm), col),
            pl.BlockSpec((H, cinp), rep), pl.BlockSpec((H, 1), rep),
            pl.BlockSpec((H, H), rep),    pl.BlockSpec((H, 1), rep),
            pl.BlockSpec((H, H), rep),    pl.BlockSpec((H, 1), rep),
            pl.BlockSpec((H, H), rep),    pl.BlockSpec((H, 1), rep),
            pl.BlockSpec((K, H), rep),    pl.BlockSpec((K, 1), rep),
        ],
        out_specs=(
            pl.BlockSpec((K, tm), col),
            pl.BlockSpec((H, tm), col),
            pl.BlockSpec((1, H + 1, K), acc),
        ),
        compiler_params=pltpu.CompilerParams(
            dimension_semantics=("parallel", "arbitrary"),
            vmem_limit_bytes=_VMEM_LIMIT),
    )(feat, labels_row, w1, b1, w2, b2, wd, bd, wh1, bh1, wh2, bh2)


def fused_forward_infer(feat, params, *, num_classes, hidden, tm):
    cinp, m_pad = feat.shape
    K, H = num_classes, hidden
    total_tiles = m_pad // tm

    (w1, b1, w2, b2, wd, bd, wh1, bh1, wh2, bh2) = params

    col = lambda i: (0, i)
    rep = lambda i: (0, 0)

    return pl.pallas_call(
        _fused_infer_kernel,
        out_shape=jax.ShapeDtypeStruct((K, m_pad), jnp.float32),
        grid=(total_tiles,),
        in_specs=[
            pl.BlockSpec((cinp, tm), col),
            pl.BlockSpec((H, cinp), rep), pl.BlockSpec((H, 1), rep),
            pl.BlockSpec((H, H), rep),    pl.BlockSpec((H, 1), rep),
            pl.BlockSpec((H, H), rep),    pl.BlockSpec((H, 1), rep),
            pl.BlockSpec((H, H), rep),    pl.BlockSpec((H, 1), rep),
            pl.BlockSpec((K, H), rep),    pl.BlockSpec((K, 1), rep),
        ],
        out_specs=pl.BlockSpec((K, tm), col),
        compiler_params=pltpu.CompilerParams(
            dimension_semantics=("parallel",),
            vmem_limit_bytes=_VMEM_LIMIT),
    )(feat, w1, b1, w2, b2, wd, bd, wh1, bh1, wh2, bh2)


# ---------------------------------------------------------------------------
# BaseSeg_Balance_Main re-implementation.
# ---------------------------------------------------------------------------
class BaseSegBalanceMainPallas:
    # TODO(synk): the config-built hierarchical PointNet++ encoder/decoder
    # (FPS/ball-query grouping, set abstraction, feature propagation) is
    # replaced by a deterministic pointwise shared-MLP stand-in; the
    # module-level forward logic (head, normalize, softmax/argmax, masked
    # per-class mean, prior EMA + renormalize) is reproduced exactly.
    # TODO(synk): distributed concat_all_gather_diff in _ema not implemented
    # (single-device path only).
    # TODO(synk): prior_ema is updated as a Python attribute; under jax.jit it
    # would need to be threaded functionally instead.

    def __init__(self, key, in_feat_c=4, hidden=32, num_classes=8, beta=0.999,
                 tm=2048, ncore=None):
        self.beta = beta
        self.num_classes = num_classes
        self.hidden = hidden
        self.tm = tm                         # sweep 2048-4096; lane-dense
        self.ncore = _num_tensorcores() if ncore is None else ncore

        cin = in_feat_c + 3                  # features concatenated with xyz
        self.cin = cin
        self.cin_pad = max(8, ((cin + 7) // 8) * 8)   # pad channels to sublane mult

        ks = jax.random.split(key, 11)

        def lin_t(kw, kb, ci, co, ci_pad=None):
            # transposed weight (cout, cin) so the kernel computes W @ X;
            # weights stored bf16 (single-pass MXU), biases stay f32.
            w = jax.random.normal(kw, (co, ci), jnp.float32) * 0.1
            if ci_pad is not None and ci_pad > ci:
                w = jnp.pad(w, ((0, 0), (0, ci_pad - ci)))
            b = jax.random.normal(kb, (co, 1), jnp.float32) * 0.01
            return w.astype(jnp.bfloat16), b

        w1, b1 = lin_t(ks[0], ks[1], cin, hidden, self.cin_pad)   # encoder
        w2, b2 = lin_t(ks[2], ks[3], hidden, hidden)              # encoder
        wd, bd = lin_t(ks[4], ks[5], hidden, hidden)              # decoder
        wh1, bh1 = lin_t(ks[6], ks[7], hidden, hidden)            # head
        wh2, bh2 = lin_t(ks[8], ks[9], hidden, num_classes)       # head
        self.params = (w1, b1, w2, b2, wd, bd, wh1, bh1, wh2, bh2)

        # register_buffer('prior_ema', rand(num_classes, dim)); normalized rows
        prior = jax.random.uniform(ks[10], (num_classes, hidden), jnp.float32)
        prior = prior / jnp.maximum(
            jnp.sqrt(jnp.sum(prior * prior, axis=1, keepdims=True)), 1e-12)
        self.prior_ema = prior

    # -- boundary layout plumbing: build channels-first (Cin_pad, M_pad) slab --
    # TODO(synk): a batch grid axis could read (C0, N) blocks directly and
    # concat xyz in-kernel, saving the small prep-side HBM passes.
    def _prep_feat(self, pos, x):
        B, C0, N = x.shape
        M = B * N
        x_cm = jnp.transpose(x, (1, 0, 2)).reshape(C0, M)          # (C0, M)
        pos_cm = jnp.transpose(pos, (2, 0, 1)).reshape(3, M)       # (3, M)
        feat = jnp.concatenate([x_cm, pos_cm], axis=0).astype(jnp.float32)
        feat = jnp.pad(feat, ((0, self.cin_pad - feat.shape[0]), (0, 0)))
        chunk = self.tm * self.ncore
        m_pad = int(pl.cdiv(M, chunk)) * chunk
        feat = jnp.pad(feat, ((0, 0), (0, m_pad - M)))
        return feat, B, N, M, m_pad

    def forward(self, data, is_train=False, channels_first_outputs=False):
        pos, x = data['pos'], data['x']
        feat, B, N, M, m_pad = self._prep_feat(pos, x)
        K, H = self.num_classes, self.hidden

        if not is_train:
            logits_t = fused_forward_infer(
                feat, self.params, num_classes=K, hidden=H, tm=self.tm)
            if channels_first_outputs:
                return logits_t[:, :M]
            # PyTorch: logits.squeeze(0).transpose(0,1) -> (N, num_classes)
            out = logits_t[:, :M].T.reshape(B, N, K)
            return out[0] if B == 1 else out

        labels = data['y'].reshape(-1).astype(jnp.int32)           # (M,)
        labels_row = jnp.pad(labels, (0, m_pad - M),
                             constant_values=-1)[None, :]          # (1, M_pad)

        logits_t, fn_t, stats_pc = fused_forward_train(
            feat, labels_row, self.params, num_classes=K, hidden=H,
            tm=self.tm, ncore=self.ncore)

        stats = jnp.sum(stats_pc, axis=0)                          # (H+1, K)
        class_sums = stats[:H].T                                   # (K, H)
        counts = stats[H]                                          # (K,)

        # _ema: per-class mean of correctly-predicted normalized features,
        # falling back to previous prior where a class has no samples.
        means = class_sums / jnp.maximum(counts[:, None], 1.0)
        cur_status = jnp.where(counts[:, None] > 0, means, self.prior_ema)
        new_prior = self.beta * self.prior_ema + (1.0 - self.beta) * cur_status
        new_prior = new_prior / jnp.maximum(
            jnp.sqrt(jnp.sum(new_prior * new_prior, axis=1, keepdims=True)),
            1e-12)
        self.prior_ema = new_prior

        if channels_first_outputs:
            # Avoids two full HBM re-streams; downstream loss must consume
            # channels-first (K, B*N) / (H, B*N).
            return logits_t[:, :M], fn_t[:, :M], new_prior

        # PyTorch semantics: (B*N, K) logits, (B*N, C) feas_norm, (K, C) prior
        logits_flat = logits_t[:, :M].T
        feas_norm = fn_t[:, :M].T
        return logits_flat, feas_norm, new_prior


if __name__ == "__main__":
    key = jax.random.PRNGKey(0)
    B, N, C0 = 2, 64, 4
    num_classes, hidden = 8, 32

    k_pos, k_x, k_y, k_model = jax.random.split(key, 4)
    pos = jax.random.normal(k_pos, (B, N, 3), jnp.float32)
    x = jax.random.normal(k_x, (B, C0, N), jnp.float32)            # NCW like Conv1d
    y = jax.random.randint(k_y, (B, N), 0, num_classes, jnp.int32)

    model = BaseSegBalanceMainPallas(
        k_model, in_feat_c=C0, hidden=hidden, num_classes=num_classes)

    logits, feas_norm, prior = model.forward(
        {'pos': pos, 'x': x, 'y': y}, is_train=True)
    jax.block_until_ready((logits, feas_norm, prior))

    assert logits.shape == (B * N, num_classes)
    assert feas_norm.shape == (B * N, hidden)
    assert prior.shape == (num_classes, hidden)

    # also exercise the inference branch once
    infer = model.forward({'pos': pos[:1], 'x': x[:1]}, is_train=False)
    jax.block_until_ready(infer)
    assert infer.shape == (N, num_classes)

    print("KERNEL_OK")
</pallas_src>

<mosaic_0001>
module attributes {stable_mosaic.version = 11 : i64} {
  func.func @_fused_train_kernel(%arg0: i32, %arg1: i32, %arg2: memref<8x2048xf32, #tpu.memory_space<vmem>>, %arg3: memref<1x2048xi32, #tpu.memory_space<vmem>>, %arg4: memref<32x8xbf16, #tpu.memory_space<vmem>>, %arg5: memref<32x1xf32, #tpu.memory_space<vmem>>, %arg6: memref<32x32xbf16, #tpu.memory_space<vmem>>, %arg7: memref<32x1xf32, #tpu.memory_space<vmem>>, %arg8: memref<32x32xbf16, #tpu.memory_space<vmem>>, %arg9: memref<32x1xf32, #tpu.memory_space<vmem>>, %arg10: memref<32x32xbf16, #tpu.memory_space<vmem>>, %arg11: memref<32x1xf32, #tpu.memory_space<vmem>>, %arg12: memref<8x32xbf16, #tpu.memory_space<vmem>>, %arg13: memref<8x1xf32, #tpu.memory_space<vmem>>, %arg14: memref<8x2048xf32, #tpu.memory_space<vmem>>, %arg15: memref<32x2048xf32, #tpu.memory_space<vmem>>, %arg16: memref<1x33x8xf32, #tpu.memory_space<vmem>>) attributes {dimension_semantics = [#tpu.dimension_semantics<parallel>, #tpu.dimension_semantics<arbitrary>], iteration_bounds = array<i64: 1, 1>, scalar_prefetch = 0 : i64, scratch_operands = 0 : i64, tpu.core_type = #tpu.core_type<tc>, window_params = [{transform_indices = @transform_0, window_bounds = array<i64: 8, 2048>}, {transform_indices = @transform_1, window_bounds = array<i64: 1, 2048>}, {pipeline_mode = #tpu.pipeline_mode<synchronous>, transform_indices = @transform_2, window_bounds = array<i64: 32, 8>}, {pipeline_mode = #tpu.pipeline_mode<synchronous>, transform_indices = @transform_3, window_bounds = array<i64: 32, 1>}, {pipeline_mode = #tpu.pipeline_mode<synchronous>, transform_indices = @transform_4, window_bounds = array<i64: 32, 32>}, {pipeline_mode = #tpu.pipeline_mode<synchronous>, transform_indices = @transform_5, window_bounds = array<i64: 32, 1>}, {pipeline_mode = #tpu.pipeline_mode<synchronous>, transform_indices = @transform_6, window_bounds = array<i64: 32, 32>}, {pipeline_mode = #tpu.pipeline_mode<synchronous>, transform_indices = @transform_7, window_bounds = array<i64: 32, 1>}, {pipeline_mode = #tpu.pipeline_mode<synchronous>, transform_indices = @transform_8, window_bounds = array<i64: 32, 32>}, {pipeline_mode = #tpu.pipeline_mode<synchronous>, transform_indices = @transform_9, window_bounds = array<i64: 32, 1>}, {pipeline_mode = #tpu.pipeline_mode<synchronous>, transform_indices = @transform_10, window_bounds = array<i64: 8, 32>}, {pipeline_mode = #tpu.pipeline_mode<synchronous>, transform_indices = @transform_11, window_bounds = array<i64: 8, 1>}, {transform_indices = @transform_12, window_bounds = array<i64: 8, 2048>}, {transform_indices = @transform_13, window_bounds = array<i64: 32, 2048>}, {transform_indices = @transform_14, window_bounds = array<i64: 1, 33, 8>}]} {
    %c0 = arith.constant 0 : index
    %c0_0 = arith.constant 0 : index
    %0 = vector.load %arg2[%c0, %c0_0] : memref<8x2048xf32, #tpu.memory_space<vmem>>, vector<8x2048xf32>
    %c0_1 = arith.constant 0 : index
    %c0_2 = arith.constant 0 : index
    %1 = vector.load %arg4[%c0_1, %c0_2] : memref<32x8xbf16, #tpu.memory_space<vmem>>, vector<32x8xbf16>
    %2 = arith.truncf %0 : vector<8x2048xf32> to vector<8x2048xbf16>
    %cst = arith.constant dense<0.000000e+00> : vector<32x2048xf32>
    %3 = tpu.matmul %1, %2, %cst {dimension_numbers = #tpu.dot_dimension_numbers<[1], [0], [0], [1], [0, 0, 1, 1], [], []>} : vector<32x8xbf16>, vector<8x2048xbf16>, vector<32x2048xf32> -> vector<32x2048xf32>
    %c0_3 = arith.constant 0 : index
    %c0_4 = arith.constant 0 : index
    %4 = vector.load %arg5[%c0_3, %c0_4] : memref<32x1xf32, #tpu.memory_space<vmem>>, vector<32x1xf32>
    %5 = vector.broadcast %4 : vector<32x1xf32> to vector<32x2048xf32>
    %6 = arith.addf %3, %5 : vector<32x2048xf32>
    %cst_5 = arith.constant 0.000000e+00 : f32
    %7 = vector.broadcast %cst_5 : f32 to vector<32x2048xf32>
    %8 = arith.maximumf %6, %7 : vector<32x2048xf32>
    %c0_6 = arith.constant 0 : index
    %c0_7 = arith.constant 0 : index
    %9 = vector.load %arg6[%c0_6, %c0_7] : memref<32x32xbf16, #tpu.memory_space<vmem>>, vector<32x32xbf16>
    %10 = arith.truncf %8 : vector<32x2048xf32> to vector<32x2048xbf16>
    %cst_8 = arith.constant dense<0.000000e+00> : vector<32x2048xf32>
    %11 = tpu.matmul %9, %10, %cst_8 {dimension_numbers = #tpu.dot_dimension_numbers<[1], [0], [0], [1], [0, 0, 1, 1], [], []>} : vector<32x32xbf16>, vector<32x2048xbf16>, vector<32x2048xf32> -> vector<32x2048xf32>
    %c0_9 = arith.constant 0 : index
    %c0_10 = arith.constant 0 : index
    %12 = vector.load %arg7[%c0_9, %c0_10] : memref<32x1xf32, #tpu.memory_space<vmem>>, vector<32x1xf32>
    %13 = vector.broadcast %12 : vector<32x1xf32> to vector<32x2048xf32>
    %14 = arith.addf %11, %13 : vector<32x2048xf32>
    %cst_11 = arith.constant 0.000000e+00 : f32
    %15 = vector.broadcast %cst_11 : f32 to vector<32x2048xf32>
    %16 = arith.maximumf %14, %15 : vector<32x2048xf32>
    %c0_12 = arith.constant 0 : index
    %c0_13 = arith.constant 0 : index
    %17 = vector.load %arg8[%c0_12, %c0_13] : memref<32x32xbf16, #tpu.memory_space<vmem>>, vector<32x32xbf16>
    %18 = arith.truncf %16 : vector<32x2048xf32> to vector<32x2048xbf16>
    %cst_14 = arith.constant dense<0.000000e+00> : vector<32x2048xf32>
    %19 = tpu.matmul %17, %18, %cst_14 {dimension_numbers = #tpu.dot_dimension_numbers<[1], [0], [0], [1], [0, 0, 1, 1], [], []>} : vector<32x32xbf16>, vector<32x2048xbf16>, vector<32x2048xf32> -> vector<32x2048xf32>
    %c0_15 = arith.constant 0 : index
    %c0_16 = arith.constant 0 : index
    %20 = vector.load %arg9[%c0_15, %c0_16] : memref<32x1xf32, #tpu.memory_space<vmem>>, vector<32x1xf32>
    %21 = vector.broadcast %20 : vector<32x1xf32> to vector<32x2048xf32>
    %22 = arith.addf %19, %21 : vector<32x2048xf32>
    %cst_17 = arith.constant 0.000000e+00 : f32
    %23 = vector.broadcast %cst_17 : f32 to vector<32x2048xf32>
    %24 = arith.maximumf %22, %23 : vector<32x2048xf32>
    %c0_18 = arith.constant 0 : index
    %c0_19 = arith.constant 0 : index
    %25 = vector.load %arg10[%c0_18, %c0_19] : memref<32x32xbf16, #tpu.memory_space<vmem>>, vector<32x32xbf16>
    %26 = arith.truncf %24 : vector<32x2048xf32> to vector<32x2048xbf16>
    %cst_20 = arith.constant dense<0.000000e+00> : vector<32x2048xf32>
    %27 = tpu.matmul %25, %26, %cst_20 {dimension_numbers = #tpu.dot_dimension_numbers<[1], [0], [0], [1], [0, 0, 1, 1], [], []>} : vector<32x32xbf16>, vector<32x2048xbf16>, vector<32x2048xf32> -> vector<32x2048xf32>
    %c0_21 = arith.constant 0 : index
    %c0_22 = arith.constant 0 : index
    %28 = vector.load %arg11[%c0_21, %c0_22] : memref<32x1xf32, #tpu.memory_space<vmem>>, vector<32x1xf32>
    %29 = vector.broadcast %28 : vector<32x1xf32> to vector<32x2048xf32>
    %30 = arith.addf %27, %29 : vector<32x2048xf32>
    %cst_23 = arith.constant 0.000000e+00 : f32
    %31 = vector.broadcast %cst_23 : f32 to vector<32x2048xf32>
    %32 = arith.maximumf %30, %31 : vector<32x2048xf32>
    %c0_24 = arith.constant 0 : index
    %c0_25 = arith.constant 0 : index
    %33 = vector.load %arg12[%c0_24, %c0_25] : memref<8x32xbf16, #tpu.memory_space<vmem>>, vector<8x32xbf16>
    %34 = arith.truncf %32 : vector<32x2048xf32> to vector<32x2048xbf16>
    %cst_26 = arith.constant dense<0.000000e+00> : vector<8x2048xf32>
    %35 = tpu.matmul %33, %34, %cst_26 {dimension_numbers = #tpu.dot_dimension_numbers<[1], [0], [0], [1], [0, 0, 1, 1], [], []>} : vector<8x32xbf16>, vector<32x2048xbf16>, vector<8x2048xf32> -> vector<8x2048xf32>
    %c0_27 = arith.constant 0 : index
    %c0_28 = arith.constant 0 : index
    %36 = vector.load %arg13[%c0_27, %c0_28] : memref<8x1xf32, #tpu.memory_space<vmem>>, vector<8x1xf32>
    %37 = vector.broadcast %36 : vector<8x1xf32> to vector<8x2048xf32>
    %38 = arith.addf %35, %37 : vector<8x2048xf32>
    %39 = arith.mulf %24, %24 : vector<32x2048xf32>
    %cst_29 = arith.constant dense<0.000000e+00> : vector<2048xf32>
    %40 = vector.multi_reduction <add>, %39, %cst_29 [0] : vector<32x2048xf32> to vector<2048xf32>
    %41 = vector.shape_cast %40 : vector<2048xf32> to vector<1x2048xf32>
    %cst_30 = arith.constant 1.000000e-24 : f32
    %42 = vector.broadcast %cst_30 : f32 to vector<1x2048xf32>
    %43 = arith.maximumf %41, %42 : vector<1x2048xf32>
    %44 = math.rsqrt %43 : vector<1x2048xf32>
    %45 = vector.broadcast %44 : vector<1x2048xf32> to vector<32x2048xf32>
    %46 = arith.mulf %24, %45 : vector<32x2048xf32>
    %c0_31 = arith.constant 0 : index
    %c0_32 = arith.constant 0 : index
    %47 = vector.load %arg15[%c0_31, %c0_32] : memref<32x2048xf32, #tpu.memory_space<vmem>>, vector<32x2048xf32>
    tpu.vector_store %arg15[%c0_31, %c0_32], %46 {strides = array<i32>} : memref<32x2048xf32, #tpu.memory_space<vmem>>, vector<32x2048xf32>,
    %c0_33 = arith.constant 0 : index
    %c0_34 = arith.constant 0 : index
    %48 = vector.load %arg14[%c0_33, %c0_34] : memref<8x2048xf32, #tpu.memory_space<vmem>>, vector<8x2048xf32>
    tpu.vector_store %arg14[%c0_33, %c0_34], %38 {strides = array<i32>} : memref<8x2048xf32, #tpu.memory_space<vmem>>, vector<8x2048xf32>,
    %cst_35 = arith.constant dense<0xFF800000> : vector<2048xf32>
    %49 = vector.multi_reduction <maximumf>, %38, %cst_35 [0] : vector<8x2048xf32> to vector<2048xf32>
    %50 = vector.shape_cast %49 : vector<2048xf32> to vector<1x2048xf32>
    %51 = tpu.iota {dimensions = array<i32: 0>} : vector<8x2048xi32>
    %52 = vector.broadcast %50 : vector<1x2048xf32> to vector<8x2048xf32>
    %53 = arith.cmpf oeq, %38, %52 : vector<8x2048xf32>
    %c8_i32 = arith.constant 8 : i32
    %54 = vector.broadcast %c8_i32 : i32 to vector<8x2048xi32>
    %55 = arith.select %53, %51, %54 : vector<8x2048xi1>, vector<8x2048xi32>
    %cst_36 = arith.constant dense<2147483647> : vector<2048xi32>
    %56 = vector.multi_reduction <minsi>, %55, %cst_36 [0] : vector<8x2048xi32> to vector<2048xi32>
    %57 = vector.shape_cast %56 : vector<2048xi32> to vector<1x2048xi32>
    %c0_37 = arith.constant 0 : index
    %c0_38 = arith.constant 0 : index
    %58 = vector.load %arg3[%c0_37, %c0_38] : memref<1x2048xi32, #tpu.memory_space<vmem>>, vector<1x2048xi32>
    %59 = arith.cmpi eq, %57, %58 : vector<1x2048xi32>
    %60 = vector.broadcast %58 : vector<1x2048xi32> to vector<8x2048xi32>
    %61 = arith.cmpi eq, %51, %60 : vector<8x2048xi32>
    %62 = vector.broadcast %59 : vector<1x2048xi1> to vector<8x2048xi1>
    %63 = arith.andi %61, %62 : vector<8x2048xi1>
    %cst_39 = arith.constant 1.000000e+00 : f32
    %cst_40 = arith.constant 0.000000e+00 : f32
    %64 = vector.broadcast %cst_39 : f32 to vector<8x2048xf32>
    %65 = vector.broadcast %cst_40 : f32 to vector<8x2048xf32>
    %66 = arith.select %63, %64, %65 : vector<8x2048xi1>, vector<8x2048xf32>
    %67 = arith.truncf %66 : vector<8x2048xf32> to vector<8x2048xbf16>
    %cst_41 = arith.constant 1.000000e+00 : f32
    %68 = vector.broadcast %cst_41 : f32 to vector<1x2048xf32>
    %69 = tpu.concatenate %46, %68 in 0 : vector<32x2048xf32>, vector<1x2048xf32> -> vector<33x2048xf32>
    %70 = arith.truncf %69 : vector<33x2048xf32> to vector<33x2048xbf16>
    %cst_42 = arith.constant dense<0.000000e+00> : vector<33x8xf32>
    %71 = tpu.matmul %70, %67, %cst_42 {dimension_numbers = #tpu.dot_dimension_numbers<[1], [1], [0], [0], [0, 0, 1, 0], [], []>} : vector<33x2048xbf16>, vector<8x2048xbf16>, vector<33x8xf32> -> vector<33x8xf32>
    %c0_i32 = arith.constant 0 : i32
    %72 = arith.cmpi eq, %arg1, %c0_i32 : i32
    %73 = arith.extui %72 : i1 to i32
    %c0_i32_43 = arith.constant 0 : i32
    %74 = arith.cmpi ne, %73, %c0_i32_43 : i32
    scf.if %74 {
      %cst_50 = arith.constant 0.000000e+00 : f32
      %79 = vector.broadcast %cst_50 : f32 to vector<1x33x8xf32>
      %c0_51 = arith.constant 0 : index
      %c0_52 = arith.constant 0 : index
      %c0_53 = arith.constant 0 : index
      %80 = vector.load %arg16[%c0_51, %c0_52, %c0_53] : memref<1x33x8xf32, #tpu.memory_space<vmem>>, vector<1x33x8xf32>
      tpu.vector_store %arg16[%c0_51, %c0_52, %c0_53], %79 {strides = array<i32>} : memref<1x33x8xf32, #tpu.memory_space<vmem>>, vector<1x33x8xf32>,
    } else {
    }
    %c0_44 = arith.constant 0 : index
    %c0_45 = arith.constant 0 : index
    %c0_46 = arith.constant 0 : index
    %75 = vector.load %arg16[%c0_44, %c0_45, %c0_46] : memref<1x33x8xf32, #tpu.memory_space<vmem>>, vector<1x33x8xf32>
    %76 = vector.shape_cast %71 : vector<33x8xf32> to vector<1x33x8xf32>
    %77 = arith.addf %75, %76 : vector<1x33x8xf32>
    %c0_47 = arith.constant 0 : index
    %c0_48 = arith.constant 0 : index
    %c0_49 = arith.constant 0 : index
    %78 = vector.load %arg16[%c0_47, %c0_48, %c0_49] : memref<1x33x8xf32, #tpu.memory_space<vmem>>, vector<1x33x8xf32>
    tpu.vector_store %arg16[%c0_47, %c0_48, %c0_49], %77 {strides = array<i32>} : memref<1x33x8xf32, #tpu.memory_space<vmem>>, vector<1x33x8xf32>,
    return
  }
  func.func @transform_0(%arg0: i32, %arg1: i32) -> (i32, i32) {
    %c1_i32 = arith.constant 1 : i32
    %0 = arith.muli %arg0, %c1_i32 : i32
    %1 = arith.addi %0, %arg1 : i32
    %c0_i32 = arith.constant 0 : i32
    %c0_i32_0 = arith.constant 0 : i32
    return %c0_i32, %1 : i32, i32
  }
  func.func @transform_1(%arg0: i32, %arg1: i32) -> (i32, i32) {
    %c1_i32 = arith.constant 1 : i32
    %0 = arith.muli %arg0, %c1_i32 : i32
    %1 = arith.addi %0, %arg1 : i32
    %c0_i32 = arith.constant 0 : i32
    %c0_i32_0 = arith.constant 0 : i32
    return %c0_i32, %1 : i32, i32
  }
  func.func @transform_2(%arg0: i32, %arg1: i32) -> (i32, i32) {
    %c0_i32 = arith.constant 0 : i32
    %c0_i32_0 = arith.constant 0 : i32
    %c0_i32_1 = arith.constant 0 : i32
    return %c0_i32, %c0_i32_0 : i32, i32
  }
  func.func @transform_3(%arg0: i32, %arg1: i32) -> (i32, i32) {
    %c0_i32 = arith.constant 0 : i32
    %c0_i32_0 = arith.constant 0 : i32
    %c0_i32_1 = arith.constant 0 : i32
    return %c0_i32, %c0_i32_0 : i32, i32
  }
  func.func @transform_4(%arg0: i32, %arg1: i32) -> (i32, i32) {
    %c0_i32 = arith.constant 0 : i32
    %c0_i32_0 = arith.constant 0 : i32
    %c0_i32_1 = arith.constant 0 : i32
    return %c0_i32, %c0_i32_0 : i32, i32
  }
  func.func @transform_5(%arg0: i32, %arg1: i32) -> (i32, i32) {
    %c0_i32 = arith.constant 0 : i32
    %c0_i32_0 = arith.constant 0 : i32
    %c0_i32_1 = arith.constant 0 : i32
    return %c0_i32, %c0_i32_0 : i32, i32
  }
  func.func @transform_6(%arg0: i32, %arg1: i32) -> (i32, i32) {
    %c0_i32 = arith.constant 0 : i32
    %c0_i32_0 = arith.constant 0 : i32
    %c0_i32_1 = arith.constant 0 : i32
    return %c0_i32, %c0_i32_0 : i32, i32
  }
  func.func @transform_7(%arg0: i32, %arg1: i32) -> (i32, i32) {
    %c0_i32 = arith.constant 0 : i32
    %c0_i32_0 = arith.constant 0 : i32
    %c0_i32_1 = arith.constant 0 : i32
    return %c0_i32, %c0_i32_0 : i32, i32
  }
  func.func @transform_8(%arg0: i32, %arg1: i32) -> (i32, i32) {
    %c0_i32 = arith.constant 0 : i32
    %c0_i32_0 = arith.constant 0 : i32
    %c0_i32_1 = arith.constant 0 : i32
    return %c0_i32, %c0_i32_0 : i32, i32
  }
  func.func @transform_9(%arg0: i32, %arg1: i32) -> (i32, i32) {
    %c0_i32 = arith.constant 0 : i32
    %c0_i32_0 = arith.constant 0 : i32
    %c0_i32_1 = arith.constant 0 : i32
    return %c0_i32, %c0_i32_0 : i32, i32
  }
  func.func @transform_10(%arg0: i32, %arg1: i32) -> (i32, i32) {
    %c0_i32 = arith.constant 0 : i32
    %c0_i32_0 = arith.constant 0 : i32
    %c0_i32_1 = arith.constant 0 : i32
    return %c0_i32, %c0_i32_0 : i32, i32
  }
  func.func @transform_11(%arg0: i32, %arg1: i32) -> (i32, i32) {
    %c0_i32 = arith.constant 0 : i32
    %c0_i32_0 = arith.constant 0 : i32
    %c0_i32_1 = arith.constant 0 : i32
    return %c0_i32, %c0_i32_0 : i32, i32
  }
  func.func @transform_12(%arg0: i32, %arg1: i32) -> (i32, i32) {
    %c1_i32 = arith.constant 1 : i32
    %0 = arith.muli %arg0, %c1_i32 : i32
    %1 = arith.addi %0, %arg1 : i32
    %c0_i32 = arith.constant 0 : i32
    %c0_i32_0 = arith.constant 0 : i32
    return %c0_i32, %1 : i32, i32
  }
  func.func @transform_13(%arg0: i32, %arg1: i32) -> (i32, i32) {
    %c1_i32 = arith.constant 1 : i32
    %0 = arith.muli %arg0, %c1_i32 : i32
    %1 = arith.addi %0, %arg1 : i32
    %c0_i32 = arith.constant 0 : i32
    %c0_i32_0 = arith.constant 0 : i32
    return %c0_i32, %1 : i32, i32
  }
  func.func @transform_14(%arg0: i32, %arg1: i32) -> (i32, i32, i32) {
    %c0_i32 = arith.constant 0 : i32
    %c0_i32_0 = arith.constant 0 : i32
    %c0_i32_1 = arith.constant 0 : i32
    return %arg0, %c0_i32, %c0_i32_0 : i32, i32, i32
  }
}

</mosaic_0001>

<bundles_post_ra>
// kernel: tpu_custom_call.1
= control target key start
LH: loop header
LB: loop body
LE: loop exit
PB: predicated region body
PF: predicated region fallthrough
CT: control target
= control target key end

     0   :  { %20 = vsyncpa [#allocation3], 0  ;;  %s6680_s0 = inlined_call_operand.vmem [shape: f32[8,2048], index: 0, kind: input, shape index: {}]   ;;  %s6681_s1 = inlined_call_operand.vmem [shape: s32[1,2048], index: 1, kind: input, shape index: {}]   ;;  %s6682_s2 = inlined_call_operand.vmem [shape: bf16[32,8], index: 2, kind: input, shape index: {}]   ;;  %s6683_s3 = inlined_call_operand.vmem [shape: f32[32,1], index: 3, kind: input, shape index: {}]   ;;  %s6684_s4 = inlined_call_operand.vmem [shape: bf16[32,32], index: 4, kind: input, shape index: {}]   ;;  %s6685_s5 = inlined_call_operand.vmem [shape: f32[32,1], index: 5, kind: input, shape index: {}]   ;;  %s6686_s6 = inlined_call_operand.hbm [shape: bf16[32,32], index: 6, kind: input, shape index: {}]   ;;  %s6687_s7 = inlined_call_operand.vmem [shape: f32[32,1], index: 7, kind: input, shape index: {}]   ;;  %s6688_s8 = inlined_call_operand.hbm [shape: bf16[32,32], index: 8, kind: input, shape index: {}]   ;;  %s6689_s9 = inlined_call_operand.vmem [shape: f32[32,1], index: 9, kind: input, shape index: {}]   ;;  %s6690_s10 = inlined_call_operand.vmem [shape: bf16[8,32], index: 10, kind: input, shape index: {}]   ;;  %s6691_s11 = inlined_call_operand.vmem [shape: f32[8,1], index: 11, kind: input, shape index: {}]   ;;  %s6692_s12 = inlined_call_operand.hbm [shape: f32[8,2048], index: 12, kind: output, shape index: {0}]   ;;  %s6693_s13 = inlined_call_operand.hbm [shape: f32[32,2048], index: 13, kind: output, shape index: {1}]   ;;  %s6694_s14 = inlined_call_operand.vmem [shape: f32[1,33,8], index: 14, kind: output, shape index: {2}]  }
   0x1   :  { %21 = vsyncpa [#allocation6], 0 }
   0x2   :  { %22 = vsyncpa [#allocation4], 0 }
   0x3   :  { %23 = vsyncpa [#allocation9], 0  ;;  %s4518_s29 = smov [#allocation2]  }
   0x4   :  { %s56_s30 = sshll.u32 %s4518_s29, 4  ;;  %s57_s30 = int_to_ptr.vmem [resolvable:$true] %s56_s30 }
   0x5   :  { %s4438_s15 = scalar_lea.vmem %s57_s30, 256  ;;  %p4443_p1 = scmp.lt.s32.totalorder %s57_s30, %s57_s30 }
   0x6   :  { %p4439_p0 = scmp.ne.s32.totalorder %s57_s30, %s4438_s15  ;;  %p4444_p2 = scmp.lt.s32.totalorder %s4438_s15, %s4438_s15 }
   0x8   :  { %p4445_p3 = por %p4444_p2, %p4443_p1 }
   0xa   :  { %p4446_p4 = pnand %p4445_p3, %p4439_p0 }
   0xc   :  { %4449 = shalt.err (!%p4446_p4)
}
   0xd   :  { %s4519_s16 = smov 64   ;;  %s4520_s17 = smov 4  }
   0xe   :  { %62 = dma.hbm_to_vmem [thread:$0]  %s6686_s6, 256, %s57_s30, [#allocation3], %s4519_s16, %s4519_s16, %s4520_s17  }
   0xf   :  { %s4521_s20 = smov [#allocation5]  }
  0x10   :  { %s70_s21 = sshll.u32 %s4521_s20, 4  ;;  %s71_s21 = int_to_ptr.vmem [resolvable:$true] %s70_s21 }
  0x11   :  { %s4458_s22 = scalar_lea.vmem %s71_s21, 256  ;;  %p4463_p6 = scmp.lt.s32.totalorder %s71_s21, %s71_s21 }
  0x12   :  { %p4459_p5 = scmp.ne.s32.totalorder %s71_s21, %s4458_s22  ;;  %p4464_p7 = scmp.lt.s32.totalorder %s4458_s22, %s4458_s22 }
  0x14   :  { %p4465_p8 = por %p4464_p7, %p4463_p6 }
  0x16   :  { %p4466_p9 = pnand %p4465_p8, %p4459_p5 }
  0x18   :  { %4469 = shalt.err (!%p4466_p9)
}
  0x19   :  { %76 = dma.hbm_to_vmem [thread:$0]  %s6688_s8, 256, %s71_s21, [#allocation6], %s4519_s16, %s4519_s16, %s4520_s17  }
  0x1a   :  { %4510 = dma.done.wait [#allocation3], 256  }
  0x1b   :  { %4511 = vsyncadd [#allocation3], 4294967040 }
  0x1c   :  { %4512 = dma.done.wait [#allocation6], 256  }
  0x1d   :  { %4513 = vsyncadd [#allocation6], 4294967040  ;;  %v6695_v0 = vmov 0   ;;  %v121_v1 = vld [vmem:[%s6680_s0 + $0x8] sm:$0xff]  ;;  %vm197_vm0 = vcmask 1043456   ;;  %v123_v2 = vld [vmem:[%s6680_s0 + $0x18] sm:$0xff] }
  0x1e   :  { %278 = vmatprep.mubr.bf16.mxu0 %v6695_v0  ;;  %331 = vmatprep.mubr.bf16.mxu1 %v6695_v0  ;;  %v120_v3 = vld [vmem:[%s6680_s0] sm:$0xff]  ;;  %v141_v4 = vpack.c.bf16 %v121_v1, %v121_v1  ;;  %v143_v5 = vpack.c.bf16 %v123_v2, %v123_v2  ;;  %v122_v7 = vld [vmem:[%s6680_s0 + $0x10] sm:$0xff]  ;;  %v125_v11 = vld [vmem:[%s6680_s0 + $0x28] sm:$0xff]  ;;  %vm190_vm1 = vcmask 64512   ;;  %vm804_vm2 = vcmask 261120   ;;  %s4525_s8 = smov [#allocation7]  }
  0x1f   :  { %4388 = vset.pattern.permute.xlu0 %v6695_v0  ;;  %4389 = vset.pattern.permute.xlu1 %v6695_v0  ;;  %v140_v6 = vpack.c.bf16 %v120_v3, %v120_v3  ;;  %v142_v8 = vpack.c.bf16 %v122_v7, %v122_v7  ;;  %v4632_v10 = vld [vmem:[%s6682_s2] sm:$0xff]   ;;  %v127_v12 = vld [vmem:[%s6680_s0 + $0x38] sm:$0xff]  ;;  %v145_v14 = vpack.c.bf16 %v125_v11, %v125_v11  ;;  %v126_v17 = vld [vmem:[%s6680_s0 + $0x30] sm:$0xff]  ;;  %s4214_s27 = sshll.u32 %s4525_s8, 4  ;;  %s4215_s27 = int_to_ptr.vmem [resolvable:$true] %s4214_s27 }
  0x20   :  { %4259 = vmatprep.subr.msk.bf16.mxu0 %vm197_vm0, %v141_v4  ;;  %4262 = vmatprep.subr.msk.bf16.mxu1 %vm197_vm0, %v143_v5  ;;  %v147_v15 = vpack.c.bf16 %v127_v12, %v127_v12  ;;  %v124_v16 = vld [vmem:[%s6680_s0 + $0x20] sm:$0xff]  ;;  %v129_v18 = vld [vmem:[%s6680_s0 + $0x48] sm:$0xff]  ;;  %v146_v20 = vpack.c.bf16 %v126_v17, %v126_v17  ;;  %v131_v21 = vld [vmem:[%s6680_s0 + $0x58] sm:$0xff]  ;;  %p4475_p11 = scmp.lt.s32.totalorder %s4215_s27, %s4215_s27 }
  0x21   :  { %v199_v9 = vsel %vm197_vm0, %v140_v6, 0  ;;  %v205_v13 = vsel %vm197_vm0, %v142_v8, 0  ;;  %v144_v19 = vpack.c.bf16 %v124_v16, %v124_v16  ;;  %v149_v22 = vpack.c.bf16 %v129_v18, %v129_v18  ;;  %v158_v26 = vld [vmem:[%s6683_s3 + $0x10] sm:$0xff]  ;;  %v156_v27 = vld [vmem:[%s6683_s3] sm:$0xff]  ;;  %v4673_v28 = vld [vmem:[%s6682_s2 + $0x8] sm:$0xff]  }
  0x22   :  { %261 = vmatpush1.bf16.msra.mxu0 %v199_v9  ;;  %314 = vmatpush1.bf16.msra.mxu1 %v205_v13  ;;  %v217_v24 = vsel %vm197_vm0, %v146_v20, 0  ;;  %v151_v25 = vpack.c.bf16 %v131_v21, %v131_v21  ;;  %v159_v29 = vld [vmem:[%s6683_s3 + $0x18] sm:$0xff]  ;;  %v157_v30 = vld [vmem:[%s6683_s3 + $0x8] sm:$0xff]  ;;  %v128_v31 = vld [vmem:[%s6680_s0 + $0x40] sm:$0xff] }
  0x23   :  { %4265 = vmatprep.subr.msk.bf16.mxu0 %vm197_vm0, %v145_v14  ;;  %4268 = vmatprep.subr.msk.bf16.mxu1 %vm197_vm0, %v147_v15  ;;  %v211_v23 = vsel %vm197_vm0, %v144_v19, 0  ;;  %v130_v32 = vld [vmem:[%s6680_s0 + $0x50] sm:$0xff]  ;;  %v148_v34 = vpack.c.bf16 %v128_v31, %v128_v31  ;;  %v773_v35 = vld [vmem:[%s6685_s5 + $0x18] sm:$0xff]  ;;  %v133_v37 = vld [vmem:[%s6680_s0 + $0x68] sm:$0xff] }
  0x24   :  { %172 = vperm.xlu0 %4388, %v158_v26   ;;  %162 = vperm.xlu1 %4389, %v156_v27   ;;  %v772_v33 = vld [vmem:[%s6685_s5 + $0x10] sm:$0xff]  ;;  %v150_v36 = vpack.c.bf16 %v130_v32, %v130_v32  ;;  %v135_v38 = vld [vmem:[%s6680_s0 + $0x78] sm:$0xff]  ;;  %v770_v39 = vld [vmem:[%s6685_s5] sm:$0xff]  ;;  %v153_v41 = vpack.c.bf16 %v133_v37, %v133_v37 }
  0x25   :  { %4260 = vmatmul.mubr.msk.bf16.vlgmr.msra.gmra.mxu0 %vm190_vm1, %v4632_v10  ;;  %4263 = vmatmul.mubr.msk.bf16.vlgmr.msra.gmra.mxu1 %vm190_vm1, %v4632_v10  ;;  %v223_v40 = vsel %vm197_vm0, %v148_v34, 0  ;;  %v155_v43 = vpack.c.bf16 %v135_v38, %v135_v38  ;;  %v1337_v44 = vld [vmem:[%s6687_s7 + $0x10] sm:$0xff]  ;;  %v771_v45 = vld [vmem:[%s6685_s5 + $0x8] sm:$0xff]  ;;  %v1335_v46 = vld [vmem:[%s6687_s7] sm:$0xff] }
  0x26   :  { %288 = vmatprep.mubr.bf16.mxu0 %v6695_v0  ;;  %341 = vmatprep.mubr.bf16.mxu1 %v6695_v0  ;;  %v229_v42 = vsel %vm197_vm0, %v150_v36, 0  ;;  %v1338_v47 = vld [vmem:[%s6687_s7 + $0x18] sm:$0xff]  ;;  %v132_v48 = vld [vmem:[%s6680_s0 + $0x60] sm:$0xff]  ;;  %v134_v49 = vld [vmem:[%s6680_s0 + $0x70] sm:$0xff]  ;;  %s4526_s0 = smov [#allocation8]  }
  0x27   :  { %367 = vmatpush1.bf16.msra.mxu0 %v211_v23  ;;  %420 = vmatpush1.bf16.msra.mxu1 %v217_v24  ;;  %v1901_v50 = vld [vmem:[%s6689_s9 + $0x10] sm:$0xff]  ;;  %v152_v51 = vpack.c.bf16 %v132_v48, %v132_v48  ;;  %v1336_v52 = vld [vmem:[%s6687_s7 + $0x8] sm:$0xff]  ;;  %v154_v53 = vpack.c.bf16 %v134_v49, %v134_v49  ;;  %v1899_v54 = vld [vmem:[%s6689_s9] sm:$0xff]  ;;  %s4227_s28 = sshll.u32 %s4526_s0, 4  ;;  %s4470_s7 = scalar_lea.vmem %s4215_s27, 2048  ;;  %s4228_s28 = int_to_ptr.vmem [resolvable:$true] %s4227_s28 }
  0x28   :  { %4271 = vmatprep.subr.msk.bf16.mxu0 %vm197_vm0, %v149_v22  ;;  %4274 = vmatprep.subr.msk.bf16.mxu1 %vm197_vm0, %v151_v25  ;;  %v1902_v57 = vld [vmem:[%s6689_s9 + $0x18] sm:$0xff]  ;;  %v2460_v58 = vld [vmem:[%s6691_s11] sm:$0xff]  ;;  %v1900_v59 = vld [vmem:[%s6689_s9 + $0x8] sm:$0xff]  ;;  %p4471_p10 = scmp.ne.s32.totalorder %s4215_s27, %s4470_s7  ;;  %p4476_p12 = scmp.lt.s32.totalorder %s4470_s7, %s4470_s7 }
  0x29   :  { %177 = vperm.xlu0 %4388, %v159_v29   ;;  %167 = vperm.xlu1 %4389, %v157_v30   ;;  %v235_v55 = vsel %vm197_vm0, %v152_v51, 0  ;;  %v241_v56 = vsel %vm197_vm0, %v154_v53, 0 }
  0x2a   :  { %p4477_p13 = por %p4476_p12, %p4475_p11 }
  0x2c   :  { %p4478_p0 = pnand %p4477_p13, %p4471_p10 }
  0x2d   :  { %4261 = vmatmul.mubr.msk.bf16.gmra.mxu0 %vm190_vm1, %v4673_v28  ;;  %4264 = vmatmul.mubr.msk.bf16.gmra.mxu1 %vm190_vm1, %v4673_v28 }
  0x2e   :  { %384 = vmatprep.mubr.bf16.mxu0 %v6695_v0  ;;  %437 = vmatprep.mubr.bf16.mxu1 %v6695_v0 }
  0x2f   :  { %786 = vperm.xlu0 %4388, %v772_v33   ;;  %791 = vperm.xlu1 %4389, %v773_v35  }
  0x33   :  { %776 = vperm.xlu0 %4388, %v770_v39   ;;  %781 = vperm.xlu1 %4389, %v771_v45  }
  0x35   :  { %4266 = vmatmul.mubr.msk.bf16.vlgmr.msra.gmra.mxu0 %vm190_vm1, %v4632_v10  ;;  %4269 = vmatmul.mubr.msk.bf16.vlgmr.msra.gmra.mxu1 %vm190_vm1, %v4632_v10 }
  0x36   :  { %394 = vmatprep.mubr.bf16.mxu0 %v6695_v0  ;;  %447 = vmatprep.mubr.bf16.mxu1 %v6695_v0 }
  0x37   :  { %473 = vmatpush1.bf16.msra.mxu0 %v223_v40  ;;  %526 = vmatpush1.bf16.msra.mxu1 %v229_v42 }
  0x38   :  { %4277 = vmatprep.subr.msk.bf16.mxu0 %vm197_vm0, %v153_v41  ;;  %4280 = vmatprep.subr.msk.bf16.mxu1 %vm197_vm0, %v155_v43 }
  0x39   :  { %1351 = vperm.xlu0 %4388, %v1337_v44   ;;  %1356 = vperm.xlu1 %4389, %v1338_v47  }
  0x3d   :  { %4267 = vmatmul.mubr.msk.bf16.gmra.mxu0 %vm190_vm1, %v4673_v28  ;;  %1341 = vperm.xlu0 %4388, %v1335_v46  }
  0x3e   :  { %4270 = vmatmul.mubr.msk.bf16.gmra.mxu1 %vm190_vm1, %v4673_v28  ;;  %490 = vmatprep.mubr.bf16.mxu0 %v6695_v0 }
  0x3f   :  { %543 = vmatprep.mubr.bf16.mxu1 %v6695_v0  ;;  %1346 = vperm.xlu1 %4389, %v1336_v52  }
  0x41   :  { %1915 = vperm.xlu0 %4388, %v1901_v50  }
  0x43   :  { %1920 = vperm.xlu1 %4389, %v1902_v57  }
  0x45   :  { %4272 = vmatmul.mubr.msk.bf16.vlgmr.msra.gmra.mxu0 %vm190_vm1, %v4632_v10  ;;  %1905 = vperm.xlu0 %4388, %v1899_v54  }
  0x46   :  { %4275 = vmatmul.mubr.msk.bf16.vlgmr.msra.gmra.mxu1 %vm190_vm1, %v4632_v10  ;;  %500 = vmatprep.mubr.bf16.mxu0 %v6695_v0 }
  0x47   :  { %553 = vmatprep.mubr.bf16.mxu1 %v6695_v0  ;;  %579 = vmatpush1.bf16.msra.mxu0 %v235_v55 }
  0x48   :  { %632 = vmatpush1.bf16.msra.mxu1 %v241_v56  ;;  %1910 = vperm.xlu1 %4389, %v1900_v59  }
  0x49   :  { %2463 = vperm.xlu0 %4388, %v2460_v58  }
  0x4d   :  { %4273 = vmatmul.mubr.msk.bf16.gmra.mxu0 %vm190_vm1, %v4673_v28 }
  0x4e   :  { %4276 = vmatmul.mubr.msk.bf16.gmra.mxu1 %vm190_vm1, %v4673_v28  ;;  %596 = vmatprep.mubr.bf16.mxu0 %v6695_v0 }
  0x4f   :  { %649 = vmatprep.mubr.bf16.mxu1 %v6695_v0 }
  0x55   :  { %4278 = vmatmul.mubr.msk.bf16.vlgmr.msra.gmra.mxu0 %vm190_vm1, %v4632_v10 }
  0x56   :  { %4281 = vmatmul.mubr.msk.bf16.vlgmr.msra.gmra.mxu1 %vm190_vm1, %v4632_v10  ;;  %606 = vmatprep.mubr.bf16.mxu0 %v6695_v0 }
  0x57   :  { %659 = vmatprep.mubr.bf16.mxu1 %v6695_v0 }
  0x5d   :  { %4279 = vmatmul.mubr.msk.bf16.gmra.mxu0 %vm190_vm1, %v4673_v28 }
  0x5e   :  { %4282 = vmatmul.mubr.msk.bf16.gmra.mxu1 %vm190_vm1, %v4673_v28  ;;  %843 = vmatprep.mubr.bf16.mxu0 %v6695_v0 }
  0x5f   :  { %896 = vmatprep.mubr.bf16.mxu1 %v6695_v0 }
  0x9f   :  { %v4787_v2 = vpop.permute.xlu0 %172  ;;  %v4789_v4 = vpop.permute.xlu1 %162 }
  0xa4   :  { %v4791_v10 = vpop.permute.xlu0 %177  ;;  %v4793_v12 = vpop.permute.xlu1 %167 }
  0xe5   :  { %v280_v60 = vpop.f32.mrf.mxu0  ;;  %v333_v61 = vpop.f32.mrf.mxu1 }
  0xe6   :  { %v281_v14 = vadd.f32 %v280_v60, %v4789_v4  ;;  %v334_v44 = vadd.f32 %v333_v61, %v4789_v4 }
  0xe7   :  { %v282_v62 = vpop.f32.mrf.mxu0  ;;  %v335_v63 = vpop.f32.mrf.mxu1 }
  0xe8   :  { %v283_v24 = vadd.f32 %v282_v62, %v4789_v4  ;;  %v336_v25 = vadd.f32 %v335_v63, %v4789_v4  ;;  %v670_v58 = vmax.f32 %v281_v14, 0.0  ;;  %v672_v61 = vmax.f32 %v334_v44, 0.0 }
  0xe9   :  { %v284_v1 = vpop.f32.mrf.mxu0  ;;  %v337_v3 = vpop.f32.mrf.mxu1 }
  0xea   :  { %v285_v29 = vadd.f32 %v284_v1, %v4793_v12  ;;  %v338_v30 = vadd.f32 %v337_v3, %v4793_v12  ;;  %v671_v45 = vmax.f32 %v283_v24, 0.0  ;;  %v673_v49 = vmax.f32 %v336_v25, 0.0 }
  0xeb   :  { %v286_v5 = vpop.f32.mrf.mxu0  ;;  %v339_v6 = vpop.f32.mrf.mxu1 }
  0xec   :  { %v287_v15 = vadd.f32 %v286_v5, %v4793_v12  ;;  %v340_v19 = vadd.f32 %v339_v6, %v4793_v12  ;;  %v686_v50 = vmax.f32 %v285_v29, 0.0  ;;  %v688_v54 = vmax.f32 %v338_v30, 0.0  ;;  %v4816_v6 = vld [vmem:[%s6684_s4] sm:$0xff]  }
  0xed   :  { %v290_v7 = vpop.f32.mrf.mxu0  ;;  %v343_v8 = vpop.f32.mrf.mxu1 }
  0xee   :  { %v291_v20 = vadd.f32 %v290_v7, %v4787_v2  ;;  %v344_v26 = vadd.f32 %v343_v8, %v4787_v2  ;;  %v687_v34 = vmax.f32 %v287_v15, 0.0  ;;  %v689_v39 = vmax.f32 %v340_v19, 0.0 }
  0xef   :  { %v292_v9 = vpop.f32.mrf.mxu0  ;;  %v345_v11 = vpop.f32.mrf.mxu1  ;;  %v738_v63 = vpack.c.bf16 %v686_v50, %v670_v58  ;;  %v740_v3 = vpack.c.bf16 %v688_v54, %v672_v61 }
  0xf0   :  { %v293_v16 = vadd.f32 %v292_v9, %v4787_v2  ;;  %v346_v21 = vadd.f32 %v345_v11, %v4787_v2  ;;  %v702_v40 = vmax.f32 %v291_v20, 0.0  ;;  %v704_v46 = vmax.f32 %v344_v26, 0.0 }
  0xf1   :  { %v294_v13 = vpop.f32.mrf.mxu0  ;;  %v347_v18 = vpop.f32.mrf.mxu1  ;;  %v739_v57 = vpack.c.bf16 %v687_v34, %v671_v45  ;;  %v741_v60 = vpack.c.bf16 %v689_v39, %v673_v49 }
  0xf2   :  { %v295_v17 = vadd.f32 %v294_v13, %v4791_v10  ;;  %v348_v22 = vadd.f32 %v347_v18, %v4791_v10  ;;  %v703_v35 = vmax.f32 %v293_v16, 0.0  ;;  %v705_v41 = vmax.f32 %v346_v21, 0.0 }
  0xf3   :  { %v296_v23 = vpop.f32.mrf.mxu0  ;;  %v349_v28 = vpop.f32.mrf.mxu1 }
  0xf4   :  { %v297_v27 = vadd.f32 %v296_v23, %v4791_v10  ;;  %v718_v31 = vmax.f32 %v295_v17, 0.0  ;;  %v350_v32 = vadd.f32 %v349_v28, %v4791_v10  ;;  %v720_v36 = vmax.f32 %v348_v22, 0.0 }
  0xf5   :  { %v386_v33 = vpop.f32.mrf.mxu0  ;;  %v4810_v38 = vpop.f32.mrf.mxu1 }
  0xf6   :  { %v719_v37 = vmax.f32 %v297_v27, 0.0  ;;  %v721_v42 = vmax.f32 %v350_v32, 0.0  ;;  %v754_v51 = vpack.c.bf16 %v718_v31, %v702_v40  ;;  %v756_v55 = vpack.c.bf16 %v720_v36, %v704_v46  ;;  %v4848_v36 = vld [vmem:[%s6684_s4 + $0x8] sm:$0xff]  }
  0xf7   :  { %v388_v43 = vpop.f32.mrf.mxu0  ;;  %v441_v47 = vpop.f32.mrf.mxu1  ;;  %v4819_v11 = vadd.f32 %v386_v33, %v4789_v4 }
  0xf8   :  { %v755_v48 = vpack.c.bf16 %v719_v37, %v703_v35  ;;  %v757_v53 = vpack.c.bf16 %v721_v42, %v705_v41  ;;  %v389_v21 = vadd.f32 %v388_v43, %v4789_v4  ;;  %v442_v26 = vadd.f32 %v441_v47, %v4789_v4 }
  0xf9   :  { %v390_v52 = vpop.f32.mrf.mxu0  ;;  %v443_v56 = vpop.f32.mrf.mxu1  ;;  %v440_v43 = vadd.f32 %v4810_v38, %v4789_v4 }
  0xfa   :  { %823 = vmatprep.subr.bf16.mxu0 %v755_v48  ;;  %876 = vmatprep.subr.bf16.mxu1 %v757_v53  ;;  %v391_v27 = vadd.f32 %v390_v52, %v4793_v12  ;;  %v444_v28 = vadd.f32 %v443_v56, %v4793_v12  ;;  %v675_v48 = vmax.f32 %v389_v21, 0.0  ;;  %v677_v49 = vmax.f32 %v442_v26, 0.0 }
  0xfb   :  { %v392_v59 = vpop.f32.mrf.mxu0  ;;  %824 = vmatpush1.bf16.msra.mxu0 %v754_v51  ;;  %v445_v62 = vpop.f32.mrf.mxu1  ;;  %877 = vmatpush1.bf16.msra.mxu1 %v756_v55 }
  0xfc   :  { %825 = vmatprep.subr.bf16.mxu0 %v739_v57  ;;  %878 = vmatprep.subr.bf16.mxu1 %v741_v60  ;;  %v393_v13 = vadd.f32 %v392_v59, %v4793_v12  ;;  %v446_v17 = vadd.f32 %v445_v62, %v4793_v12  ;;  %v690_v52 = vmax.f32 %v391_v27, 0.0  ;;  %v692_v53 = vmax.f32 %v444_v28, 0.0 }
  0xfd   :  { %v396_v1 = vpop.f32.mrf.mxu0  ;;  %v674_v59 = vmax.f32 %v4819_v11, 0.0  ;;  %v676_v60 = vmax.f32 %v440_v43, 0.0 }
  0xfe   :  { %v449_v5 = vpop.f32.mrf.mxu1  ;;  %v397_v22 = vadd.f32 %v396_v1, %v4787_v2  ;;  %v691_v37 = vmax.f32 %v393_v13, 0.0  ;;  %v693_v39 = vmax.f32 %v446_v17, 0.0 }
  0xff   :  { %v398_v7 = vpop.f32.mrf.mxu0  ;;  %826 = vmatpush1.bf16.msra.mxu0 %v738_v63  ;;  %879 = vmatpush1.bf16.msra.mxu1 %v740_v3  ;;  %v450_v23 = vadd.f32 %v449_v5, %v4787_v2  ;;  %v742_v63 = vpack.c.bf16 %v690_v52, %v674_v59  ;;  %v744_v1 = vpack.c.bf16 %v692_v53, %v676_v60 }
 0x100   :  { %v451_v8 = vpop.f32.mrf.mxu1  ;;  %v399_v14 = vadd.f32 %v398_v7, %v4787_v2  ;;  %v706_v44 = vmax.f32 %v397_v22, 0.0  ;;  %v743_v57 = vpack.c.bf16 %v691_v37, %v675_v48  ;;  %v745_v58 = vpack.c.bf16 %v693_v39, %v677_v49 }
 0x101   :  { %v400_v9 = vpop.f32.mrf.mxu0  ;;  %v452_v18 = vadd.f32 %v451_v8, %v4787_v2  ;;  %v708_v45 = vmax.f32 %v450_v23, 0.0 }
 0x102   :  { %v401_v15 = vadd.f32 %v400_v9, %v4791_v10  ;;  %v453_v16 = vpop.f32.mrf.mxu1  ;;  %4285 = vmatmul.mubr.msk.bf16.vlgmr.msra.gmra.mxu0 %vm804_vm2, %v4816_v6  ;;  %4287 = vmatmul.mubr.msk.bf16.vlgmr.msra.gmra.mxu1 %vm804_vm2, %v4816_v6  ;;  %v707_v31 = vmax.f32 %v399_v14, 0.0 }
 0x103   :  { %v454_v19 = vadd.f32 %v453_v16, %v4791_v10  ;;  %v402_v20 = vpop.f32.mrf.mxu0  ;;  %853 = vmatprep.mubr.bf16.mxu0 %v6695_v0  ;;  %906 = vmatprep.mubr.bf16.mxu1 %v6695_v0  ;;  %v709_v40 = vmax.f32 %v452_v18, 0.0 }
 0x104   :  { %v403_v24 = vadd.f32 %v402_v20, %v4791_v10  ;;  %v455_v25 = vpop.f32.mrf.mxu1  ;;  %v722_v32 = vmax.f32 %v401_v15, 0.0 }
 0x105   :  { %v456_v29 = vadd.f32 %v455_v25, %v4791_v10  ;;  %v4841_v30 = vpop.f32.mrf.mxu0  ;;  %v724_v33 = vmax.f32 %v454_v19, 0.0 }
 0x106   :  { %v723_v34 = vmax.f32 %v403_v24, 0.0  ;;  %v4843_v35 = vpop.f32.mrf.mxu1  ;;  %v758_v54 = vpack.c.bf16 %v722_v32, %v706_v44 }
 0x107   :  { %v725_v41 = vmax.f32 %v456_v29, 0.0  ;;  %v494_v42 = vpop.f32.mrf.mxu0  ;;  %v760_v55 = vpack.c.bf16 %v724_v33, %v708_v45 }
 0x108   :  { %v547_v46 = vpop.f32.mrf.mxu1  ;;  %v759_v47 = vpack.c.bf16 %v723_v34, %v707_v31  ;;  %v495_v9 = vadd.f32 %v494_v42, %v4789_v4  ;;  %v493_v42 = vadd.f32 %v4841_v30, %v4789_v4 }
 0x109   :  { %v496_v50 = vpop.f32.mrf.mxu0  ;;  %v761_v51 = vpack.c.bf16 %v725_v41, %v709_v40  ;;  %v548_v23 = vadd.f32 %v547_v46, %v4789_v4 }
 0x10a   :  { %v549_v56 = vpop.f32.mrf.mxu1  ;;  %4286 = vmatmul.mubr.msk.bf16.gmra.mxu0 %vm804_vm2, %v4848_v36  ;;  %929 = vmatprep.subr.bf16.mxu0 %v759_v47  ;;  %v497_v24 = vadd.f32 %v496_v50, %v4793_v12  ;;  %v546_v47 = vadd.f32 %v4843_v35, %v4789_v4  ;;  %v679_v48 = vmax.f32 %v495_v9, 0.0  ;;  %v678_v35 = vmax.f32 %v493_v42, 0.0 }
 0x10b   :  { %4288 = vmatmul.mubr.msk.bf16.gmra.mxu1 %vm804_vm2, %v4848_v36  ;;  %982 = vmatprep.subr.bf16.mxu1 %v761_v51  ;;  %v498_v38 = vpop.f32.mrf.mxu0  ;;  %v550_v28 = vadd.f32 %v549_v56, %v4793_v12  ;;  %v681_v52 = vmax.f32 %v548_v23, 0.0 }
 0x10c   :  { %v551_v61 = vpop.f32.mrf.mxu1  ;;  %930 = vmatpush1.bf16.msra.mxu0 %v758_v54  ;;  %983 = vmatpush1.bf16.msra.mxu1 %v760_v55  ;;  %v499_v15 = vadd.f32 %v498_v38, %v4793_v12  ;;  %v694_v53 = vmax.f32 %v497_v24, 0.0  ;;  %v680_v60 = vmax.f32 %v546_v47, 0.0 }
 0x10d   :  { %931 = vmatprep.subr.bf16.mxu0 %v743_v57  ;;  %984 = vmatprep.subr.bf16.mxu1 %v745_v58  ;;  %v502_v62 = vpop.f32.mrf.mxu0  ;;  %v552_v19 = vadd.f32 %v551_v61, %v4793_v12  ;;  %v696_v56 = vmax.f32 %v550_v28, 0.0 }
 0x10e   :  { %v555_v3 = vpop.f32.mrf.mxu1  ;;  %949 = vmatprep.mubr.bf16.mxu0 %v6695_v0  ;;  %1002 = vmatprep.mubr.bf16.mxu1 %v6695_v0  ;;  %v503_v20 = vadd.f32 %v502_v62, %v4787_v2  ;;  %v695_v34 = vmax.f32 %v499_v15, 0.0  ;;  %v746_v62 = vpack.c.bf16 %v694_v53, %v678_v35  ;;  %v4937_v35 = vpop.permute.xlu0 %786 }
 0x10f   :  { %v504_v5 = vpop.f32.mrf.mxu0  ;;  %v556_v25 = vadd.f32 %v555_v3, %v4787_v2  ;;  %v697_v43 = vmax.f32 %v552_v19, 0.0 }
 0x110   :  { %v557_v7 = vpop.f32.mrf.mxu1  ;;  %932 = vmatpush1.bf16.msra.mxu0 %v742_v63  ;;  %985 = vmatpush1.bf16.msra.mxu1 %v744_v1  ;;  %v505_v11 = vadd.f32 %v504_v5, %v4787_v2  ;;  %v710_v44 = vmax.f32 %v503_v20, 0.0  ;;  %v747_v57 = vpack.c.bf16 %v695_v34, %v679_v48  ;;  %v748_v1 = vpack.c.bf16 %v696_v56, %v680_v60 }
 0x111   :  { %v506_v8 = vpop.f32.mrf.mxu0  ;;  %v558_v16 = vadd.f32 %v557_v7, %v4787_v2  ;;  %v712_v49 = vmax.f32 %v556_v25, 0.0  ;;  %v749_v59 = vpack.c.bf16 %v697_v43, %v681_v52 }
 0x112   :  { %v507_v13 = vadd.f32 %v506_v8, %v4791_v10  ;;  %v559_v14 = vpop.f32.mrf.mxu1  ;;  %v711_v29 = vmax.f32 %v505_v11, 0.0 }
 0x113   :  { %v560_v17 = vadd.f32 %v559_v14, %v4791_v10  ;;  %4289 = vmatmul.mubr.msk.bf16.vlgmr.msra.gmra.mxu0 %vm804_vm2, %v4816_v6  ;;  %4291 = vmatmul.mubr.msk.bf16.vlgmr.msra.gmra.mxu1 %vm804_vm2, %v4816_v6  ;;  %v508_v18 = vpop.f32.mrf.mxu0  ;;  %v713_v37 = vmax.f32 %v558_v16, 0.0 }
 0x114   :  { %v509_v21 = vadd.f32 %v508_v18, %v4791_v10  ;;  %v561_v22 = vpop.f32.mrf.mxu1  ;;  %959 = vmatprep.mubr.bf16.mxu0 %v6695_v0  ;;  %1012 = vmatprep.mubr.bf16.mxu1 %v6695_v0  ;;  %v726_v31 = vmax.f32 %v507_v13, 0.0 }
 0x115   :  { %v562_v26 = vadd.f32 %v561_v22, %v4791_v10  ;;  %v4878_v27 = vpop.f32.mrf.mxu0  ;;  %v728_v39 = vmax.f32 %v560_v17, 0.0 }
 0x116   :  { %v727_v32 = vmax.f32 %v509_v21, 0.0  ;;  %v4881_v33 = vpop.f32.mrf.mxu1  ;;  %v762_v54 = vpack.c.bf16 %v726_v31, %v710_v44 }
 0x117   :  { %v729_v40 = vmax.f32 %v562_v26, 0.0  ;;  %v600_v41 = vpop.f32.mrf.mxu0  ;;  %v764_v38 = vpack.c.bf16 %v728_v39, %v712_v49 }
 0x118   :  { %v653_v45 = vpop.f32.mrf.mxu1  ;;  %v763_v46 = vpack.c.bf16 %v727_v32, %v711_v29  ;;  %v601_v13 = vadd.f32 %v600_v41, %v4789_v4 }
 0x119   :  { %v602_v50 = vpop.f32.mrf.mxu0  ;;  %v765_v51 = vpack.c.bf16 %v729_v40, %v713_v37  ;;  %v654_v22 = vadd.f32 %v653_v45, %v4789_v4  ;;  %v599_v40 = vadd.f32 %v4878_v27, %v4789_v4 }
 0x11a   :  { %v655_v55 = vpop.f32.mrf.mxu1  ;;  %1035 = vmatprep.subr.bf16.mxu0 %v763_v46  ;;  %v603_v23 = vadd.f32 %v602_v50, %v4793_v12 }
 0x11b   :  { %4290 = vmatmul.mubr.msk.bf16.gmra.mxu0 %vm804_vm2, %v4848_v36  ;;  %4292 = vmatmul.mubr.msk.bf16.gmra.mxu1 %vm804_vm2, %v4848_v36  ;;  %v604_v30 = vpop.f32.mrf.mxu0  ;;  %v656_v26 = vadd.f32 %v655_v55, %v4793_v12  ;;  %v682_v50 = vmax.f32 %v599_v40, 0.0 }
 0x11c   :  { %1088 = vmatprep.subr.bf16.mxu1 %v765_v51  ;;  %v657_v58 = vpop.f32.mrf.mxu1  ;;  %1036 = vmatpush1.bf16.msra.mxu0 %v762_v54  ;;  %v605_v14 = vadd.f32 %v604_v30, %v4793_v12  ;;  %v698_v46 = vmax.f32 %v603_v23, 0.0  ;;  %v4935_v30 = vpop.permute.xlu1 %791 }
 0x11d   :  { %1089 = vmatpush1.bf16.msra.mxu1 %v764_v38  ;;  %1037 = vmatprep.subr.bf16.mxu0 %v747_v57  ;;  %v608_v61 = vpop.f32.mrf.mxu0  ;;  %v658_v18 = vadd.f32 %v657_v58, %v4793_v12  ;;  %v685_v12 = vmax.f32 %v654_v22, 0.0  ;;  %v700_v48 = vmax.f32 %v656_v26, 0.0 }
 0x11e   :  { %1090 = vmatprep.subr.bf16.mxu1 %v749_v59  ;;  %v661_v63 = vpop.f32.mrf.mxu1  ;;  %1055 = vmatprep.mubr.bf16.mxu0 %v6695_v0  ;;  %v609_v19 = vadd.f32 %v608_v61, %v4787_v2  ;;  %v699_v32 = vmax.f32 %v605_v14, 0.0  ;;  %v750_v51 = vpack.c.bf16 %v698_v46, %v682_v50 }
 0x11f   :  { %v610_v3 = vpop.f32.mrf.mxu0  ;;  %1108 = vmatprep.mubr.bf16.mxu1 %v6695_v0  ;;  %v662_v24 = vadd.f32 %v661_v63, %v4787_v2  ;;  %v701_v41 = vmax.f32 %v658_v18, 0.0 }
 0x120   :  { %v663_v5 = vpop.f32.mrf.mxu1  ;;  %1038 = vmatpush1.bf16.msra.mxu0 %v746_v62  ;;  %v611_v8 = vadd.f32 %v610_v3, %v4787_v2  ;;  %v714_v42 = vmax.f32 %v609_v19, 0.0  ;;  %v4939_v62 = vpop.permute.xlu1 %781 }
 0x121   :  { %1091 = vmatpush1.bf16.msra.mxu1 %v748_v1  ;;  %v612_v7 = vpop.f32.mrf.mxu0  ;;  %v664_v15 = vadd.f32 %v663_v5, %v4787_v2  ;;  %v652_v2 = vadd.f32 %v4881_v33, %v4789_v4  ;;  %v716_v44 = vmax.f32 %v662_v24, 0.0  ;;  %v753_v4 = vpack.c.bf16 %v701_v41, %v685_v12  ;;  %v4941_v1 = vpop.permute.xlu0 %776 }
 0x122   :  { %v613_v9 = vadd.f32 %v612_v7, %v4791_v10  ;;  %v665_v11 = vpop.f32.mrf.mxu1  ;;  %v715_v28 = vmax.f32 %v611_v8, 0.0 }
 0x123   :  { %v666_v16 = vadd.f32 %v665_v11, %v4791_v10  ;;  %4293 = vmatmul.mubr.msk.bf16.vlgmr.msra.gmra.mxu0 %vm804_vm2, %v4816_v6  ;;  %v614_v17 = vpop.f32.mrf.mxu0  ;;  %v717_v34 = vmax.f32 %v664_v15, 0.0  ;;  %v684_v33 = vmax.f32 %v652_v2, 0.0 }
 0x124   :  { %4295 = vmatmul.mubr.msk.bf16.vlgmr.msra.gmra.mxu1 %vm804_vm2, %v4816_v6  ;;  %v615_v20 = vadd.f32 %v614_v17, %v4791_v10  ;;  %v667_v21 = vpop.f32.mrf.mxu1  ;;  %1065 = vmatprep.mubr.bf16.mxu0 %v6695_v0  ;;  %v730_v29 = vmax.f32 %v613_v9, 0.0 }
 0x125   :  { %v668_v25 = vadd.f32 %v667_v21, %v4791_v10  ;;  %1118 = vmatprep.mubr.bf16.mxu1 %v6695_v0  ;;  %v732_v37 = vmax.f32 %v666_v16, 0.0  ;;  %v683_v10 = vmax.f32 %v601_v13, 0.0  ;;  %v752_v52 = vpack.c.bf16 %v700_v48, %v684_v33 }
 0x126   :  { %v731_v31 = vmax.f32 %v615_v20, 0.0  ;;  %v766_v47 = vpack.c.bf16 %v730_v29, %v714_v42 }
 0x127   :  { %v733_v39 = vmax.f32 %v668_v25, 0.0  ;;  %v768_v49 = vpack.c.bf16 %v732_v37, %v716_v44  ;;  %v751_v27 = vpack.c.bf16 %v699_v32, %v683_v10 }
 0x128   :  { %v767_v43 = vpack.c.bf16 %v731_v31, %v715_v28 }
 0x129   :  { %v769_v45 = vpack.c.bf16 %v733_v39, %v717_v34 }
 0x12a   :  { %1141 = vmatprep.subr.bf16.mxu0 %v767_v43 }
 0x12b   :  { %4294 = vmatmul.mubr.msk.bf16.gmra.mxu0 %vm804_vm2, %v4848_v36  ;;  %1194 = vmatprep.subr.bf16.mxu1 %v769_v45 }
 0x12c   :  { %4296 = vmatmul.mubr.msk.bf16.gmra.mxu1 %vm804_vm2, %v4848_v36  ;;  %1142 = vmatpush1.bf16.msra.mxu0 %v766_v47 }
 0x12d   :  { %1195 = vmatpush1.bf16.msra.mxu1 %v768_v49  ;;  %1143 = vmatprep.subr.bf16.mxu0 %v751_v27 }
 0x12e   :  { %1196 = vmatprep.subr.bf16.mxu1 %v753_v4  ;;  %1161 = vmatprep.mubr.bf16.mxu0 %v6695_v0 }
 0x12f   :  { %1214 = vmatprep.mubr.bf16.mxu1 %v6695_v0 }
 0x130   :  { %1144 = vmatpush1.bf16.msra.mxu0 %v750_v51 }
 0x131   :  { %1197 = vmatpush1.bf16.msra.mxu1 %v752_v52 }
 0x133   :  { %4297 = vmatmul.mubr.msk.bf16.vlgmr.msra.gmra.mxu0 %vm804_vm2, %v4816_v6 }
 0x134   :  { %4299 = vmatmul.mubr.msk.bf16.vlgmr.msra.gmra.mxu1 %vm804_vm2, %v4816_v6  ;;  %1171 = vmatprep.mubr.bf16.mxu0 %v6695_v0 }
 0x135   :  { %1224 = vmatprep.mubr.bf16.mxu1 %v6695_v0 }
 0x13b   :  { %4298 = vmatmul.mubr.msk.bf16.gmra.mxu0 %vm804_vm2, %v4848_v36 }
 0x13c   :  { %4300 = vmatmul.mubr.msk.bf16.gmra.mxu1 %vm804_vm2, %v4848_v36  ;;  %1407 = vmatprep.mubr.bf16.mxu0 %v6695_v0 }
 0x13d   :  { %1460 = vmatprep.mubr.bf16.mxu1 %v6695_v0 }
 0x1c2   :  { %v845_v53 = vpop.f32.mrf.mxu0  ;;  %v898_v54 = vpop.f32.mrf.mxu1 }
 0x1c3   :  { %v846_v9 = vadd.f32 %v845_v53, %v4941_v1  ;;  %v899_v44 = vadd.f32 %v898_v54, %v4941_v1 }
 0x1c4   :  { %v847_v55 = vpop.f32.mrf.mxu0  ;;  %v900_v56 = vpop.f32.mrf.mxu1 }
 0x1c5   :  { %v848_v15 = vadd.f32 %v847_v55, %v4941_v1  ;;  %v901_v24 = vadd.f32 %v900_v56, %v4941_v1  ;;  %v1235_v4 = vmax.f32 %v846_v9, 0.0  ;;  %v1237_v56 = vmax.f32 %v899_v44, 0.0 }
 0x1c6   :  { %v849_v38 = vpop.f32.mrf.mxu0  ;;  %v902_v6 = vpop.f32.mrf.mxu1 }
 0x1c7   :  { %v850_v20 = vadd.f32 %v849_v38, %v4939_v62  ;;  %v903_v32 = vadd.f32 %v902_v6, %v4939_v62  ;;  %v1236_v40 = vmax.f32 %v848_v15, 0.0  ;;  %v1238_v47 = vmax.f32 %v901_v24, 0.0 }
 0x1c8   :  { %v851_v57 = vpop.f32.mrf.mxu0  ;;  %v904_v58 = vpop.f32.mrf.mxu1 }
 0x1c9   :  { %v852_v3 = vadd.f32 %v851_v57, %v4939_v62  ;;  %v905_v16 = vadd.f32 %v904_v58, %v4939_v62  ;;  %v1251_v45 = vmax.f32 %v850_v20, 0.0  ;;  %v1253_v33 = vmax.f32 %v903_v32, 0.0  ;;  %v4963_v57 = vld [vmem:[#allocation2] sm:$0xff]  }
 0x1ca   :  { %v855_v59 = vpop.f32.mrf.mxu0 }
 0x1cb   :  { %v908_v60 = vpop.f32.mrf.mxu1  ;;  %v856_v11 = vadd.f32 %v855_v59, %v4937_v35  ;;  %v1252_v25 = vmax.f32 %v852_v3, 0.0  ;;  %v1254_v41 = vmax.f32 %v905_v16, 0.0  ;;  %v1303_v54 = vpack.c.bf16 %v1251_v45, %v1235_v4 }
 0x1cc   :  { %v857_v61 = vpop.f32.mrf.mxu0  ;;  %v909_v21 = vadd.f32 %v908_v60, %v4937_v35  ;;  %v1305_v58 = vpack.c.bf16 %v1253_v33, %v1237_v56 }
 0x1cd   :  { %v910_v36 = vpop.f32.mrf.mxu1  ;;  %v858_v5 = vadd.f32 %v857_v61, %v4937_v35  ;;  %v1267_v34 = vmax.f32 %v856_v11, 0.0  ;;  %v1304_v50 = vpack.c.bf16 %v1252_v25, %v1236_v40  ;;  %v1306_v55 = vpack.c.bf16 %v1254_v41, %v1238_v47 }
 0x1ce   :  { %v859_v63 = vpop.f32.mrf.mxu0  ;;  %v911_v17 = vadd.f32 %v910_v36, %v4937_v35  ;;  %v1269_v12 = vmax.f32 %v909_v21, 0.0 }
 0x1cf   :  { %v860_v7 = vadd.f32 %v859_v63, %v4935_v30  ;;  %v912_v8 = vpop.f32.mrf.mxu1  ;;  %v1268_v26 = vmax.f32 %v858_v5, 0.0 }
 0x1d0   :  { %v913_v13 = vadd.f32 %v912_v8, %v4935_v30  ;;  %v861_v14 = vpop.f32.mrf.mxu0  ;;  %v1270_v42 = vmax.f32 %v911_v17, 0.0 }
 0x1d1   :  { %v862_v18 = vadd.f32 %v861_v14, %v4935_v30  ;;  %v914_v19 = vpop.f32.mrf.mxu1  ;;  %v1283_v22 = vmax.f32 %v860_v7, 0.0 }
 0x1d2   :  { %v915_v23 = vadd.f32 %v914_v19, %v4935_v30  ;;  %v1285_v37 = vmax.f32 %v913_v13, 0.0 }
 0x1d3   :  { %v1284_v28 = vmax.f32 %v862_v18, 0.0  ;;  %v4957_v29 = vpop.f32.mrf.mxu0  ;;  %v4959_v31 = vpop.f32.mrf.mxu1  ;;  %v1319_v46 = vpack.c.bf16 %v1283_v22, %v1267_v34 }
 0x1d4   :  { %v1286_v39 = vmax.f32 %v915_v23, 0.0  ;;  %v1321_v51 = vpack.c.bf16 %v1285_v37, %v1269_v12  ;;  %v952_v40 = vadd.f32 %v4957_v29, %v4941_v1  ;;  %v1005_v41 = vadd.f32 %v4959_v31, %v4941_v1 }
 0x1d5   :  { %v953_v43 = vpop.f32.mrf.mxu0  ;;  %v1006_v2 = vpop.f32.mrf.mxu1  ;;  %v1320_v10 = vpack.c.bf16 %v1284_v28, %v1268_v26  ;;  %v4985_v26 = vld [vmem:[#allocation2 + $0x8] sm:$0xff]  }
 0x1d6   :  { %v1322_v27 = vpack.c.bf16 %v1286_v39, %v1270_v42  ;;  %v954_v9 = vadd.f32 %v953_v43, %v4941_v1  ;;  %v1007_v11 = vadd.f32 %v1006_v2, %v4941_v1  ;;  %v1239_v33 = vmax.f32 %v952_v40, 0.0 }
 0x1d7   :  { %v955_v48 = vpop.f32.mrf.mxu0  ;;  %v1008_v49 = vpop.f32.mrf.mxu1  ;;  %1387 = vmatprep.subr.bf16.mxu0 %v1320_v10 }
 0x1d8   :  { %1388 = vmatpush1.bf16.msra.mxu0 %v1319_v46  ;;  %1440 = vmatprep.subr.bf16.mxu1 %v1322_v27  ;;  %v956_v17 = vadd.f32 %v955_v48, %v4939_v62  ;;  %v1009_v21 = vadd.f32 %v1008_v49, %v4939_v62  ;;  %v1240_v10 = vmax.f32 %v954_v9, 0.0  ;;  %v1242_v47 = vmax.f32 %v1007_v11, 0.0 }
 0x1d9   :  { %v957_v52 = vpop.f32.mrf.mxu0  ;;  %v1010_v53 = vpop.f32.mrf.mxu1  ;;  %1389 = vmatprep.subr.bf16.mxu0 %v1304_v50  ;;  %1441 = vmatpush1.bf16.msra.mxu1 %v1321_v51 }
 0x1da   :  { %1442 = vmatprep.subr.bf16.mxu1 %v1306_v55  ;;  %v958_v61 = vadd.f32 %v957_v52, %v4939_v62  ;;  %v1011_v13 = vadd.f32 %v1010_v53, %v4939_v62  ;;  %v1255_v48 = vmax.f32 %v956_v17, 0.0  ;;  %v1257_v50 = vmax.f32 %v1009_v21, 0.0 }
 0x1db   :  { %v961_v38 = vpop.f32.mrf.mxu0  ;;  %v1014_v6 = vpop.f32.mrf.mxu1  ;;  %v1241_v53 = vmax.f32 %v1005_v41, 0.0 }
 0x1dc   :  { %1390 = vmatpush1.bf16.msra.mxu0 %v1303_v54  ;;  %v962_v14 = vadd.f32 %v961_v38, %v4937_v35  ;;  %v1015_v18 = vadd.f32 %v1014_v6, %v4937_v35  ;;  %v1256_v22 = vmax.f32 %v958_v61, 0.0  ;;  %v1258_v42 = vmax.f32 %v1011_v13, 0.0 }
 0x1dd   :  { %v963_v59 = vpop.f32.mrf.mxu0  ;;  %v1016_v60 = vpop.f32.mrf.mxu1  ;;  %1443 = vmatpush1.bf16.msra.mxu1 %v1305_v58  ;;  %v1307_v56 = vpack.c.bf16 %v1255_v48, %v1239_v33  ;;  %v1309_v38 = vpack.c.bf16 %v1257_v50, %v1241_v53 }
 0x1de   :  { %v964_v36 = vadd.f32 %v963_v59, %v4937_v35  ;;  %v1017_v5 = vadd.f32 %v1016_v60, %v4937_v35  ;;  %v1271_v43 = vmax.f32 %v962_v14, 0.0  ;;  %v1273_v44 = vmax.f32 %v1015_v18, 0.0 }
 0x1df   :  { %v965_v63 = vpop.f32.mrf.mxu0  ;;  %v1018_v3 = vpop.f32.mrf.mxu1  ;;  %4303 = vmatmul.mubr.msk.bf16.vlgmr.msra.gmra.mxu0 %vm804_vm2, %v4963_v57  ;;  %v1308_v31 = vpack.c.bf16 %v1256_v22, %v1240_v10  ;;  %v1310_v52 = vpack.c.bf16 %v1258_v42, %v1242_v47 }
 0x1e0   :  { %v966_v7 = vadd.f32 %v965_v63, %v4935_v30  ;;  %v1019_v8 = vadd.f32 %v1018_v3, %v4935_v30  ;;  %1417 = vmatprep.mubr.bf16.mxu0 %v6695_v0  ;;  %4305 = vmatmul.mubr.msk.bf16.vlgmr.msra.gmra.mxu1 %vm804_vm2, %v4963_v57  ;;  %v1272_v23 = vmax.f32 %v964_v36, 0.0  ;;  %v1274_v28 = vmax.f32 %v1017_v5, 0.0 }
 0x1e1   :  { %v967_v15 = vpop.f32.mrf.mxu0  ;;  %v1020_v16 = vpop.f32.mrf.mxu1  ;;  %1470 = vmatprep.mubr.bf16.mxu1 %v6695_v0 }
 0x1e2   :  { %v968_v19 = vadd.f32 %v967_v15, %v4935_v30  ;;  %v1021_v20 = vadd.f32 %v1020_v16, %v4935_v30  ;;  %v1287_v24 = vmax.f32 %v966_v7, 0.0  ;;  %v1289_v32 = vmax.f32 %v1019_v8, 0.0 }
 0x1e3   :  { %v1057_v25 = vpop.f32.mrf.mxu0 }
 0x1e4   :  { %v1288_v34 = vmax.f32 %v968_v19, 0.0  ;;  %v1290_v37 = vmax.f32 %v1021_v20, 0.0  ;;  %v4987_v39 = vpop.f32.mrf.mxu1  ;;  %v1323_v49 = vpack.c.bf16 %v1287_v24, %v1271_v43  ;;  %v1325_v29 = vpack.c.bf16 %v1289_v32, %v1273_v44 }
 0x1e5   :  { %v1059_v2 = vpop.f32.mrf.mxu0  ;;  %v5000_v61 = vadd.f32 %v1057_v25, %v4941_v1  ;;  %v1111_v43 = vadd.f32 %v4987_v39, %v4941_v1 }
 0x1e6   :  { %v1112_v45 = vpop.f32.mrf.mxu1  ;;  %v1324_v12 = vpack.c.bf16 %v1288_v34, %v1272_v23  ;;  %v1326_v46 = vpack.c.bf16 %v1290_v37, %v1274_v28  ;;  %v1060_v13 = vadd.f32 %v1059_v2, %v4941_v1 }
 0x1e7   :  { %v1061_v27 = vpop.f32.mrf.mxu0  ;;  %4304 = vmatmul.mubr.msk.bf16.gmra.mxu0 %vm804_vm2, %v4985_v26  ;;  %v1113_v18 = vadd.f32 %v1112_v45, %v4941_v1 }
 0x1e8   :  { %v1114_v4 = vpop.f32.mrf.mxu1  ;;  %1493 = vmatprep.subr.bf16.mxu0 %v1324_v12  ;;  %1546 = vmatprep.subr.bf16.mxu1 %v1326_v46  ;;  %v1062_v19 = vadd.f32 %v1061_v27, %v4939_v62  ;;  %v1244_v12 = vmax.f32 %v1060_v13, 0.0 }
 0x1e9   :  { %4306 = vmatmul.mubr.msk.bf16.gmra.mxu1 %vm804_vm2, %v4985_v26  ;;  %v1063_v51 = vpop.f32.mrf.mxu0  ;;  %1494 = vmatpush1.bf16.msra.mxu0 %v1323_v49  ;;  %v1115_v20 = vadd.f32 %v1114_v4, %v4939_v62  ;;  %v1246_v46 = vmax.f32 %v1113_v18, 0.0 }
 0x1ea   :  { %v1116_v55 = vpop.f32.mrf.mxu1  ;;  %1547 = vmatpush1.bf16.msra.mxu1 %v1325_v29  ;;  %1495 = vmatprep.subr.bf16.mxu0 %v1308_v31  ;;  %v1064_v36 = vadd.f32 %v1063_v51, %v4939_v62  ;;  %v1259_v49 = vmax.f32 %v1062_v19, 0.0  ;;  %v1243_v51 = vmax.f32 %v5000_v61, 0.0 }
 0x1eb   :  { %1548 = vmatprep.subr.bf16.mxu1 %v1310_v52  ;;  %v1067_v54 = vpop.f32.mrf.mxu0  ;;  %1513 = vmatprep.mubr.bf16.mxu0 %v6695_v0  ;;  %v1117_v7 = vadd.f32 %v1116_v55, %v4939_v62  ;;  %v1261_v27 = vmax.f32 %v1115_v20, 0.0  ;;  %v1245_v52 = vmax.f32 %v1111_v43, 0.0 }
 0x1ec   :  { %v1120_v6 = vpop.f32.mrf.mxu1  ;;  %1566 = vmatprep.mubr.bf16.mxu1 %v6695_v0  ;;  %v1068_v14 = vadd.f32 %v1067_v54, %v4937_v35  ;;  %v1260_v34 = vmax.f32 %v1064_v36, 0.0 }
 0x1ed   :  { %v1069_v58 = vpop.f32.mrf.mxu0  ;;  %1496 = vmatpush1.bf16.msra.mxu0 %v1307_v56  ;;  %v1121_v15 = vadd.f32 %v1120_v6, %v4937_v35  ;;  %v1262_v37 = vmax.f32 %v1117_v7, 0.0  ;;  %v1311_v56 = vpack.c.bf16 %v1259_v49, %v1243_v51  ;;  %v1313_v54 = vpack.c.bf16 %v1261_v27, %v1245_v52  ;;  %v5077_v49 = vpop.permute.xlu0 %1351 }
 0x1ee   :  { %v1122_v59 = vpop.f32.mrf.mxu1  ;;  %1549 = vmatpush1.bf16.msra.mxu1 %v1309_v38  ;;  %v1070_v63 = vadd.f32 %v1069_v58, %v4937_v35  ;;  %v1275_v2 = vmax.f32 %v1068_v14, 0.0  ;;  %v1312_v31 = vpack.c.bf16 %v1260_v34, %v1244_v12  ;;  %v5079_v27 = vpop.permute.xlu1 %1356 }
 0x1ef   :  { %v1071_v60 = vpop.f32.mrf.mxu0  ;;  %v1123_v8 = vadd.f32 %v1122_v59, %v4937_v35  ;;  %v1277_v10 = vmax.f32 %v1121_v15, 0.0  ;;  %v1314_v33 = vpack.c.bf16 %v1262_v37, %v1246_v46 }
 0x1f0   :  { %v1072_v3 = vadd.f32 %v1071_v60, %v4935_v30  ;;  %v1124_v5 = vpop.f32.mrf.mxu1  ;;  %4307 = vmatmul.mubr.msk.bf16.vlgmr.msra.gmra.mxu0 %vm804_vm2, %v4963_v57  ;;  %v1276_v23 = vmax.f32 %v1070_v63, 0.0 }
 0x1f1   :  { %v1125_v9 = vadd.f32 %v1124_v5, %v4935_v30  ;;  %4309 = vmatmul.mubr.msk.bf16.vlgmr.msra.gmra.mxu1 %vm804_vm2, %v4963_v57  ;;  %v1073_v11 = vpop.f32.mrf.mxu0  ;;  %1523 = vmatprep.mubr.bf16.mxu0 %v6695_v0  ;;  %v1278_v40 = vmax.f32 %v1123_v8, 0.0 }
 0x1f2   :  { %v1074_v16 = vadd.f32 %v1073_v11, %v4935_v30  ;;  %v1126_v17 = vpop.f32.mrf.mxu1  ;;  %1576 = vmatprep.mubr.bf16.mxu1 %v6695_v0  ;;  %v1291_v24 = vmax.f32 %v1072_v3, 0.0 }
 0x1f3   :  { %v1127_v21 = vadd.f32 %v1126_v17, %v4935_v30  ;;  %v5022_v22 = vpop.f32.mrf.mxu0  ;;  %v1293_v25 = vmax.f32 %v1125_v9, 0.0 }
 0x1f4   :  { %v1292_v28 = vmax.f32 %v1074_v16, 0.0  ;;  %v5024_v32 = vpop.f32.mrf.mxu1  ;;  %v1327_v50 = vpack.c.bf16 %v1291_v24, %v1275_v2  ;;  %v1164_v37 = vadd.f32 %v5022_v22, %v4941_v1 }
 0x1f5   :  { %v1294_v41 = vmax.f32 %v1127_v21, 0.0  ;;  %v1165_v42 = vpop.f32.mrf.mxu0  ;;  %v1329_v29 = vpack.c.bf16 %v1293_v25, %v1277_v10 }
 0x1f6   :  { %v1218_v44 = vpop.f32.mrf.mxu1  ;;  %v1328_v45 = vpack.c.bf16 %v1292_v28, %v1276_v23  ;;  %v1166_v60 = vadd.f32 %v1165_v42, %v4941_v1  ;;  %v1247_v46 = vmax.f32 %v1164_v37, 0.0 }
 0x1f7   :  { %v1167_v47 = vpop.f32.mrf.mxu0  ;;  %v1330_v48 = vpack.c.bf16 %v1294_v41, %v1278_v40  ;;  %v1219_v15 = vadd.f32 %v1218_v44, %v4941_v1 }
 0x1f8   :  { %v1220_v4 = vpop.f32.mrf.mxu1  ;;  %4308 = vmatmul.mubr.msk.bf16.gmra.mxu0 %vm804_vm2, %v4985_v26  ;;  %1599 = vmatprep.subr.bf16.mxu0 %v1328_v45  ;;  %v1168_v16 = vadd.f32 %v1167_v47, %v4939_v62  ;;  %v1248_v43 = vmax.f32 %v1166_v60, 0.0 }
 0x1f9   :  { %4310 = vmatmul.mubr.msk.bf16.gmra.mxu1 %vm804_vm2, %v4985_v26  ;;  %1652 = vmatprep.subr.bf16.mxu1 %v1330_v48  ;;  %v1169_v39 = vpop.f32.mrf.mxu0  ;;  %v1221_v19 = vadd.f32 %v1220_v4, %v4939_v62 }
 0x1fa   :  { %v1222_v53 = vpop.f32.mrf.mxu1  ;;  %1600 = vmatpush1.bf16.msra.mxu0 %v1327_v50  ;;  %1653 = vmatpush1.bf16.msra.mxu1 %v1329_v29  ;;  %v1170_v3 = vadd.f32 %v1169_v39, %v4939_v62  ;;  %v1263_v10 = vmax.f32 %v1168_v16, 0.0  ;;  %v5081_v50 = vpop.permute.xlu0 %1341 }
 0x1fb   :  { %1601 = vmatprep.subr.bf16.mxu0 %v1312_v31  ;;  %1654 = vmatprep.subr.bf16.mxu1 %v1314_v33  ;;  %v1173_v55 = vpop.f32.mrf.mxu0  ;;  %v1223_v9 = vadd.f32 %v1222_v53, %v4939_v62  ;;  %v1250_v62 = vmax.f32 %v1219_v15, 0.0  ;;  %v1265_v45 = vmax.f32 %v1221_v19, 0.0  ;;  %v5088_v53 = vpop.permute.xlu1 %1346 }
 0x1fc   :  { %v1226_v38 = vpop.f32.mrf.mxu1  ;;  %1619 = vmatprep.mubr.bf16.mxu0 %v6695_v0  ;;  %1672 = vmatprep.mubr.bf16.mxu1 %v6695_v0  ;;  %v1174_v11 = vadd.f32 %v1173_v55, %v4937_v35  ;;  %v1264_v24 = vmax.f32 %v1170_v3, 0.0  ;;  %v1315_v47 = vpack.c.bf16 %v1263_v10, %v1247_v46 }
 0x1fd   :  { %v1175_v6 = vpop.f32.mrf.mxu0  ;;  %v1227_v17 = vadd.f32 %v1226_v38, %v4937_v35  ;;  %v1266_v40 = vmax.f32 %v1223_v9, 0.0 }
 0x1fe   :  { %v1228_v58 = vpop.f32.mrf.mxu1  ;;  %1602 = vmatpush1.bf16.msra.mxu0 %v1311_v56  ;;  %1655 = vmatpush1.bf16.msra.mxu1 %v1313_v54  ;;  %v1176_v61 = vadd.f32 %v1175_v6, %v4937_v35  ;;  %v1279_v41 = vmax.f32 %v1174_v11, 0.0  ;;  %v1316_v22 = vpack.c.bf16 %v1264_v24, %v1248_v43 }
 0x1ff   :  { %v1177_v59 = vpop.f32.mrf.mxu0  ;;  %v1229_v5 = vadd.f32 %v1228_v58, %v4937_v35  ;;  %v1217_v35 = vadd.f32 %v5024_v32, %v4941_v1  ;;  %v1318_v1 = vpack.c.bf16 %v1266_v40, %v1250_v62 }
 0x200   :  { %v1178_v36 = vadd.f32 %v1177_v59, %v4935_v30  ;;  %v1230_v63 = vpop.f32.mrf.mxu1  ;;  %v1280_v20 = vmax.f32 %v1176_v61, 0.0 }
 0x201   :  { %v1231_v7 = vadd.f32 %v1230_v63, %v4935_v30  ;;  %4311 = vmatmul.mubr.msk.bf16.vlgmr.msra.gmra.mxu0 %vm804_vm2, %v4963_v57  ;;  %4313 = vmatmul.mubr.msk.bf16.vlgmr.msra.gmra.mxu1 %vm804_vm2, %v4963_v57  ;;  %v1179_v8 = vpop.f32.mrf.mxu0  ;;  %v1282_v25 = vmax.f32 %v1229_v5, 0.0  ;;  %v1249_v32 = vmax.f32 %v1217_v35, 0.0 }
 0x202   :  { %v1180_v13 = vadd.f32 %v1179_v8, %v4935_v30  ;;  %v1232_v14 = vpop.f32.mrf.mxu1  ;;  %1629 = vmatprep.mubr.bf16.mxu0 %v6695_v0  ;;  %1682 = vmatprep.mubr.bf16.mxu1 %v6695_v0  ;;  %v1295_v21 = vmax.f32 %v1178_v36, 0.0 }
 0x203   :  { %v1233_v18 = vadd.f32 %v1232_v14, %v4935_v30  ;;  %v1297_v28 = vmax.f32 %v1231_v7, 0.0  ;;  %v1281_v30 = vmax.f32 %v1227_v17, 0.0  ;;  %v1317_v48 = vpack.c.bf16 %v1265_v45, %v1249_v32 }
 0x204   :  { %v1296_v23 = vmax.f32 %v1180_v13, 0.0  ;;  %v1331_v44 = vpack.c.bf16 %v1295_v21, %v1279_v41 }
 0x205   :  { %v1298_v34 = vmax.f32 %v1233_v18, 0.0  ;;  %v1333_v12 = vpack.c.bf16 %v1297_v28, %v1281_v30 }
 0x206   :  { %v1332_v42 = vpack.c.bf16 %v1296_v23, %v1280_v20 }
 0x207   :  { %v1334_v2 = vpack.c.bf16 %v1298_v34, %v1282_v25 }
 0x208   :  { %1705 = vmatprep.subr.bf16.mxu0 %v1332_v42 }
 0x209   :  { %4312 = vmatmul.mubr.msk.bf16.gmra.mxu0 %vm804_vm2, %v4985_v26  ;;  %4314 = vmatmul.mubr.msk.bf16.gmra.mxu1 %vm804_vm2, %v4985_v26 }
 0x20a   :  { %1758 = vmatprep.subr.bf16.mxu1 %v1334_v2  ;;  %1706 = vmatpush1.bf16.msra.mxu0 %v1331_v44 }
 0x20b   :  { %1759 = vmatpush1.bf16.msra.mxu1 %v1333_v12  ;;  %1707 = vmatprep.subr.bf16.mxu0 %v1316_v22 }
 0x20c   :  { %1760 = vmatprep.subr.bf16.mxu1 %v1318_v1  ;;  %1725 = vmatprep.mubr.bf16.mxu0 %v6695_v0 }
 0x20d   :  { %1778 = vmatprep.mubr.bf16.mxu1 %v6695_v0 }
 0x20e   :  { %1708 = vmatpush1.bf16.msra.mxu0 %v1315_v47 }
 0x20f   :  { %1761 = vmatpush1.bf16.msra.mxu1 %v1317_v48 }
 0x211   :  { %4315 = vmatmul.mubr.msk.bf16.vlgmr.msra.gmra.mxu0 %vm804_vm2, %v4963_v57 }
 0x212   :  { %4317 = vmatmul.mubr.msk.bf16.vlgmr.msra.gmra.mxu1 %vm804_vm2, %v4963_v57  ;;  %1735 = vmatprep.mubr.bf16.mxu0 %v6695_v0 }
 0x213   :  { %1788 = vmatprep.mubr.bf16.mxu1 %v6695_v0 }
 0x219   :  { %4316 = vmatmul.mubr.msk.bf16.gmra.mxu0 %vm804_vm2, %v4985_v26 }
 0x21a   :  { %4318 = vmatmul.mubr.msk.bf16.gmra.mxu1 %vm804_vm2, %v4985_v26  ;;  %1971 = vmatprep.mubr.bf16.mxu0 %v6695_v0 }
 0x21b   :  { %2024 = vmatprep.mubr.bf16.mxu1 %v6695_v0 }
 0x29f   :  { %v1409_v57 = vpop.f32.mrf.mxu0 }
 0x2a0   :  { %v1410_v29 = vadd.f32 %v1409_v57, %v5081_v50  ;;  %v1462_v4 = vpop.f32.mrf.mxu1 }
 0x2a1   :  { %v1411_v39 = vpop.f32.mrf.mxu0  ;;  %v1463_v31 = vadd.f32 %v1462_v4, %v5081_v50 }
 0x2a2   :  { %v1412_v33 = vadd.f32 %v1411_v39, %v5081_v50  ;;  %v5086_v26 = vmax.f32 %v1410_v29, 0.0  ;;  %v1464_v51 = vpop.f32.mrf.mxu1 }
 0x2a3   :  { %v1413_v52 = vpop.f32.mrf.mxu0  ;;  %v5090_v55 = vmax.f32 %v1463_v31, 0.0  ;;  %v1465_v54 = vadd.f32 %v1464_v51, %v5081_v50 }
 0x2a4   :  { %6781 = vst [vmem:[#allocation14_spill] sm:$0xff] %v5086_v26  ;;  %v5092_v56 = vmax.f32 %v1412_v33, 0.0  ;;  %v1414_v38 = vadd.f32 %v1413_v52, %v5088_v53  ;;  %v1466_v6 = vpop.f32.mrf.mxu1  ;;  %v2797_v61 = vmul.f32 %v5086_v26, %v5086_v26 }
 0x2a5   :  { %6782 = vst [vmem:[#allocation15_spill] sm:$0xff] %v5090_v55  ;;  %v1415_v58 = vpop.f32.mrf.mxu0  ;;  %v5096_v59 = vmax.f32 %v1465_v54, 0.0  ;;  %v1467_v60 = vadd.f32 %v1466_v6, %v5088_v53  ;;  %v2799_v36 = vmul.f32 %v5090_v55, %v5090_v55 }
 0x2a6   :  { %v5103_v63 = vmax.f32 %v1414_v38, 0.0  ;;  %v1416_v3 = vadd.f32 %v1415_v58, %v5088_v53  ;;  %v1468_v5 = vpop.f32.mrf.mxu1  ;;  %v2798_v8 = vmul.f32 %v5092_v56, %v5092_v56 }
 0x2a7   :  { %v1419_v7 = vpop.f32.mrf.mxu0  ;;  %v5108_v9 = vmax.f32 %v1467_v60, 0.0  ;;  %v1469_v11 = vadd.f32 %v1468_v5, %v5088_v53  ;;  %v2800_v14 = vmul.f32 %v5096_v59, %v5096_v59 }
 0x2a8   :  { %6783 = vst [vmem:[#allocation16_spill] sm:$0xff] %v5103_v63  ;;  %v1420_v13 = vadd.f32 %v1419_v7, %v5077_v49  ;;  %v1867_v15 = vpack.c.bf16 %v5103_v63, %v5086_v26  ;;  %v2813_v16 = vmul.f32 %v5103_v63, %v5103_v63  ;;  %v5118_v17 = vmax.f32 %v1416_v3, 0.0 }
 0x2a9   :  { %6784 = vst [vmem:[#allocation17_spill] sm:$0xff] %v5108_v9  ;;  %v1472_v18 = vpop.f32.mrf.mxu1  ;;  %v1421_v19 = vpop.f32.mrf.mxu0  ;;  %v1869_v20 = vpack.c.bf16 %v5108_v9, %v5090_v55  ;;  %v2815_v21 = vmul.f32 %v5108_v9, %v5108_v9  ;;  %v5124_v23 = vmax.f32 %v1469_v11, 0.0 }
 0x2aa   :  { %v5126_v24 = vmax.f32 %v1420_v13, 0.0  ;;  %v2861_v25 = vadd.f32 %v2813_v16, %v2797_v61  ;;  %v2814_v28 = vmul.f32 %v5118_v17, %v5118_v17  ;;  %v1473_v34 = vadd.f32 %v1472_v18, %v5077_v49 }
 0x2ab   :  { %v1422_v37 = vadd.f32 %v1421_v19, %v5077_v49  ;;  %v1474_v40 = vpop.f32.mrf.mxu1  ;;  %v1423_v41 = vpop.f32.mrf.mxu0  ;;  %v2879_v42 = vadd.f32 %v2815_v21, %v2799_v36  ;;  %v2816_v35 = vmul.f32 %v5124_v23, %v5124_v23  ;;  %v1868_v52 = vpack.c.bf16 %v5118_v17, %v5092_v56 }
 0x2ac   :  { %6785 = vst [vmem:[#allocation18_spill] sm:$0xff] %v5126_v24  ;;  %v2829_v43 = vmul.f32 %v5126_v24, %v5126_v24  ;;  %v1475_v30 = vadd.f32 %v1474_v40, %v5077_v49  ;;  %v2870_v2 = vadd.f32 %v2814_v28, %v2798_v8  ;;  %v5137_v62 = vmax.f32 %v1473_v34, 0.0 }
 0x2ad   :  { %v5139_v10 = vmax.f32 %v1422_v37, 0.0  ;;  %v1424_v44 = vadd.f32 %v1423_v41, %v5079_v27  ;;  %v1476_v45 = vpop.f32.mrf.mxu1  ;;  %v1425_v12 = vpop.f32.mrf.mxu0  ;;  %v2888_v22 = vadd.f32 %v2816_v35, %v2800_v14 }
 0x2ae   :  { %6786 = vst [vmem:[#allocation19_spill] sm:$0xff] %v5137_v62  ;;  %v2862_v46 = vadd.f32 %v2861_v25, %v2829_v43  ;;  %v5142_v1 = vmax.f32 %v1475_v30, 0.0  ;;  %v1477_v32 = vadd.f32 %v1476_v45, %v5079_v27  ;;  %v2831_v47 = vmul.f32 %v5137_v62, %v5137_v62 }
 0x2af   :  { %6787 = vst [vmem:[#allocation20_spill] sm:$0xff] %v5139_v10  ;;  %v2830_v48 = vmul.f32 %v5139_v10, %v5139_v10  ;;  %v5149_v57 = vmax.f32 %v1424_v44, 0.0  ;;  %v1426_v29 = vadd.f32 %v1425_v12, %v5079_v27  ;;  %v1478_v4 = vpop.f32.mrf.mxu1 }
 0x2b0   :  { %6788 = vst [vmem:[#allocation21_spill] sm:$0xff] %v5142_v1  ;;  %v2832_v39 = vmul.f32 %v5142_v1, %v5142_v1  ;;  %v5154_v31 = vmax.f32 %v1477_v32, 0.0  ;;  %v1479_v33 = vadd.f32 %v1478_v4, %v5079_v27  ;;  %v1515_v51 = vpop.f32.mrf.mxu0  ;;  %v2880_v54 = vadd.f32 %v2879_v42, %v2831_v47 }
 0x2b1   :  { %v2871_v38 = vadd.f32 %v2870_v2, %v2830_v48  ;;  %v1883_v6 = vpack.c.bf16 %v5149_v57, %v5126_v24  ;;  %v2845_v58 = vmul.f32 %v5149_v57, %v5149_v57  ;;  %v1568_v60 = vpop.f32.mrf.mxu1  ;;  %v5167_v5 = vmax.f32 %v1426_v29, 0.0 }
 0x2b2   :  { %v2889_v61 = vadd.f32 %v2888_v22, %v2832_v39  ;;  %v1885_v36 = vpack.c.bf16 %v5154_v31, %v5137_v62  ;;  %v2847_v3 = vmul.f32 %v5154_v31, %v5154_v31  ;;  %v1517_v7 = vpop.f32.mrf.mxu0  ;;  %v5169_v11 = vmax.f32 %v1479_v33, 0.0 }
 0x2b3   :  { %6789 = vst [vmem:[#allocation22_spill] sm:$0xff] %v5167_v5  ;;  %v2863_v8 = vadd.f32 %v2862_v46, %v2845_v58  ;;  %v1516_v13 = vadd.f32 %v1515_v51, %v5081_v50  ;;  %v1569_v14 = vadd.f32 %v1568_v60, %v5081_v50  ;;  %v1570_v16 = vpop.f32.mrf.mxu1  ;;  %v2846_v19 = vmul.f32 %v5167_v5, %v5167_v5 }
 0x2b4   :  { %6790 = vst [vmem:[#allocation23_spill] sm:$0xff] %v5169_v11  ;;  %v2881_v18 = vadd.f32 %v2880_v54, %v2847_v3  ;;  %v1518_v21 = vadd.f32 %v1517_v7, %v5081_v50  ;;  %v1571_v25 = vadd.f32 %v1570_v16, %v5081_v50  ;;  %v1519_v28 = vpop.f32.mrf.mxu0  ;;  %v2848_v37 = vmul.f32 %v5169_v11, %v5169_v11 }
 0x2b5   :  { %v2864_v34 = vrot.slane %v2863_v8, 4  ;;  %v5179_v40 = vmax.f32 %v1516_v13, 0.0  ;;  %v5181_v41 = vmax.f32 %v1569_v14, 0.0  ;;  %v1572_v42 = vpop.f32.mrf.mxu1  ;;  %v2872_v43 = vadd.f32 %v2871_v38, %v2846_v19 }
 0x2b6   :  { %v2882_v35 = vrot.slane %v2881_v18, 4  ;;  %v5183_v30 = vmax.f32 %v1518_v21, 0.0  ;;  %v5185_v2 = vmax.f32 %v1571_v25, 0.0  ;;  %v1521_v44 = vpop.f32.mrf.mxu0  ;;  %v2890_v12 = vadd.f32 %v2889_v61, %v2848_v37 }
 0x2b7   :  { %6791 = vst [vmem:[#allocation24_spill] sm:$0xff] %v5179_v40  ;;  %6792 = vst [vmem:[#allocation25_spill] sm:$0xff] %v5181_v41  ;;  %v2865_v45 = vadd.f32 %v2864_v34, %v2863_v8  ;;  %v2801_v22 = vmul.f32 %v5179_v40, %v5179_v40  ;;  %v2803_v46 = vmul.f32 %v5181_v41, %v5181_v41  ;;  %v1574_v32 = vpop.f32.mrf.mxu1  ;;  %v2873_v48 = vrot.slane %v2872_v43, 4 }
 0x2b8   :  { %6793 = vst [vmem:[#allocation26_spill] sm:$0xff] %v5185_v2  ;;  %v2883_v47 = vadd.f32 %v2882_v35, %v2881_v18  ;;  %v2802_v29 = vmul.f32 %v5183_v30, %v5183_v30  ;;  %v5195_v4 = vmul.f32 %v5185_v2, %v5185_v2  ;;  %v1525_v39 = vpop.f32.mrf.mxu0  ;;  %v2891_v51 = vrot.slane %v2890_v12, 4 }
 0x2b9   :  { %v2866_v33 = vrot.slane %v2865_v45, 2  ;;  %v1520_v54 = vadd.f32 %v1519_v28, %v5088_v53  ;;  %v1573_v38 = vadd.f32 %v1572_v42, %v5088_v53  ;;  %v1578_v58 = vpop.f32.mrf.mxu1  ;;  %v2874_v61 = vadd.f32 %v2873_v48, %v2872_v43 }
 0x2ba   :  { %v2884_v60 = vrot.slane %v2883_v47, 2  ;;  %v1884_v3 = vpack.c.bf16 %v5167_v5, %v5139_v10  ;;  %v1886_v7 = vpack.c.bf16 %v5169_v11, %v5142_v1  ;;  %v1527_v8 = vpop.f32.mrf.mxu0  ;;  %v2892_v14 = vadd.f32 %v2891_v51, %v2890_v12 }
 0x2bb   :  { %v2867_v13 = vadd.f32 %v2866_v33, %v2865_v45  ;;  %v5203_v16 = vmax.f32 %v1520_v54, 0.0  ;;  %v5205_v18 = vmax.f32 %v1573_v38, 0.0  ;;  %v1580_v19 = vpop.f32.mrf.mxu1  ;;  %v2875_v25 = vrot.slane %v2874_v61, 2 }
 0x2bc   :  { %v2885_v21 = vadd.f32 %v2884_v60, %v2883_v47  ;;  %1951 = vmatprep.subr.bf16.mxu0 %v1884_v3  ;;  %2004 = vmatprep.subr.bf16.mxu1 %v1886_v7  ;;  %v1522_v28 = vadd.f32 %v1521_v44, %v5088_v53  ;;  %v1575_v34 = vadd.f32 %v1574_v32, %v5088_v53  ;;  %v1529_v37 = vpop.f32.mrf.mxu0  ;;  %v2893_v35 = vrot.slane %v2892_v14, 2 }
 0x2bd   :  { %6794 = vst [vmem:[#allocation27_spill] sm:$0xff] %v5203_v16  ;;  %6795 = vst [vmem:[#allocation28_spill] sm:$0xff] %v5205_v18  ;;  %v2868_v42 = vrot.slane %v2867_v13, 1  ;;  %v2817_v45 = vmul.f32 %v5203_v16, %v5203_v16  ;;  %1952 = vmatpush1.bf16.msra.mxu0 %v1883_v6  ;;  %2005 = vmatpush1.bf16.msra.mxu1 %v1885_v36  ;;  %v1582_v12 = vpop.f32.mrf.mxu1  ;;  %v2876_v48 = vadd.f32 %v2875_v25, %v2874_v61  ;;  %v5227_v25 = vld [vmem:[#allocation5] sm:$0xff]  }
 0x2be   :  { %v2886_v47 = vrot.slane %v2885_v21, 1  ;;  %v2819_v32 = vmul.f32 %v5205_v18, %v5205_v18  ;;  %1953 = vmatprep.subr.bf16.mxu0 %v1868_v52  ;;  %v1531_v33 = vpop.f32.mrf.mxu0  ;;  %v2894_v54 = vadd.f32 %v2893_v35, %v2892_v14  ;;  %v5223_v60 = vmax.f32 %v1522_v28, 0.0 }
 0x2bf   :  { %v2869_v51 = vadd.f32 %v2868_v42, %v2867_v13  ;;  %v2897_v38 = vadd.f32 %v2817_v45, %v2801_v22  ;;  %v1584_v6 = vpop.f32.mrf.mxu1  ;;  %v2877_v3 = vrot.slane %v2876_v48, 1  ;;  %v5225_v7 = vmax.f32 %v1575_v34, 0.0 }
 0x2c0   :  { %6796 = vst [vmem:[#allocation29_spill] sm:$0xff] %v5223_v60  ;;  %v2887_v36 = vadd.f32 %v2886_v47, %v2885_v21  ;;  %v2915_v61 = vadd.f32 %v2819_v32, %v2803_v46  ;;  %v2895_v43 = vrot.slane %v2894_v54, 1  ;;  %v2818_v0 = vmul.f32 %v5223_v60, %v5223_v60 }
 0x2c1   :  { %6797 = vst [vmem:[#allocation30_spill] sm:$0xff] %v5225_v7  ;;  %v3005_v44 = vmax.f32 %v2869_v51, 1e-24  ;;  %v1870_v52 = vpack.c.bf16 %v5124_v23, %v5096_v59  ;;  %1954 = vmatpush1.bf16.msra.mxu0 %v1867_v15  ;;  %v1621_v22 = vpop.f32.mrf.mxu0  ;;  %v1674_v13 = vpop.f32.mrf.mxu1  ;;  %v2878_v46 = vadd.f32 %v2877_v3, %v2876_v48  ;;  %v2820_v21 = vmul.f32 %v5225_v7, %v5225_v7 }
 0x2c2   :  { %v3007_v14 = vmax.f32 %v2887_v36, 1e-24  ;;  %v1526_v28 = vadd.f32 %v1525_v39, %v5077_v49  ;;  %v2896_v34 = vadd.f32 %v2895_v43, %v2894_v54  ;;  %v2906_v42 = vadd.f32 %v2818_v0, %v2802_v29 }
 0x2c3   :  { %4398 = vrsqrt.f32 %v3005_v44  ;;  %2006 = vmatprep.subr.bf16.mxu1 %v1870_v52  ;;  %v1579_v35 = vadd.f32 %v1578_v58, %v5077_v49  ;;  %v1623_v45 = vpop.f32.mrf.mxu0  ;;  %v1676_v47 = vpop.f32.mrf.mxu1  ;;  %v3006_v32 = vmax.f32 %v2878_v46, 1e-24  ;;  %v2924_v15 = vadd.f32 %v2820_v21, %v5195_v4 }
 0x2c4   :  { %4400 = vrsqrt.f32 %v3007_v14  ;;  %v5241_v51 = vmax.f32 %v1526_v28, 0.0  ;;  %2007 = vmatpush1.bf16.msra.mxu1 %v1869_v20  ;;  %4321 = vmatmul.mubr.msk.bf16.vlgmr.msra.gmra.mxu0 %vm804_vm2, %v5227_v25  ;;  %v3008_v39 = vmax.f32 %v2896_v34, 1e-24  ;;  %v1528_v29 = vadd.f32 %v1527_v8, %v5077_v49 }
 0x2c5   :  { %v5248_v0 = vmax.f32 %v1579_v35, 0.0  ;;  %v1581_v58 = vadd.f32 %v1580_v19, %v5077_v49  ;;  %v5252_v43 = vpop.f32.mrf.mxu0  ;;  %v5254_v48 = vpop.f32.mrf.mxu1  ;;  %v6800_v4 = vmov 0   ;;  %4402 = vrsqrt.f32 %v3006_v32 }
 0x2c6   :  { %6798 = vst [vmem:[#allocation31_spill] sm:$0xff] %v5241_v51  ;;  %1981 = vmatprep.mubr.bf16.mxu0 %v6800_v4  ;;  %v2833_v20 = vmul.f32 %v5241_v51, %v5241_v51  ;;  %v1530_v44 = vadd.f32 %v1529_v37, %v5079_v27  ;;  %v1583_v54 = vadd.f32 %v1582_v12, %v5079_v27  ;;  %4404 = vrsqrt.f32 %v3008_v39  ;;  %v5275_v12 = vld [vmem:[#allocation5 + $0x8] sm:$0xff]  }
 0x2c7   :  { %6799 = vst [vmem:[#allocation32_spill] sm:$0xff] %v5248_v0  ;;  %v2835_v8 = vmul.f32 %v5248_v0, %v5248_v0  ;;  %v5263_v36 = vmax.f32 %v1528_v29, 0.0  ;;  %v5265_v19 = vmax.f32 %v1581_v58, 0.0  ;;  %4323 = vmatmul.mubr.msk.bf16.vlgmr.msra.gmra.mxu1 %vm804_vm2, %v5227_v25  ;;  %v1532_v37 = vadd.f32 %v1531_v33, %v5079_v27  ;;  %v5277_v46 = vpop.f32.mrf.mxu0  ;;  %v5279_v21 = vpop.f32.mrf.mxu1 }
 0x2c8   :  { %v2898_v3 = vadd.f32 %v2897_v38, %v2833_v20  ;;  %v5269_v52 = vmax.f32 %v1530_v44, 0.0  ;;  %v5271_v14 = vmax.f32 %v1583_v54, 0.0  ;;  %2034 = vmatprep.mubr.bf16.mxu1 %v6800_v4  ;;  %v1585_v35 = vadd.f32 %v1584_v6, %v5079_v27 }
 0x2c9   :  { %6801 = vst [vmem:[#allocation33_spill] sm:$0xff] %v5263_v36  ;;  %6802 = vst [vmem:[#allocation34_spill] sm:$0xff] %v5265_v19  ;;  %v2916_v28 = vadd.f32 %v2915_v61, %v2835_v8  ;;  %v2834_v34 = vmul.f32 %v5263_v36, %v5263_v36  ;;  %v2836_v38 = vmul.f32 %v5265_v19, %v5265_v19  ;;  %v5294_v20 = vmax.f32 %v1532_v37, 0.0  ;;  %v5302_v62 = vpop.f32.mrf.mxu0  ;;  %v5304_v39 = vpop.f32.mrf.mxu1 }
 0x2ca   :  { %v2849_v32 = vmul.f32 %v5269_v52, %v5269_v52  ;;  %v2851_v61 = vmul.f32 %v5271_v14, %v5271_v14  ;;  %v5296_v44 = vmax.f32 %v1585_v35, 0.0  ;;  %v1622_v8 = vadd.f32 %v1621_v22, %v5081_v50 }
 0x2cb   :  { %v2907_v29 = vadd.f32 %v2906_v42, %v2834_v34  ;;  %v2925_v58 = vadd.f32 %v2924_v15, %v2836_v38  ;;  %6803 = vst [vmem:[#allocation35_spill] sm:$0xff] %v5294_v20  ;;  %v1675_v33 = vadd.f32 %v1674_v13, %v5081_v50  ;;  %v2850_v42 = vmul.f32 %v5294_v20, %v5294_v20 }
 0x2cc   :  { %6804 = vst [vmem:[#allocation36_spill] sm:$0xff] %v5296_v44  ;;  %v2899_v54 = vadd.f32 %v2898_v3, %v2849_v32  ;;  %v2917_v6 = vadd.f32 %v2916_v28, %v2851_v61  ;;  %4322 = vmatmul.mubr.msk.bf16.gmra.mxu0 %vm804_vm2, %v5275_v12  ;;  %v2852_v15 = vmul.f32 %v5296_v44, %v5296_v44  ;;  %v5313_v28 = vmax.f32 %v1622_v8, 0.0  ;;  %v5329_v8 = vpop.f32.mrf.mxu0 }
 0x2cd   :  { %v1624_v3 = vadd.f32 %v1623_v45, %v5081_v50  ;;  %v1677_v37 = vadd.f32 %v1676_v47, %v5081_v50  ;;  %2077 = vmatprep.mubr.bf16.mxu0 %v6800_v4  ;;  %v5315_v34 = vmax.f32 %v1675_v33, 0.0  ;;  %v2908_v38 = vadd.f32 %v2907_v29, %v2850_v42  ;;  %v5331_v29 = vpop.f32.mrf.mxu1 }
 0x2ce   :  { %v2900_v22 = vrot.slane %v2899_v54, 4  ;;  %v2918_v13 = vrot.slane %v2917_v6, 4  ;;  %v2926_v35 = vadd.f32 %v2925_v58, %v2852_v15  ;;  %v2805_v11 = vmul.f32 %v5313_v28, %v5313_v28 }
 0x2cf   :  { %v5317_v32 = vmax.f32 %v1624_v3, 0.0  ;;  %v5319_v61 = vmax.f32 %v1677_v37, 0.0  ;;  %4324 = vmatmul.mubr.msk.bf16.gmra.mxu1 %vm804_vm2, %v5275_v12  ;;  %v2807_v33 = vmul.f32 %v5315_v34, %v5315_v34  ;;  %v1626_v10 = vadd.f32 %v5252_v43, %v5088_v53 }
 0x2d0   :  { %v5323_v45 = vpop.eup %4398  ;;  %v2901_v47 = vadd.f32 %v2900_v22, %v2899_v54  ;;  %v2919_v24 = vadd.f32 %v2918_v13, %v2917_v6  ;;  %2130 = vmatprep.mubr.bf16.mxu1 %v6800_v4  ;;  %v2909_v54 = vrot.slane %v2908_v38, 4  ;;  %v2927_v6 = vrot.slane %v2926_v35, 4 }
 0x2d1   :  { %6805 = vst [vmem:[#allocation37_spill] sm:$0xff] %v5323_v45  ;;  %v5334_v58 = vpop.eup %4400  ;;  %v5338_v42 = vmul.f32 %v5323_v45, %v5149_v57  ;;  %v2806_v15 = vmul.f32 %v5317_v32, %v5317_v32  ;;  %v2808_v13 = vmul.f32 %v5319_v61, %v5319_v61  ;;  %v1679_v9 = vadd.f32 %v5254_v48, %v5088_v53 }
 0x2d2   :  { %6806 = vst [vmem:[#allocation38_spill] sm:$0xff] %v5334_v58  ;;  %v5344_v3 = vmul.f32 %v5334_v58, %v5154_v31  ;;  %v2902_v37 = vrot.slane %v2901_v47, 2  ;;  %v2920_v22 = vrot.slane %v2919_v24, 2  ;;  %v5348_v1 = vpop.eup %4402  ;;  %v2910_v57 = vadd.f32 %v2909_v54, %v2908_v38  ;;  %v1635_v38 = vpop.f32.mrf.mxu0 }
 0x2d3   :  { %6807 = vst [vmem:[#allocation39_spill] sm:$0xff] %v5338_v42  ;;  %3149 = vst [vmem:[#allocation8 + $0x180] sm:$0xff] %v5338_v42  ;;  %v2928_v5 = vadd.f32 %v2927_v6, %v2926_v35  ;;  %v5355_v55 = vpop.eup %4404  ;;  %v1888_v63 = vpack.c.bf16 %v5294_v20, %v5263_v36  ;;  %v1890_v42 = vpack.c.bf16 %v5296_v44, %v5265_v19  ;;  %v1688_v35 = vpop.f32.mrf.mxu1  ;;  %v5362_v43 = vmax.f32 %v1626_v10, 0.0 }
 0x2d4   :  { %6808 = vst [vmem:[#allocation40_spill] sm:$0xff] %v5344_v3  ;;  %3151 = vst [vmem:[#allocation8 + $0x190] sm:$0xff] %v5344_v3  ;;  %v2903_v31 = vadd.f32 %v2902_v37, %v2901_v47  ;;  %v2921_v58 = vadd.f32 %v2920_v22, %v2919_v24  ;;  %v2911_v54 = vrot.slane %v2910_v57, 2  ;;  %v5364_v45 = vmax.f32 %v1679_v9, 0.0 }
 0x2d5   :  { %v2929_v6 = vrot.slane %v2928_v5, 2  ;;  %2057 = vmatprep.subr.bf16.mxu0 %v1888_v63  ;;  %2110 = vmatprep.subr.bf16.mxu1 %v1890_v42  ;;  %v1628_v24 = vadd.f32 %v5277_v46, %v5088_v53  ;;  %v1681_v47 = vadd.f32 %v5279_v21, %v5088_v53  ;;  %v2821_v10 = vmul.f32 %v5362_v43, %v5362_v43 }
 0x2d6   :  { %v2904_v48 = vrot.slane %v2903_v31, 1  ;;  %v2922_v26 = vrot.slane %v2921_v58, 1  ;;  %v2912_v37 = vadd.f32 %v2911_v54, %v2910_v57  ;;  %v6809_v9 = vpack.c.bf16 %v5269_v52, %v5241_v51  ;;  %v1637_v57 = vpop.f32.mrf.mxu0  ;;  %v1690_v54 = vpop.f32.mrf.mxu1 }
 0x2d7   :  { %v2930_v22 = vadd.f32 %v2929_v6, %v2928_v5  ;;  %v2823_v21 = vmul.f32 %v5364_v45, %v5364_v45  ;;  %v6810_v5 = vpack.c.bf16 %v5271_v14, %v5248_v0  ;;  %v2933_v19 = vadd.f32 %v2821_v10, %v2805_v11 }
 0x2d8   :  { %2058 = vmatpush1.bf16.msra.mxu0 %v6809_v9  ;;  %v2905_v63 = vadd.f32 %v2904_v48, %v2903_v31  ;;  %v2923_v42 = vadd.f32 %v2922_v26, %v2921_v58  ;;  %v2913_v6 = vrot.slane %v2912_v37, 1  ;;  %v5384_v20 = vmax.f32 %v1628_v24, 0.0  ;;  %v1727_v24 = vpop.f32.mrf.mxu0 }
 0x2d9   :  { %2111 = vmatpush1.bf16.msra.mxu1 %v6810_v5  ;;  %v2931_v44 = vrot.slane %v2930_v22, 1  ;;  %v2951_v26 = vadd.f32 %v2823_v21, %v2807_v33  ;;  %v5386_v58 = vmax.f32 %v1681_v47, 0.0  ;;  %v1872_v5 = vpack.c.bf16 %v5223_v60, %v5183_v30  ;;  %v1780_v47 = vpop.f32.mrf.mxu1 }
 0x2da   :  { %v3009_v9 = vmax.f32 %v2905_v63, 1e-24  ;;  %v3011_v31 = vmax.f32 %v2923_v42, 1e-24  ;;  %v2914_v48 = vadd.f32 %v2913_v6, %v2912_v37  ;;  %v2822_v51 = vmul.f32 %v5384_v20, %v5384_v20  ;;  %v1729_v6 = vpop.f32.mrf.mxu0 }
 0x2db   :  { %v2932_v46 = vadd.f32 %v2931_v44, %v2930_v22  ;;  %v2824_v0 = vmul.f32 %v5386_v58, %v5386_v58  ;;  %v1874_v11 = vpack.c.bf16 %v5225_v7, %v5185_v2  ;;  %v1632_v33 = vadd.f32 %v5302_v62, %v5077_v49  ;;  %2059 = vmatprep.subr.bf16.mxu0 %v1872_v5 }
 0x2dc   :  { %4406 = vrsqrt.f32 %v3009_v9  ;;  %v3010_v44 = vmax.f32 %v2914_v48, 1e-24  ;;  %v2942_v22 = vadd.f32 %v2822_v51, %v2806_v15  ;;  %v1685_v42 = vadd.f32 %v5304_v39, %v5077_v49  ;;  %v1782_v9 = vpop.f32.mrf.mxu1 }
 0x2dd   :  { %4408 = vrsqrt.f32 %v3011_v31  ;;  %v3012_v37 = vmax.f32 %v2932_v46, 1e-24  ;;  %v2960_v10 = vadd.f32 %v2824_v0, %v2808_v13  ;;  %2112 = vmatprep.subr.bf16.mxu1 %v1874_v11  ;;  %v5398_v63 = vmax.f32 %v1632_v33, 0.0 }
 0x2de   :  { %v1634_v21 = vadd.f32 %v5329_v8, %v5077_v49  ;;  %v6812_v62 = vpack.c.bf16 %v5203_v16, %v5179_v40  ;;  %4410 = vrsqrt.f32 %v3010_v44  ;;  %v1687_v46 = vadd.f32 %v5331_v29, %v5077_v49 }
 0x2df   :  { %6811 = vst [vmem:[#allocation41_spill] sm:$0xff] %v5398_v63  ;;  %v6813_v51 = vpack.c.bf16 %v5205_v18, %v5181_v41  ;;  %v1636_v0 = vadd.f32 %v1635_v38, %v5079_v27  ;;  %v1689_v15 = vadd.f32 %v1688_v35, %v5079_v27  ;;  %4412 = vrsqrt.f32 %v3012_v37 }
 0x2e0   :  { %2060 = vmatpush1.bf16.msra.mxu0 %v6812_v62  ;;  %v2837_v39 = vmul.f32 %v5398_v63, %v5398_v63  ;;  %v5416_v8 = vmax.f32 %v1685_v42, 0.0  ;;  %v5418_v13 = vmax.f32 %v1634_v21, 0.0  ;;  %v5420_v31 = vmax.f32 %v1687_v46, 0.0  ;;  %v1731_v46 = vpop.f32.mrf.mxu0 }
 0x2e1   :  { %2113 = vmatpush1.bf16.msra.mxu1 %v6813_v51  ;;  %v5422_v29 = vmax.f32 %v1636_v0, 0.0  ;;  %v5424_v48 = vmax.f32 %v1689_v15, 0.0  ;;  %v1638_v38 = vadd.f32 %v1637_v57, %v5079_v27  ;;  %v1691_v33 = vadd.f32 %v1690_v54, %v5079_v27  ;;  %v1784_v51 = vpop.f32.mrf.mxu1 }
 0x2e2   :  { %6814 = vst [vmem:[#allocation42_spill] sm:$0xff] %v5416_v8  ;;  %6815 = vst [vmem:[#allocation43_spill] sm:$0xff] %v5418_v13  ;;  %v2934_v35 = vadd.f32 %v2933_v19, %v2837_v39  ;;  %v2839_v5 = vmul.f32 %v5416_v8, %v5416_v8  ;;  %v2838_v11 = vmul.f32 %v5418_v13, %v5418_v13 }
 0x2e3   :  { %6816 = vst [vmem:[#allocation44_spill] sm:$0xff] %v5420_v31  ;;  %4325 = vmatmul.mubr.msk.bf16.vlgmr.msra.gmra.mxu0 %vm804_vm2, %v5227_v25  ;;  %v2840_v44 = vmul.f32 %v5420_v31, %v5420_v31  ;;  %v2853_v19 = vmul.f32 %v5422_v29, %v5422_v29  ;;  %v2855_v62 = vmul.f32 %v5424_v48, %v5424_v48  ;;  %v5447_v54 = vmax.f32 %v1638_v38, 0.0 }
 0x2e4   :  { %4327 = vmatmul.mubr.msk.bf16.vlgmr.msra.gmra.mxu1 %vm804_vm2, %v5227_v25  ;;  %2087 = vmatprep.mubr.bf16.mxu0 %v6800_v4  ;;  %v2952_v42 = vadd.f32 %v2951_v26, %v2839_v5  ;;  %v2943_v21 = vadd.f32 %v2942_v22, %v2838_v11  ;;  %v5450_v39 = vmax.f32 %v1691_v33, 0.0  ;;  %v1728_v37 = vadd.f32 %v1727_v24, %v5081_v50 }
 0x2e5   :  { %2140 = vmatprep.mubr.bf16.mxu1 %v6800_v4  ;;  %v2961_v0 = vadd.f32 %v2960_v10, %v2840_v44  ;;  %v2935_v15 = vadd.f32 %v2934_v35, %v2853_v19  ;;  %v2854_v26 = vmul.f32 %v5447_v54, %v5447_v54  ;;  %v1781_v22 = vadd.f32 %v1780_v47, %v5081_v50  ;;  %v1733_v19 = vpop.f32.mrf.mxu0 }
 0x2e6   :  { %v2953_v57 = vadd.f32 %v2952_v42, %v2855_v62  ;;  %v1730_v5 = vadd.f32 %v1729_v6, %v5081_v50  ;;  %v2856_v11 = vmul.f32 %v5450_v39, %v5450_v39  ;;  %v5459_v36 = vmax.f32 %v1728_v37, 0.0  ;;  %v1786_v42 = vpop.f32.mrf.mxu1 }
 0x2e7   :  { %v2936_v38 = vrot.slane %v2935_v15, 4  ;;  %v1783_v10 = vadd.f32 %v1782_v9, %v5081_v50  ;;  %v2944_v33 = vadd.f32 %v2943_v21, %v2854_v26  ;;  %v5462_v44 = vmax.f32 %v1781_v22, 0.0 }
 0x2e8   :  { %v2954_v35 = vrot.slane %v2953_v57, 4  ;;  %v5464_v24 = vmax.f32 %v1730_v5, 0.0  ;;  %v2962_v6 = vadd.f32 %v2961_v0, %v2856_v11  ;;  %v2809_v18 = vmul.f32 %v5459_v36, %v5459_v36 }
 0x2e9   :  { %v5466_v62 = vpop.eup %4406  ;;  %v2937_v47 = vadd.f32 %v2936_v38, %v2935_v15  ;;  %v5470_v41 = vmax.f32 %v1783_v10, 0.0  ;;  %v2945_v21 = vrot.slane %v2944_v33, 4  ;;  %v2811_v15 = vmul.f32 %v5462_v44, %v5462_v44  ;;  %v1737_v10 = vpop.f32.mrf.mxu0 }
 0x2ea   :  { %6817 = vst [vmem:[#allocation45_spill] sm:$0xff] %v5466_v62  ;;  %v5474_v50 = vpop.eup %4408  ;;  %v5478_v9 = vmul.f32 %v5466_v62, %v5269_v52  ;;  %v2955_v37 = vadd.f32 %v2954_v35, %v2953_v57  ;;  %v2963_v22 = vrot.slane %v2962_v6, 4  ;;  %v2810_v52 = vmul.f32 %v5464_v24, %v5464_v24  ;;  %v1790_v35 = vpop.f32.mrf.mxu1 }
 0x2eb   :  { %4326 = vmatmul.mubr.msk.bf16.gmra.mxu0 %vm804_vm2, %v5275_v12  ;;  %6818 = vst [vmem:[#allocation46_spill] sm:$0xff] %v5474_v50  ;;  %v5487_v0 = vmul.f32 %v5474_v50, %v5271_v14  ;;  %v2938_v26 = vrot.slane %v2937_v47, 2  ;;  %v5492_v57 = vpop.eup %4410  ;;  %v2946_v38 = vadd.f32 %v2945_v21, %v2944_v33  ;;  %v5497_v11 = vmul.f32 %v5470_v41, %v5470_v41 }
 0x2ec   :  { %6819 = vst [vmem:[#allocation47_spill] sm:$0xff] %v5478_v9  ;;  %4328 = vmatmul.mubr.msk.bf16.gmra.mxu1 %vm804_vm2, %v5275_v12  ;;  %2183 = vmatprep.mubr.bf16.mxu0 %v6800_v4  ;;  %3153 = vst [vmem:[#allocation8 + $0x1a0] sm:$0xff] %v5478_v9  ;;  %v2956_v5 = vrot.slane %v2955_v37, 2  ;;  %v1732_v14 = vadd.f32 %v1731_v46, %v5088_v53  ;;  %v5500_v50 = vpop.eup %4412  ;;  %v2964_v62 = vadd.f32 %v2963_v22, %v2962_v6 }
 0x2ed   :  { %6820 = vst [vmem:[#allocation48_spill] sm:$0xff] %v5487_v0  ;;  %2236 = vmatprep.mubr.bf16.mxu1 %v6800_v4  ;;  %3155 = vst [vmem:[#allocation8 + $0x1b0] sm:$0xff] %v5487_v0  ;;  %v2939_v16 = vadd.f32 %v2938_v26, %v2937_v47  ;;  %v1785_v40 = vadd.f32 %v1784_v51, %v5088_v53  ;;  %v1892_v9 = vpack.c.bf16 %v5447_v54, %v5418_v13 }
 0x2ee   :  { %v2957_v33 = vadd.f32 %v2956_v5, %v2955_v37  ;;  %v2947_v21 = vrot.slane %v2946_v38, 2  ;;  %v5506_v7 = vmax.f32 %v1732_v14, 0.0  ;;  %v1894_v46 = vpack.c.bf16 %v5450_v39, %v5420_v31  ;;  %v1739_v5 = vpop.f32.mrf.mxu0  ;;  %v1792_v14 = vpop.f32.mrf.mxu1 }
 0x2ef   :  { %v2940_v2 = vrot.slane %v2939_v16, 1  ;;  %v2965_v60 = vrot.slane %v2964_v62, 2  ;;  %v5510_v3 = vmax.f32 %v1785_v40, 0.0  ;;  %2163 = vmatprep.subr.bf16.mxu0 %v1892_v9  ;;  %v1734_v47 = vadd.f32 %v1733_v19, %v5088_v53 }
 0x2f0   :  { %v2958_v6 = vrot.slane %v2957_v33, 1  ;;  %v2948_v26 = vadd.f32 %v2947_v21, %v2946_v38  ;;  %v2825_v37 = vmul.f32 %v5506_v7, %v5506_v7  ;;  %2216 = vmatprep.subr.bf16.mxu1 %v1894_v46  ;;  %v6821_v22 = vpack.c.bf16 %v5422_v29, %v5398_v63 }
 0x2f1   :  { %v2941_v40 = vadd.f32 %v2940_v2, %v2939_v16  ;;  %v2966_v31 = vadd.f32 %v2965_v60, %v2964_v62  ;;  %v2827_v9 = vmul.f32 %v5510_v3, %v5510_v3  ;;  %v6822_v38 = vpack.c.bf16 %v5424_v48, %v5416_v8  ;;  %v1741_v8 = vpop.f32.mrf.mxu0 }
 0x2f2   :  { %2164 = vmatpush1.bf16.msra.mxu0 %v6821_v22  ;;  %v2959_v21 = vadd.f32 %v2958_v6, %v2957_v33  ;;  %v2949_v46 = vrot.slane %v2948_v26, 1  ;;  %v2969_v51 = vadd.f32 %v2825_v37, %v2809_v18  ;;  %v5527_v13 = vmax.f32 %v1734_v47, 0.0 }
 0x2f3   :  { %2217 = vmatpush1.bf16.msra.mxu1 %v6822_v38  ;;  %v3013_v22 = vmax.f32 %v2941_v40, 1e-24  ;;  %v2967_v63 = vrot.slane %v2966_v31, 1  ;;  %v2987_v0 = vadd.f32 %v2827_v9, %v2811_v15  ;;  %v1787_v2 = vadd.f32 %v1786_v42, %v5088_v53  ;;  %v1794_v38 = vpop.f32.mrf.mxu1  ;;  %v1743_v9 = vpop.f32.mrf.mxu0 }
 0x2f4   :  { %v3015_v16 = vmax.f32 %v2959_v21, 1e-24  ;;  %v2950_v60 = vadd.f32 %v2949_v46, %v2948_v26  ;;  %v2826_v62 = vmul.f32 %v5527_v13, %v5527_v13  ;;  %v1876_v19 = vpack.c.bf16 %v5384_v20, %v5317_v32 }
 0x2f5   :  { %4414 = vrsqrt.f32 %v3013_v22  ;;  %v2968_v33 = vadd.f32 %v2967_v63, %v2966_v31  ;;  %v5534_v18 = vmax.f32 %v1787_v2, 0.0  ;;  %v1878_v47 = vpack.c.bf16 %v5386_v58, %v5319_v61  ;;  %v1796_v21 = vpop.f32.mrf.mxu1 }
 0x2f6   :  { %4416 = vrsqrt.f32 %v3015_v16  ;;  %v3014_v15 = vmax.f32 %v2950_v60, 1e-24  ;;  %v2978_v53 = vadd.f32 %v2826_v62, %v2810_v52  ;;  %2165 = vmatprep.subr.bf16.mxu0 %v1876_v19  ;;  %v1738_v42 = vadd.f32 %v1737_v10, %v5077_v49 }
 0x2f7   :  { %v3016_v6 = vmax.f32 %v2968_v33, 1e-24  ;;  %v2828_v26 = vmul.f32 %v5534_v18, %v5534_v18  ;;  %2218 = vmatprep.subr.bf16.mxu1 %v1878_v47  ;;  %v1791_v37 = vadd.f32 %v1790_v35, %v5077_v49  ;;  %v1740_v63 = vadd.f32 %v1739_v5, %v5077_v49 }
 0x2f8   :  { %v6823_v31 = vpack.c.bf16 %v5362_v43, %v5313_v28  ;;  %4418 = vrsqrt.f32 %v3014_v15  ;;  %v5546_v40 = vmax.f32 %v1738_v42, 0.0  ;;  %v1793_v52 = vadd.f32 %v1792_v14, %v5077_v49 }
 0x2f9   :  { %v6824_v10 = vpack.c.bf16 %v5364_v45, %v5315_v34  ;;  %v1742_v19 = vadd.f32 %v1741_v8, %v5079_v27  ;;  %4420 = vrsqrt.f32 %v3016_v6  ;;  %v2996_v35 = vadd.f32 %v2828_v26, %v5497_v11 }
 0x2fa   :  { %2166 = vmatpush1.bf16.msra.mxu0 %v6823_v31  ;;  %v5554_v5 = vmax.f32 %v1791_v37, 0.0  ;;  %v5556_v46 = vmax.f32 %v1740_v63, 0.0  ;;  %v2841_v22 = vmul.f32 %v5546_v40, %v5546_v40  ;;  %v5560_v2 = vmax.f32 %v1793_v52, 0.0 }
 0x2fb   :  { %2219 = vmatpush1.bf16.msra.mxu1 %v6824_v10  ;;  %v5562_v49 = vmax.f32 %v1742_v19, 0.0  ;;  %v1795_v14 = vadd.f32 %v1794_v38, %v5079_v27  ;;  %v1744_v16 = vadd.f32 %v1743_v9, %v5079_v27  ;;  %v1797_v60 = vadd.f32 %v1796_v21, %v5079_v27 }
 0x2fc   :  { %v2843_v8 = vmul.f32 %v5554_v5, %v5554_v5  ;;  %v2842_v11 = vmul.f32 %v5556_v46, %v5556_v46  ;;  %v2970_v62 = vadd.f32 %v2969_v51, %v2841_v22  ;;  %v2844_v38 = vmul.f32 %v5560_v2, %v5560_v2 }
 0x2fd   :  { %4329 = vmatmul.mubr.msk.bf16.vlgmr.msra.gmra.mxu0 %vm804_vm2, %v5227_v25  ;;  %v1895_v33 = vpack.c.bf16 %v5562_v49, %v5546_v40  ;;  %v2857_v47 = vmul.f32 %v5562_v49, %v5562_v49  ;;  %v5582_v6 = vmax.f32 %v1795_v14, 0.0  ;;  %v5584_v26 = vmax.f32 %v1744_v16, 0.0 }
 0x2fe   :  { %4331 = vmatmul.mubr.msk.bf16.vlgmr.msra.gmra.mxu1 %vm804_vm2, %v5227_v25  ;;  %2193 = vmatprep.mubr.bf16.mxu0 %v6800_v4  ;;  %v2988_v15 = vadd.f32 %v2987_v0, %v2843_v8  ;;  %v2979_v42 = vadd.f32 %v2978_v53, %v2842_v11  ;;  %v2997_v27 = vadd.f32 %v2996_v35, %v2844_v38  ;;  %v5587_v37 = vmax.f32 %v1797_v60, 0.0 }
 0x2ff   :  { %2246 = vmatprep.mubr.bf16.mxu1 %v6800_v4  ;;  %v2971_v51 = vadd.f32 %v2970_v62, %v2857_v47  ;;  %v1880_v63 = vpack.c.bf16 %v5527_v13, %v5464_v24  ;;  %v1897_v31 = vpack.c.bf16 %v5582_v6, %v5554_v5  ;;  %v2859_v0 = vmul.f32 %v5582_v6, %v5582_v6 }
 0x300   :  { %v2858_v53 = vmul.f32 %v5584_v26, %v5584_v26  ;;  %v1896_v52 = vpack.c.bf16 %v5584_v26, %v5556_v46  ;;  %v2860_v19 = vmul.f32 %v5587_v37, %v5587_v37  ;;  %v1898_v9 = vpack.c.bf16 %v5587_v37, %v5560_v2 }
 0x301   :  { %v2972_v10 = vrot.slane %v2971_v51, 4  ;;  %v1882_v21 = vpack.c.bf16 %v5534_v18, %v5470_v41  ;;  %v2989_v35 = vadd.f32 %v2988_v15, %v2859_v0  ;;  %v5607_v14 = vmul.f32 %v5348_v1, %v5092_v56 }
 0x302   :  { %v2980_v22 = vadd.f32 %v2979_v42, %v2858_v53  ;;  %2269 = vmatprep.subr.bf16.mxu0 %v1896_v52  ;;  %v5611_v8 = vmul.f32 %v5348_v1, %v5118_v17  ;;  %v5613_v11 = vpop.eup %4414  ;;  %v2998_v60 = vadd.f32 %v2997_v27, %v2860_v19  ;;  %2322 = vmatprep.subr.bf16.mxu1 %v1898_v9  ;;  %v6830_v53 = vld [vmem:[#allocation37_spill] sm:$0xff] }
 0x303   :  { %v2973_v16 = vadd.f32 %v2972_v10, %v2971_v51  ;;  %v5619_v62 = vmul.f32 %v5355_v55, %v5096_v59  ;;  %v5621_v38 = vpop.eup %4416  ;;  %v5625_v56 = vmul.f32 %v5613_v11, %v5422_v29  ;;  %v2990_v17 = vrot.slane %v2989_v35, 4  ;;  %2270 = vmatpush1.bf16.msra.mxu0 %v1895_v33  ;;  %3102 = vst [vmem:[#allocation8 + $0x8] sm:$0xff] %v5607_v14 }
 0x304   :  { %v2981_v47 = vrot.slane %v2980_v22, 4  ;;  %3118 = vst [vmem:[#allocation8 + $0x88] sm:$0xff] %v5611_v8  ;;  %v5635_v15 = vmul.f32 %v5621_v38, %v5424_v48  ;;  %v2999_v29 = vrot.slane %v2998_v60, 4  ;;  %2323 = vmatpush1.bf16.msra.mxu1 %v1897_v31  ;;  %2271 = vmatprep.subr.bf16.mxu0 %v1880_v63  ;;  %v5639_v27 = vmul.f32 %v5355_v55, %v5124_v23  ;;  %v6829_v48 = vld [vmem:[#allocation14_spill] sm:$0xff] }
 0x305   :  { %4330 = vmatmul.mubr.msk.bf16.gmra.mxu0 %vm804_vm2, %v5275_v12  ;;  %6825 = vst [vmem:[#allocation49_spill] sm:$0xff] %v5619_v62  ;;  %6826 = vst [vmem:[#allocation50_spill] sm:$0xff] %v5625_v56  ;;  %v2974_v42 = vrot.slane %v2973_v16, 2  ;;  %v5642_v33 = vpop.eup %4418  ;;  %v2991_v51 = vadd.f32 %v2990_v17, %v2989_v35  ;;  %2324 = vmatprep.subr.bf16.mxu1 %v1882_v21  ;;  %v5648_v52 = vmul.f32 %v6830_v53, %v6829_v48  ;;  %v6839_v48 = vld [vmem:[#allocation17_spill] sm:$0xff] }
 0x306   :  { %4332 = vmatmul.mubr.msk.bf16.gmra.mxu1 %vm804_vm2, %v5275_v12  ;;  %6827 = vst [vmem:[#allocation51_spill] sm:$0xff] %v5635_v15  ;;  %6828 = vst [vmem:[#allocation52_spill] sm:$0xff] %v5639_v27  ;;  %v2982_v0 = vadd.f32 %v2981_v47, %v2980_v22  ;;  %2289 = vmatprep.mubr.bf16.mxu0 %v6800_v4  ;;  %v5650_v63 = vpop.eup %4420  ;;  %v5655_v23 = vmul.f32 %v5642_v33, %v5447_v54  ;;  %v6834_v54 = vld [vmem:[#allocation16_spill] sm:$0xff]  ;;  %v6836_v47 = vld [vmem:[#allocation15_spill] sm:$0xff] }
 0x307   :  { %3104 = vst [vmem:[#allocation8 + $0x18] sm:$0xff] %v5619_v62  ;;  %3157 = vst [vmem:[#allocation8 + $0x1c0] sm:$0xff] %v5625_v56  ;;  %v2975_v31 = vadd.f32 %v2974_v42, %v2973_v16  ;;  %v3000_v10 = vadd.f32 %v2999_v29, %v2998_v60  ;;  %2342 = vmatprep.mubr.bf16.mxu1 %v6800_v4  ;;  %v5663_v9 = vmul.f32 %v5650_v63, %v5450_v39  ;;  %v6837_v42 = vld [vmem:[#allocation38_spill] sm:$0xff]  ;;  %v6840_v62 = vld [vmem:[#allocation20_spill] sm:$0xff] }
 0x308   :  { %3159 = vst [vmem:[#allocation8 + $0x1d0] sm:$0xff] %v5635_v15  ;;  %6831 = vst [vmem:[#allocation14_spill] sm:$0xff] %v5655_v23  ;;  %v2992_v21 = vrot.slane %v2991_v51, 2  ;;  %v2983_v35 = vrot.slane %v2982_v0, 2  ;;  %v6833_v22 = vpack.c.bf16 %v5506_v7, %v5459_v36  ;;  %v5670_v16 = vmul.f32 %v6830_v53, %v6834_v54 }
 0x309   :  { %3120 = vst [vmem:[#allocation8 + $0x98] sm:$0xff] %v5639_v27  ;;  %6832 = vst [vmem:[#allocation37_spill] sm:$0xff] %v5663_v9  ;;  %v2976_v60 = vrot.slane %v2975_v31, 1  ;;  %v3001_v17 = vrot.slane %v3000_v10, 2  ;;  %v6835_v39 = vpack.c.bf16 %v5510_v3, %v5462_v44  ;;  %v5679_v29 = vmul.f32 %v6837_v42, %v6836_v47 }
 0x30a   :  { %2272 = vmatpush1.bf16.msra.mxu0 %v6833_v22  ;;  %3101 = vst [vmem:[#allocation8] sm:$0xff] %v5648_v52  ;;  %3158 = vst [vmem:[#allocation8 + $0x1c8] sm:$0xff] %v5655_v23  ;;  %v5683_v22 = vmul.f32 %v6837_v42, %v6839_v48  ;;  %v2993_v54 = vadd.f32 %v2992_v21, %v2991_v51  ;;  %v2984_v19 = vadd.f32 %v2983_v35, %v2982_v0  ;;  %v6841_v0 = vld [vmem:[#allocation22_spill] sm:$0xff] }
 0x30b   :  { %2325 = vmatpush1.bf16.msra.mxu1 %v6835_v39  ;;  %6838 = vst [vmem:[#allocation16_spill] sm:$0xff] %v5679_v29  ;;  %3160 = vst [vmem:[#allocation8 + $0x1d8] sm:$0xff] %v5663_v9  ;;  %v5691_v39 = vmul.f32 %v5348_v1, %v6840_v62  ;;  %v2977_v27 = vadd.f32 %v2976_v60, %v2975_v31  ;;  %v3002_v47 = vadd.f32 %v3001_v17, %v3000_v10  ;;  %v6842_v62 = vld [vmem:[#allocation21_spill] sm:$0xff]  ;;  %v6843_v10 = vld [vmem:[#allocation23_spill] sm:$0xff] }
 0x30c   :  { %3117 = vst [vmem:[#allocation8 + $0x80] sm:$0xff] %v5670_v16  ;;  %3103 = vst [vmem:[#allocation8 + $0x10] sm:$0xff] %v5679_v29  ;;  %v5701_v21 = vmul.f32 %v5348_v1, %v6841_v0  ;;  %v2994_v35 = vrot.slane %v2993_v54, 1  ;;  %v2985_v48 = vrot.slane %v2984_v19, 1  ;;  %v5709_v31 = vmul.f32 %v5355_v55, %v6842_v62  ;;  %v6844_v0 = vld [vmem:[#allocation18_spill] sm:$0xff] }
 0x30d   :  { %4333 = vmatmul.mubr.msk.bf16.vlgmr.msra.gmra.mxu0 %vm804_vm2, %v5227_v25  ;;  %3119 = vst [vmem:[#allocation8 + $0x90] sm:$0xff] %v5683_v22  ;;  %3134 = vst [vmem:[#allocation8 + $0x108] sm:$0xff] %v5691_v39  ;;  %v5713_v60 = vmul.f32 %v5355_v55, %v6843_v10  ;;  %v3017_v17 = vmax.f32 %v2977_v27, 1e-24  ;;  %v3003_v1 = vrot.slane %v3002_v47, 1  ;;  %v5721_v51 = vmul.f32 %v6830_v53, %v6844_v0  ;;  %v6845_v27 = vld [vmem:[#allocation19_spill] sm:$0xff] }
 0x30e   :  { %4335 = vmatmul.mubr.msk.bf16.vlgmr.msra.gmra.mxu1 %vm804_vm2, %v5227_v25  ;;  %2299 = vmatprep.mubr.bf16.mxu0 %v6800_v4  ;;  %3150 = vst [vmem:[#allocation8 + $0x188] sm:$0xff] %v5701_v21  ;;  %v2995_v59 = vadd.f32 %v2994_v35, %v2993_v54  ;;  %v2986_v62 = vadd.f32 %v2985_v48, %v2984_v19  ;;  %3136 = vst [vmem:[#allocation8 + $0x118] sm:$0xff] %v5709_v31  ;;  %v6847_v53 = vld [vmem:[#allocation39_spill] sm:$0xff]  ;;  %v6853_v0 = vld [vmem:[#allocation45_spill] sm:$0xff] }
 0x30f   :  { %2352 = vmatprep.mubr.bf16.mxu1 %v6800_v4  ;;  %3152 = vst [vmem:[#allocation8 + $0x198] sm:$0xff] %v5713_v60  ;;  %v5729_v10 = vmul.f32 %v6837_v42, %v6845_v27  ;;  %4422 = vrsqrt.f32 %v3017_v17  ;;  %v3004_v29 = vadd.f32 %v3003_v1, %v3002_v47  ;;  %3133 = vst [vmem:[#allocation8 + $0x100] sm:$0xff] %v5721_v51  ;;  %v6849_v42 = vld [vmem:[#allocation29_spill] sm:$0xff]  ;;  %v6850_v1 = vld [vmem:[#allocation26_spill] sm:$0xff] }
 0x310   :  { %v5736_v19 = vmul.f32 %v5492_v57, %v5183_v30  ;;  %v3019_v54 = vmax.f32 %v2995_v59, 1e-24  ;;  %v3018_v35 = vmax.f32 %v2986_v62, 1e-24  ;;  %v5743_v17 = vmul.f32 %v5492_v57, %v6849_v42  ;;  %v6851_v30 = vld [vmem:[#allocation30_spill] sm:$0xff]  ;;  %v6852_v62 = vld [vmem:[#allocation24_spill] sm:$0xff] }
 0x311   :  { %6846 = vst [vmem:[#allocation15_spill] sm:$0xff] %v5729_v10  ;;  %3135 = vst [vmem:[#allocation8 + $0x110] sm:$0xff] %v5729_v10  ;;  %v3020_v47 = vmax.f32 %v3004_v29, 1e-24  ;;  %v5748_v27 = vmul.f32 %v5500_v50, %v6850_v1  ;;  %v5752_v59 = vmul.f32 %v5500_v50, %v6851_v30  ;;  %v5756_v25 = vmul.f32 %v6853_v0, %v6852_v62  ;;  %v6855_v42 = vld [vmem:[#allocation27_spill] sm:$0xff]  ;;  %v6857_v1 = vld [vmem:[#allocation25_spill] sm:$0xff] }
 0x312   :  { %3106 = vst [vmem:[#allocation8 + $0x28] sm:$0xff] %v5736_v19  ;;  %4424 = vrsqrt.f32 %v3019_v54  ;;  %3122 = vst [vmem:[#allocation8 + $0xa8] sm:$0xff] %v5743_v17  ;;  %v5763_v55 = vmul.f32 %v6853_v0, %v6855_v42  ;;  %v6858_v10 = vld [vmem:[#allocation46_spill] sm:$0xff]  ;;  %v6859_v30 = vld [vmem:[#allocation28_spill] sm:$0xff] }
 0x313   :  { %6854 = vst [vmem:[#allocation38_spill] sm:$0xff] %v5756_v25  ;;  %v5767_v48 = vmul.f32 %v6858_v10, %v6857_v1  ;;  %4426 = vrsqrt.f32 %v3018_v35  ;;  %3108 = vst [vmem:[#allocation8 + $0x38] sm:$0xff] %v5748_v27  ;;  %v5778_v62 = vmul.f32 %v6858_v10, %v6859_v30  ;;  %v6860_v42 = vld [vmem:[#allocation33_spill] sm:$0xff]  ;;  %v6861_v54 = vld [vmem:[#allocation35_spill] sm:$0xff] }
 0x314   :  { %6856 = vst [vmem:[#allocation17_spill] sm:$0xff] %v5763_v55  ;;  %3124 = vst [vmem:[#allocation8 + $0xb8] sm:$0xff] %v5752_v59  ;;  %v5782_v1 = vmul.f32 %v5492_v57, %v6860_v42  ;;  %4428 = vrsqrt.f32 %v3020_v47  ;;  %v5793_v30 = vmul.f32 %v5492_v57, %v6861_v54  ;;  %v6862_v29 = vld [vmem:[#allocation34_spill] sm:$0xff]  ;;  %v6864_v47 = vld [vmem:[#allocation36_spill] sm:$0xff] }
 0x315   :  { %4334 = vmatmul.mubr.msk.bf16.gmra.mxu0 %vm804_vm2, %v5275_v12  ;;  %3105 = vst [vmem:[#allocation8 + $0x20] sm:$0xff] %v5756_v25  ;;  %3121 = vst [vmem:[#allocation8 + $0xa0] sm:$0xff] %v5763_v55  ;;  %v5797_v42 = vmul.f32 %v5500_v50, %v6862_v29  ;;  %v5806_v35 = vmul.f32 %v5500_v50, %v6864_v47  ;;  %v6866_v25 = vld [vmem:[#allocation31_spill] sm:$0xff]  ;;  %v6867_v54 = vld [vmem:[#allocation32_spill] sm:$0xff]  ;;  %v5826_v50 = vmul.f32 %v5642_v33, %v5384_v20 }
 0x316   :  { %4336 = vmatmul.mubr.msk.bf16.gmra.mxu1 %vm804_vm2, %v5275_v12  ;;  %2501 = vmatprep.mubr.bf16.mxu0 %v6800_v4  ;;  %3107 = vst [vmem:[#allocation8 + $0x30] sm:$0xff] %v5767_v48  ;;  %3123 = vst [vmem:[#allocation8 + $0xb0] sm:$0xff] %v5778_v62  ;;  %v5810_v57 = vmul.f32 %v6853_v0, %v6866_v25  ;;  %v5814_v29 = vmul.f32 %v6858_v10, %v6867_v54  ;;  %v6872_v0 = vld [vmem:[#allocation47_spill] sm:$0xff]  ;;  %v6883_v47 = vld [vmem:[#allocation41_spill] sm:$0xff] }
 0x317   :  { %6863 = vst [vmem:[#allocation20_spill] sm:$0xff] %v5797_v42  ;;  %2542 = vmatprep.mubr.bf16.mxu1 %v6800_v4  ;;  %3138 = vst [vmem:[#allocation8 + $0x128] sm:$0xff] %v5782_v1  ;;  %v5822_v12 = vmul.f32 %v5642_v33, %v5317_v32  ;;  %v5830_v25 = vmul.f32 %v5650_v63, %v5319_v61  ;;  %v5843_v54 = vmul.f32 %v5650_v63, %v5386_v58  ;;  %v6879_v55 = vld [vmem:[#allocation43_spill] sm:$0xff] }
 0x318   :  { %6865 = vst [vmem:[#allocation22_spill] sm:$0xff] %v5806_v35  ;;  %6868 = vst [vmem:[#allocation21_spill] sm:$0xff] %v5814_v29  ;;  %v5852_v10 = vmul.f32 %v5613_v11, %v5313_v28  ;;  %v5856_v20 = vmul.f32 %v5613_v11, %v5362_v43  ;;  %v5860_v58 = vmul.f32 %v5621_v38, %v5315_v34 }
 0x319   :  { %3154 = vst [vmem:[#allocation8 + $0x1a8] sm:$0xff] %v5793_v30  ;;  %3140 = vst [vmem:[#allocation8 + $0x138] sm:$0xff] %v5797_v42  ;;  %v5867_v61 = vmul.f32 %v5621_v38, %v5364_v45  ;;  %v5871_v28 = vmul.f32 %v5642_v33, %v6879_v55  ;;  %v5884_v45 = vmul.f32 %v5613_v11, %v6883_v47 }
 0x31a   :  { %6869 = vst [vmem:[#allocation23_spill] sm:$0xff] %v5822_v12  ;;  %6870 = vst [vmem:[#allocation18_spill] sm:$0xff] %v5826_v50 }
 0x31b   :  { %6871 = vst [vmem:[#allocation19_spill] sm:$0xff] %v5830_v25  ;;  %3156 = vst [vmem:[#allocation8 + $0x1b8] sm:$0xff] %v5806_v35 }
 0x31c   :  { %3137 = vst [vmem:[#allocation8 + $0x120] sm:$0xff] %v5810_v57  ;;  %3139 = vst [vmem:[#allocation8 + $0x130] sm:$0xff] %v5814_v29  ;;  %v6881_v29 = vld [vmem:[#allocation44_spill] sm:$0xff] }
 0x31d   :  { %6874 = vst [vmem:[#allocation39_spill] sm:$0xff] %v5843_v54  ;;  %3110 = vst [vmem:[#allocation8 + $0x48] sm:$0xff] %v5822_v12  ;;  %v5875_v43 = vmul.f32 %v5650_v63, %v6881_v29  ;;  %v4423_v29 = vpop.eup %4422 }
 0x31e   :  { %3126 = vst [vmem:[#allocation8 + $0xc8] sm:$0xff] %v5826_v50  ;;  %3112 = vst [vmem:[#allocation8 + $0x58] sm:$0xff] %v5830_v25  ;;  %v6885_v25 = vld [vmem:[#allocation42_spill] sm:$0xff]  ;;  %v5906_v47 = vmul.f32 %v4423_v29, %v5562_v49  ;;  %v5909_v63 = vmul.f32 %v4423_v29, %v5459_v36  ;;  %v5912_v55 = vmul.f32 %v4423_v29, %v5506_v7 }
 0x31f   :  { %6875 = vst [vmem:[#allocation29_spill] sm:$0xff] %v5852_v10  ;;  %6876 = vst [vmem:[#allocation26_spill] sm:$0xff] %v5856_v20  ;;  %v5888_v33 = vmul.f32 %v5621_v38, %v6885_v25  ;;  %v5915_v11 = vmul.f32 %v4423_v29, %v5546_v40  ;;  %v4425_v34 = vpop.eup %4424 }
 0x320   :  { %6877 = vst [vmem:[#allocation30_spill] sm:$0xff] %v5860_v58  ;;  %3128 = vst [vmem:[#allocation8 + $0xd8] sm:$0xff] %v5843_v54  ;;  %v4427_v7 = vpop.eup %4426  ;;  %v5926_v25 = vmul.f32 %v4425_v34, %v5582_v6  ;;  %v5929_v40 = vmul.f32 %v4425_v34, %v5462_v44  ;;  %v5932_v29 = vmul.f32 %v4425_v34, %v5510_v3 }
 0x321   :  { %6878 = vst [vmem:[#allocation24_spill] sm:$0xff] %v5867_v61  ;;  %6880 = vst [vmem:[#allocation45_spill] sm:$0xff] %v5871_v28  ;;  %v5935_v38 = vmul.f32 %v4425_v34, %v5554_v5  ;;  %v5938_v49 = vmul.f32 %v4427_v7, %v5584_v26  ;;  %v5944_v36 = vmul.f32 %v4427_v7, %v5527_v13 }
 0x322   :  { %6882 = vst [vmem:[#allocation27_spill] sm:$0xff] %v5875_v43  ;;  %3109 = vst [vmem:[#allocation8 + $0x40] sm:$0xff] %v5852_v10  ;;  %v5947_v6 = vmul.f32 %v4427_v7, %v5556_v46  ;;  %v5985_v46 = vpop.permute.xlu1 %1920 }
 0x323   :  { %3125 = vst [vmem:[#allocation8 + $0xc0] sm:$0xff] %v5856_v20  ;;  %3111 = vst [vmem:[#allocation8 + $0x50] sm:$0xff] %v5860_v58 }
 0x324   :  { %6884 = vst [vmem:[#allocation25_spill] sm:$0xff] %v5884_v45  ;;  %6886 = vst [vmem:[#allocation46_spill] sm:$0xff] %v5888_v33 }
 0x325   :  { %3127 = vst [vmem:[#allocation8 + $0xd0] sm:$0xff] %v5867_v61  ;;  %3142 = vst [vmem:[#allocation8 + $0x148] sm:$0xff] %v5871_v28 }
 0x326   :  { %3144 = vst [vmem:[#allocation8 + $0x158] sm:$0xff] %v5875_v43  ;;  %3141 = vst [vmem:[#allocation8 + $0x140] sm:$0xff] %v5884_v45 }
 0x327   :  { %3143 = vst [vmem:[#allocation8 + $0x150] sm:$0xff] %v5888_v33  ;;  %6887 = vst [vmem:[#allocation28_spill] sm:$0xff] %v5906_v47  ;;  %v4429_v33 = vpop.eup %4428 }
 0x328   :  { %6888 = vst [vmem:[#allocation33_spill] sm:$0xff] %v5909_v63  ;;  %6889 = vst [vmem:[#allocation35_spill] sm:$0xff] %v5912_v55  ;;  %v5951_v3 = vmul.f32 %v4429_v33, %v5587_v37  ;;  %v5954_v44 = vmul.f32 %v4429_v33, %v5470_v41  ;;  %v5957_v5 = vmul.f32 %v4429_v33, %v5534_v18  ;;  %v5987_v41 = vpop.permute.xlu0 %1915 }
 0x329   :  { %6890 = vst [vmem:[#allocation34_spill] sm:$0xff] %v5915_v11  ;;  %3161 = vst [vmem:[#allocation8 + $0x1e0] sm:$0xff] %v5906_v47  ;;  %v5973_v18 = vmul.f32 %v4429_v33, %v5560_v2 }
 0x32a   :  { %3113 = vst [vmem:[#allocation8 + $0x60] sm:$0xff] %v5909_v63  ;;  %3129 = vst [vmem:[#allocation8 + $0xe0] sm:$0xff] %v5912_v55  ;;  %v5941_v63 = vmul.f32 %v4427_v7, %v5464_v24 }
 0x32b   :  { %3145 = vst [vmem:[#allocation8 + $0x160] sm:$0xff] %v5915_v11  ;;  %6891 = vst [vmem:[#allocation36_spill] sm:$0xff] %v5926_v25 }
 0x32c   :  { %6892 = vst [vmem:[#allocation31_spill] sm:$0xff] %v5929_v40  ;;  %6893 = vst [vmem:[#allocation32_spill] sm:$0xff] %v5932_v29 }
 0x32d   :  { %6894 = vst [vmem:[#allocation47_spill] sm:$0xff] %v5935_v38  ;;  %6895 = vst [vmem:[#allocation43_spill] sm:$0xff] %v5938_v49 }
 0x32e   :  { %6896 = vst [vmem:[#allocation44_spill] sm:$0xff] %v5941_v63  ;;  %6897 = vst [vmem:[#allocation41_spill] sm:$0xff] %v5944_v36 }
 0x32f   :  { %6898 = vst [vmem:[#allocation42_spill] sm:$0xff] %v5947_v6  ;;  %3163 = vst [vmem:[#allocation8 + $0x1f0] sm:$0xff] %v5926_v25 }
 0x330   :  { %6899 = vst [vmem:[#allocation53_spill] sm:$0xff] %v5951_v3  ;;  %6900 = vst [vmem:[#allocation54_spill] sm:$0xff] %v5954_v44 }
 0x331   :  { %6901 = vst [vmem:[#allocation55_spill] sm:$0xff] %v5957_v5  ;;  %3115 = vst [vmem:[#allocation8 + $0x70] sm:$0xff] %v5929_v40  ;;  %v5989_v40 = vpop.permute.xlu1 %1910 }
 0x332   :  { %3131 = vst [vmem:[#allocation8 + $0xf0] sm:$0xff] %v5932_v29  ;;  %3147 = vst [vmem:[#allocation8 + $0x170] sm:$0xff] %v5935_v38 }
 0x333   :  { %3162 = vst [vmem:[#allocation8 + $0x1e8] sm:$0xff] %v5938_v49  ;;  %3114 = vst [vmem:[#allocation8 + $0x68] sm:$0xff] %v5941_v63 }
 0x334   :  { %3130 = vst [vmem:[#allocation8 + $0xe8] sm:$0xff] %v5944_v36  ;;  %3146 = vst [vmem:[#allocation8 + $0x168] sm:$0xff] %v5947_v6  ;;  %v5991_v6 = vpop.permute.xlu0 %1905 }
 0x335   :  { %6902 = vst [vmem:[#allocation56_spill] sm:$0xff] %v5973_v18  ;;  %3164 = vst [vmem:[#allocation8 + $0x1f8] sm:$0xff] %v5951_v3 }
 0x336   :  { %3116 = vst [vmem:[#allocation8 + $0x78] sm:$0xff] %v5954_v44  ;;  %3132 = vst [vmem:[#allocation8 + $0xf8] sm:$0xff] %v5957_v5 }
 0x337   :  { %3148 = vst [vmem:[#allocation8 + $0x178] sm:$0xff] %v5973_v18 }
 0x384   :  { %v1973_v34 = vpop.f32.mrf.mxu0 }
 0x385   :  { %v1974_v63 = vadd.f32 %v1973_v34, %v5991_v6 }
 0x386   :  { %v1975_v2 = vpop.f32.mrf.mxu0 }
 0x387   :  { %v2026_v33 = vpop.f32.mrf.mxu1  ;;  %v1976_v55 = vadd.f32 %v1975_v2, %v5991_v6 }
 0x388   :  { %v1977_v7 = vpop.f32.mrf.mxu0 }
 0x389   :  { %v2028_v13 = vpop.f32.mrf.mxu1  ;;  %v1978_v36 = vadd.f32 %v1977_v7, %v5989_v40  ;;  %v2364_v61 = vmax.f32 %v1976_v55, 0.0  ;;  %v2363_v55 = vmax.f32 %v1974_v63, 0.0 }
 0x38a   :  { %v1979_v24 = vpop.f32.mrf.mxu0  ;;  %v2029_v34 = vadd.f32 %v2028_v13, %v5991_v6 }
 0x38b   :  { %v2030_v38 = vpop.f32.mrf.mxu1  ;;  %v1980_v37 = vadd.f32 %v1979_v24, %v5989_v40 }
 0x38c   :  { %v1983_v25 = vpop.f32.mrf.mxu0  ;;  %v2366_v20 = vmax.f32 %v2029_v34, 0.0 }
 0x38d   :  { %v2032_v11 = vpop.f32.mrf.mxu1  ;;  %v1984_v44 = vadd.f32 %v1983_v25, %v5987_v41 }
 0x38e   :  { %v1985_v47 = vpop.f32.mrf.mxu0  ;;  %v2033_v56 = vadd.f32 %v2032_v11, %v5989_v40  ;;  %v2031_v11 = vadd.f32 %v2030_v38, %v5989_v40 }
 0x38f   :  { %v2036_v26 = vpop.f32.mrf.mxu1  ;;  %v1986_v18 = vadd.f32 %v1985_v47, %v5987_v41  ;;  %v2395_v7 = vmax.f32 %v1984_v44, 0.0 }
 0x390   :  { %v1987_v29 = vpop.f32.mrf.mxu0  ;;  %v2037_v2 = vadd.f32 %v2036_v26, %v5987_v41  ;;  %v2027_v26 = vadd.f32 %v2026_v33, %v5991_v6  ;;  %v2381_v44 = vmax.f32 %v2031_v11, 0.0 }
 0x391   :  { %v2038_v3 = vpop.f32.mrf.mxu1  ;;  %v1988_v49 = vadd.f32 %v1987_v29, %v5985_v46  ;;  %v2380_v29 = vmax.f32 %v1980_v37, 0.0  ;;  %v2396_v9 = vmax.f32 %v1986_v18, 0.0 }
 0x392   :  { %v1989_v5 = vpop.f32.mrf.mxu0  ;;  %v2039_v24 = vadd.f32 %v2038_v3, %v5987_v41 }
 0x393   :  { %v2040_v15 = vpop.f32.mrf.mxu1  ;;  %v1990_v45 = vadd.f32 %v1989_v5, %v5985_v46  ;;  %v2411_v47 = vmax.f32 %v1988_v49, 0.0  ;;  %v2379_v5 = vmax.f32 %v1978_v36, 0.0  ;;  %v2382_v49 = vmax.f32 %v2033_v56, 0.0  ;;  %v6012_v56 = vld [vmem:[%s6690_s10] sm:$0xf] }
 0x394   :  { %v2041_v43 = vadd.f32 %v2040_v15, %v5985_v46  ;;  %v2398_v10 = vmax.f32 %v2039_v24, 0.0  ;;  %v2429_v18 = vpack.c.bf16 %v2380_v29, %v2364_v61 }
 0x395   :  { %v2412_v25 = vmax.f32 %v1990_v45, 0.0  ;;  %v2042_v58 = vpop.f32.mrf.mxu1  ;;  %v2444_v15 = vpack.c.bf16 %v2411_v47, %v2395_v7  ;;  %v2397_v45 = vmax.f32 %v2037_v2, 0.0  ;;  %v2428_v36 = vpack.c.bf16 %v2379_v5, %v2363_v55 }
 0x396   :  { %v2043_v28 = vadd.f32 %v2042_v58, %v5985_v46  ;;  %v2413_v23 = vmax.f32 %v2041_v43, 0.0  ;;  %v2431_v38 = vpack.c.bf16 %v2382_v49, %v2366_v20 }
 0x397   :  { %v2445_v3 = vpack.c.bf16 %v2412_v25, %v2396_v9  ;;  %v2365_v9 = vmax.f32 %v2027_v26, 0.0 }
 0x398   :  { %v2414_v37 = vmax.f32 %v2043_v28, 0.0  ;;  %v2446_v58 = vpack.c.bf16 %v2413_v23, %v2397_v45 }
 0x399   :  { %2481 = vmatprep.subr.bf16.mxu0 %v2445_v3  ;;  %v2430_v61 = vpack.c.bf16 %v2381_v44, %v2365_v9 }
 0x39a   :  { %v2447_v13 = vpack.c.bf16 %v2414_v37, %v2398_v10  ;;  %2482 = vmatpush1.bf16.msra.mxu0 %v2444_v15 }
 0x39b   :  { %2483 = vmatprep.subr.bf16.mxu0 %v2429_v18 }
 0x39c   :  { %2522 = vmatprep.subr.bf16.mxu1 %v2447_v13 }
 0x39d   :  { %2523 = vmatpush1.bf16.msra.mxu1 %v2446_v58 }
 0x39e   :  { %2524 = vmatprep.subr.bf16.mxu1 %v2431_v38  ;;  %2484 = vmatpush1.bf16.msra.mxu0 %v2428_v36 }
 0x3a1   :  { %2525 = vmatpush1.bf16.msra.mxu1 %v2430_v61  ;;  %4337 = vmatmul.mubr.msk.bf16.vlgmr.msra.gmra.mxu0 %vm804_vm2, %v6012_v56 }
 0x3a2   :  { %2583 = vmatprep.mubr.bf16.mxu0 %v6800_v4 }
 0x3a3   :  { %v2079_v28 = vpop.f32.mrf.mxu0 }
 0x3a4   :  { %v2132_v23 = vpop.f32.mrf.mxu1  ;;  %4338 = vmatmul.mubr.msk.bf16.vlgmr.msra.gmra.mxu1 %vm804_vm2, %v6012_v56  ;;  %v2080_v7 = vadd.f32 %v2079_v28, %v5991_v6 }
 0x3a5   :  { %v2081_v10 = vpop.f32.mrf.mxu0  ;;  %2624 = vmatprep.mubr.bf16.mxu1 %v6800_v4 }
 0x3a6   :  { %v2134_v20 = vpop.f32.mrf.mxu1  ;;  %v2082_v55 = vadd.f32 %v2081_v10, %v5991_v6 }
 0x3a7   :  { %v2083_v43 = vpop.f32.mrf.mxu0  ;;  %v2135_v13 = vadd.f32 %v2134_v20, %v5991_v6 }
 0x3a8   :  { %v2136_v63 = vpop.f32.mrf.mxu1  ;;  %v2084_v38 = vadd.f32 %v2083_v43, %v5989_v40 }
 0x3a9   :  { %v2085_v33 = vpop.f32.mrf.mxu0  ;;  %v2137_v9 = vadd.f32 %v2136_v63, %v5989_v40  ;;  %v2370_v32 = vmax.f32 %v2135_v13, 0.0 }
 0x3aa   :  { %v2138_v24 = vpop.f32.mrf.mxu1  ;;  %v2086_v5 = vadd.f32 %v2085_v33, %v5989_v40  ;;  %v2383_v43 = vmax.f32 %v2084_v38, 0.0 }
 0x3ab   :  { %v2089_v47 = vpop.f32.mrf.mxu0  ;;  %v2139_v15 = vadd.f32 %v2138_v24, %v5989_v40 }
 0x3ac   :  { %v2142_v29 = vpop.f32.mrf.mxu1  ;;  %v2090_v37 = vadd.f32 %v2089_v47, %v5987_v41  ;;  %v2384_v33 = vmax.f32 %v2086_v5, 0.0  ;;  %v2367_v5 = vmax.f32 %v2080_v7, 0.0 }
 0x3ad   :  { %v2091_v2 = vpop.f32.mrf.mxu0  ;;  %v2143_v44 = vadd.f32 %v2142_v29, %v5987_v41  ;;  %v2133_v29 = vadd.f32 %v2132_v23, %v5991_v6 }
 0x3ae   :  { %v2144_v25 = vpop.f32.mrf.mxu1  ;;  %v2092_v11 = vadd.f32 %v2091_v2, %v5987_v41  ;;  %v2399_v10 = vmax.f32 %v2090_v37, 0.0  ;;  %v2432_v37 = vpack.c.bf16 %v2383_v43, %v2367_v5 }
 0x3af   :  { %v2093_v34 = vpop.f32.mrf.mxu0  ;;  %v2145_v26 = vadd.f32 %v2144_v25, %v5987_v41  ;;  %v2386_v25 = vmax.f32 %v2139_v15, 0.0  ;;  %v2369_v15 = vmax.f32 %v2133_v29, 0.0 }
 0x3b0   :  { %v2094_v3 = vadd.f32 %v2093_v34, %v5985_v46  ;;  %v2146_v49 = vpop.f32.mrf.mxu1  ;;  %v2400_v24 = vmax.f32 %v2092_v11, 0.0 }
 0x3b1   :  { %v2147_v18 = vadd.f32 %v2146_v49, %v5985_v46  ;;  %v2095_v45 = vpop.f32.mrf.mxu0  ;;  %v2402_v34 = vmax.f32 %v2145_v26, 0.0  ;;  %v2368_v49 = vmax.f32 %v2082_v55, 0.0  ;;  %v2435_v11 = vpack.c.bf16 %v2386_v25, %v2370_v32 }
 0x3b2   :  { %v2096_v58 = vadd.f32 %v2095_v45, %v5985_v46  ;;  %v2148_v36 = vpop.f32.mrf.mxu1  ;;  %v2415_v61 = vmax.f32 %v2094_v3, 0.0  ;;  %v2401_v45 = vmax.f32 %v2143_v44, 0.0  ;;  %v2385_v3 = vmax.f32 %v2137_v9, 0.0 }
 0x3b3   :  { %v2149_v28 = vadd.f32 %v2148_v36, %v5985_v46  ;;  %v2417_v47 = vmax.f32 %v2147_v18, 0.0  ;;  %v2433_v50 = vpack.c.bf16 %v2384_v33, %v2368_v49 }
 0x3b4   :  { %v2416_v2 = vmax.f32 %v2096_v58, 0.0  ;;  %v2448_v12 = vpack.c.bf16 %v2415_v61, %v2399_v10  ;;  %v2434_v23 = vpack.c.bf16 %v2385_v3, %v2369_v15 }
 0x3b5   :  { %v2418_v20 = vmax.f32 %v2149_v28, 0.0  ;;  %v2450_v36 = vpack.c.bf16 %v2417_v47, %v2401_v45 }
 0x3b6   :  { %v2449_v54 = vpack.c.bf16 %v2416_v2, %v2400_v24 }
 0x3b7   :  { %v2451_v63 = vpack.c.bf16 %v2418_v20, %v2402_v34 }
 0x3b8   :  { %2563 = vmatprep.subr.bf16.mxu0 %v2449_v54 }
 0x3b9   :  { %2604 = vmatprep.subr.bf16.mxu1 %v2451_v63  ;;  %2564 = vmatpush1.bf16.msra.mxu0 %v2448_v12 }
 0x3ba   :  { %2605 = vmatpush1.bf16.msra.mxu1 %v2450_v36  ;;  %2565 = vmatprep.subr.bf16.mxu0 %v2433_v50 }
 0x3bb   :  { %2606 = vmatprep.subr.bf16.mxu1 %v2435_v11 }
 0x3bd   :  { %v2185_v26 = vpop.f32.mrf.mxu0  ;;  %2566 = vmatpush1.bf16.msra.mxu0 %v2432_v37 }
 0x3be   :  { %v2238_v18 = vpop.f32.mrf.mxu1  ;;  %2607 = vmatpush1.bf16.msra.mxu1 %v2434_v23  ;;  %v2186_v61 = vadd.f32 %v2185_v26, %v5991_v6 }
 0x3bf   :  { %v2187_v55 = vpop.f32.mrf.mxu0 }
 0x3c0   :  { %v2240_v13 = vpop.f32.mrf.mxu1  ;;  %4339 = vmatmul.mubr.msk.bf16.vlgmr.msra.gmra.mxu0 %vm804_vm2, %v6012_v56  ;;  %v2188_v29 = vadd.f32 %v2187_v55, %v5991_v6 }
 0x3c1   :  { %v2189_v44 = vpop.f32.mrf.mxu0  ;;  %4340 = vmatmul.mubr.msk.bf16.vlgmr.msra.gmra.mxu1 %vm804_vm2, %v6012_v56  ;;  %2665 = vmatprep.mubr.bf16.mxu0 %v6800_v4  ;;  %v2241_v49 = vadd.f32 %v2240_v13, %v5991_v6 }
 0x3c2   :  { %v2242_v54 = vpop.f32.mrf.mxu1  ;;  %2706 = vmatprep.mubr.bf16.mxu1 %v6800_v4  ;;  %v2190_v3 = vadd.f32 %v2189_v44, %v5989_v40  ;;  %v2372_v44 = vmax.f32 %v2188_v29, 0.0 }
 0x3c3   :  { %v2191_v12 = vpop.f32.mrf.mxu0  ;;  %v2243_v36 = vadd.f32 %v2242_v54, %v5989_v40 }
 0x3c4   :  { %v2244_v50 = vpop.f32.mrf.mxu1  ;;  %v2192_v28 = vadd.f32 %v2191_v12, %v5989_v40 }
 0x3c5   :  { %v2195_v32 = vpop.f32.mrf.mxu0  ;;  %v2245_v2 = vadd.f32 %v2244_v50, %v5989_v40 }
 0x3c6   :  { %v2248_v7 = vpop.f32.mrf.mxu1  ;;  %v2196_v25 = vadd.f32 %v2195_v32, %v5987_v41  ;;  %v2388_v37 = vmax.f32 %v2192_v28, 0.0 }
 0x3c7   :  { %v2197_v58 = vpop.f32.mrf.mxu0  ;;  %v2249_v45 = vadd.f32 %v2248_v7, %v5987_v41  ;;  %v2390_v13 = vmax.f32 %v2245_v2, 0.0  ;;  %v2371_v2 = vmax.f32 %v2186_v61, 0.0 }
 0x3c8   :  { %v2250_v38 = vpop.f32.mrf.mxu1  ;;  %v2198_v33 = vadd.f32 %v2197_v58, %v5987_v41  ;;  %v2403_v50 = vmax.f32 %v2196_v25, 0.0 }
 0x3c9   :  { %v2199_v9 = vpop.f32.mrf.mxu0  ;;  %v2251_v10 = vadd.f32 %v2250_v38, %v5987_v41  ;;  %v2239_v38 = vadd.f32 %v2238_v18, %v5991_v6 }
 0x3ca   :  { %v2200_v24 = vadd.f32 %v2199_v9, %v5985_v46  ;;  %v2252_v47 = vpop.f32.mrf.mxu1  ;;  %v2404_v23 = vmax.f32 %v2198_v33, 0.0  ;;  %v2405_v9 = vmax.f32 %v2249_v45, 0.0 }
 0x3cb   :  { %v2253_v34 = vadd.f32 %v2252_v47, %v5985_v46  ;;  %v2201_v20 = vpop.f32.mrf.mxu0  ;;  %v2406_v32 = vmax.f32 %v2251_v10, 0.0  ;;  %v2374_v47 = vmax.f32 %v2241_v49, 0.0  ;;  %v2373_v18 = vmax.f32 %v2239_v38, 0.0 }
 0x3cc   :  { %v2202_v43 = vadd.f32 %v2201_v20, %v5985_v46  ;;  %v2254_v63 = vpop.f32.mrf.mxu1  ;;  %v2419_v5 = vmax.f32 %v2200_v24, 0.0  ;;  %v2387_v20 = vmax.f32 %v2190_v3, 0.0 }
 0x3cd   :  { %v2255_v11 = vadd.f32 %v2254_v63, %v5985_v46  ;;  %v2291_v15 = vpop.f32.mrf.mxu0  ;;  %v2421_v26 = vmax.f32 %v2253_v34, 0.0  ;;  %v2389_v34 = vmax.f32 %v2243_v36, 0.0  ;;  %v2439_v25 = vpack.c.bf16 %v2390_v13, %v2374_v47 }
 0x3ce   :  { %v2420_v12 = vmax.f32 %v2202_v43, 0.0  ;;  %v6057_v55 = vpop.f32.mrf.mxu1  ;;  %v2452_v63 = vpack.c.bf16 %v2419_v5, %v2403_v50  ;;  %v2437_v43 = vpack.c.bf16 %v2388_v37, %v2372_v44  ;;  %v2436_v45 = vpack.c.bf16 %v2387_v20, %v2371_v2 }
 0x3cf   :  { %v2422_v7 = vmax.f32 %v2255_v11, 0.0  ;;  %v2293_v58 = vpop.f32.mrf.mxu0  ;;  %v2454_v42 = vpack.c.bf16 %v2421_v26, %v2405_v9  ;;  %v2438_v3 = vpack.c.bf16 %v2389_v34, %v2373_v18  ;;  %v2292_v37 = vadd.f32 %v2291_v15, %v5991_v6 }
 0x3d0   :  { %v2453_v54 = vpack.c.bf16 %v2420_v12, %v2404_v23  ;;  %v2346_v24 = vpop.f32.mrf.mxu1  ;;  %v2294_v38 = vadd.f32 %v2293_v58, %v5991_v6 }
 0x3d1   :  { %v2455_v28 = vpack.c.bf16 %v2422_v7, %v2406_v32  ;;  %v2295_v33 = vpop.f32.mrf.mxu0  ;;  %v2347_v44 = vadd.f32 %v2346_v24, %v5991_v6 }
 0x3d2   :  { %v2348_v35 = vpop.f32.mrf.mxu1  ;;  %2645 = vmatprep.subr.bf16.mxu0 %v2453_v54  ;;  %v2296_v20 = vadd.f32 %v2295_v33, %v5989_v40 }
 0x3d3   :  { %2686 = vmatprep.subr.bf16.mxu1 %v2455_v28  ;;  %v2297_v10 = vpop.f32.mrf.mxu0  ;;  %2646 = vmatpush1.bf16.msra.mxu0 %v2452_v63  ;;  %v2349_v63 = vadd.f32 %v2348_v35, %v5989_v40  ;;  %v2378_v33 = vmax.f32 %v2347_v44, 0.0 }
 0x3d4   :  { %v2350_v29 = vpop.f32.mrf.mxu1  ;;  %2687 = vmatpush1.bf16.msra.mxu1 %v2454_v42  ;;  %2647 = vmatprep.subr.bf16.mxu0 %v2437_v43  ;;  %v2298_v23 = vadd.f32 %v2297_v10, %v5989_v40 }
 0x3d5   :  { %2688 = vmatprep.subr.bf16.mxu1 %v2439_v25  ;;  %v2301_v49 = vpop.f32.mrf.mxu0  ;;  %v2351_v26 = vadd.f32 %v2350_v29, %v5989_v40  ;;  %v2345_v29 = vadd.f32 %v6057_v55, %v5991_v6  ;;  %v6903_v55 = vpack.c.bf16 %v5611_v8, %v5607_v14 }
 0x3d6   :  { %v2354_v5 = vpop.f32.mrf.mxu1  ;;  %v2302_v50 = vadd.f32 %v2301_v49, %v5987_v41  ;;  %v2392_v43 = vmax.f32 %v2298_v23, 0.0 }
 0x3d7   :  { %v2303_v11 = vpop.f32.mrf.mxu0  ;;  %2648 = vmatpush1.bf16.msra.mxu0 %v2436_v45  ;;  %v2355_v9 = vadd.f32 %v2354_v5, %v5987_v41  ;;  %v2394_v10 = vmax.f32 %v2351_v26, 0.0  ;;  %v2376_v45 = vmax.f32 %v2294_v38, 0.0  ;;  %v2391_v5 = vmax.f32 %v2296_v20, 0.0 }
 0x3d8   :  { %v2356_v36 = vpop.f32.mrf.mxu1  ;;  %2689 = vmatpush1.bf16.msra.mxu1 %v2438_v3  ;;  %v2304_v12 = vadd.f32 %v2303_v11, %v5987_v41  ;;  %v2407_v24 = vmax.f32 %v2302_v50, 0.0  ;;  %v2393_v11 = vmax.f32 %v2349_v63, 0.0  ;;  %v2377_v26 = vmax.f32 %v2345_v29, 0.0  ;;  %v6093_v50 = vpop.permute.xlu0 %2463 }
 0x3d9   :  { %v2305_v61 = vpop.f32.mrf.mxu0  ;;  %v2357_v32 = vadd.f32 %v2356_v36, %v5987_v41  ;;  %v2409_v49 = vmax.f32 %v2355_v9, 0.0  ;;  %v2443_v23 = vpack.c.bf16 %v2394_v10, %v2378_v33 }
 0x3da   :  { %v2306_v42 = vadd.f32 %v2305_v61, %v5985_v46  ;;  %v2358_v13 = vpop.f32.mrf.mxu1  ;;  %4341 = vmatmul.mubr.msk.bf16.vlgmr.msra.gmra.mxu0 %vm804_vm2, %v6012_v56  ;;  %v2408_v2 = vmax.f32 %v2304_v12, 0.0  ;;  %v2375_v61 = vmax.f32 %v2292_v37, 0.0  ;;  %v2442_v6 = vpack.c.bf16 %v2393_v11, %v2377_v26  ;;  %v6904_v37 = vld [vmem:[#allocation52_spill] sm:$0xff] }
 0x3db   :  { %v2359_v7 = vadd.f32 %v2358_v13, %v5985_v46  ;;  %4342 = vmatmul.mubr.msk.bf16.vlgmr.msra.gmra.mxu1 %vm804_vm2, %v6012_v56  ;;  %v2307_v15 = vpop.f32.mrf.mxu0  ;;  %2747 = vmatprep.mubr.bf16.mxu0 %v6800_v4  ;;  %v2410_v18 = vmax.f32 %v2357_v32, 0.0 }
 0x3dc   :  { %v2308_v54 = vadd.f32 %v2307_v15, %v5985_v46  ;;  %v2360_v47 = vpop.f32.mrf.mxu1  ;;  %2788 = vmatprep.mubr.bf16.mxu1 %v6800_v4  ;;  %v2423_v28 = vmax.f32 %v2306_v42, 0.0  ;;  %v2440_v12 = vpack.c.bf16 %v2391_v5, %v2375_v61  ;;  %v6905_v42 = vld [vmem:[#allocation49_spill] sm:$0xff] }
 0x3dd   :  { %v2361_v34 = vadd.f32 %v2360_v47, %v5985_v46  ;;  %v2425_v25 = vmax.f32 %v2359_v7, 0.0  ;;  %v2441_v46 = vpack.c.bf16 %v2392_v43, %v2376_v45  ;;  %v6906_v13 = vpack.c.bf16 %v6904_v37, %v6905_v42 }
 0x3de   :  { %v2424_v58 = vmax.f32 %v2308_v54, 0.0  ;;  %v2456_v35 = vpack.c.bf16 %v2423_v28, %v2407_v24 }
 0x3df   :  { %v2426_v41 = vmax.f32 %v2361_v34, 0.0  ;;  %v2458_v36 = vpack.c.bf16 %v2425_v25, %v2409_v49  ;;  %v3277_v25 = vlaneseq }
 0x3e0   :  { %v2457_v3 = vpack.c.bf16 %v2424_v58, %v2408_v2 }
 0x3e1   :  { %v2459_v40 = vpack.c.bf16 %v2426_v41, %v2410_v18  ;;  %v6099_v33 = vshrl.u32 %v3277_v25, 7 }
 0x3e2   :  { %2727 = vmatprep.subr.bf16.mxu0 %v2457_v3 }
 0x3e3   :  { %2768 = vmatprep.subr.bf16.mxu1 %v2459_v40  ;;  %2728 = vmatpush1.bf16.msra.mxu0 %v2456_v35  ;;  %v6104_v42 = vsub.s32 0, %v6099_v33 }
 0x3e4   :  { %2769 = vmatpush1.bf16.msra.mxu1 %v2458_v36  ;;  %2729 = vmatprep.subr.bf16.mxu0 %v2441_v46 }
 0x3e5   :  { %2770 = vmatprep.subr.bf16.mxu1 %v2443_v23 }
 0x3e7   :  { %2730 = vmatpush1.bf16.msra.mxu0 %v2440_v12 }
 0x3e8   :  { %2771 = vmatpush1.bf16.msra.mxu1 %v2442_v6 }
 0x3ea   :  { %4343 = vmatmul.mubr.msk.bf16.vlgmr.msra.gmra.mxu0 %vm804_vm2, %v6012_v56 }
 0x3eb   :  { %4344 = vmatmul.mubr.msk.bf16.vlgmr.msra.gmra.mxu1 %vm804_vm2, %v6012_v56  ;;  %3762 = vmatprep.mubr.bf16.mxu0 %v6903_v55 }
 0x3ec   :  { %3818 = vmatprep.mubr.bf16.mxu1 %v6906_v13 }
 0x461   :  { %v2503_v32 = vpop.f32.mrf.mxu0 }
 0x462   :  { %v2504_v7 = vadd.f32 %v2503_v32, %v6093_v50 }
 0x463   :  { %v2505_v15 = vpop.f32.mrf.mxu0 }
 0x464   :  { %3165 = vst [vmem:[#allocation7] sm:$0xff] %v2504_v7  ;;  %v3181_v38 = vrot.slane %v2504_v7, 4  ;;  %v2544_v44 = vpop.f32.mrf.mxu1  ;;  %v2506_v9 = vadd.f32 %v2505_v15, %v6093_v50  ;;  %v3467_v15 = vsub.s32 2, %v6099_v33 }
 0x465   :  { %v2545_v56 = vadd.f32 %v2544_v44, %v6093_v50  ;;  %v2507_v54 = vpop.f32.mrf.mxu0 }
 0x466   :  { %v3182_v14 = vmax.f32 %v2504_v7, %v3181_v38  ;;  %3166 = vst [vmem:[#allocation7 + $0x8] sm:$0xff] %v2506_v9  ;;  %v3187_v8 = vrot.slane %v2506_v9, 4  ;;  %v2546_v47 = vpop.f32.mrf.mxu1 }
 0x467   :  { %3167 = vst [vmem:[#allocation7 + $0x10] sm:$0xff] %v2545_v56  ;;  %v3193_v20 = vrot.slane %v2545_v56, 4  ;;  %v2547_v63 = vadd.f32 %v2546_v47, %v6093_v50  ;;  %v2508_v28 = vpop.f32.mrf.mxu0 }
 0x468   :  { %v3183_v34 = vrot.slane %v3182_v14, 2  ;;  %v3188_v43 = vmax.f32 %v2506_v9, %v3187_v8  ;;  %v2548_v2 = vpop.f32.mrf.mxu1 }
 0x469   :  { %v3194_v58 = vmax.f32 %v2545_v56, %v3193_v20  ;;  %3168 = vst [vmem:[#allocation7 + $0x18] sm:$0xff] %v2547_v63  ;;  %v3199_v10 = vrot.slane %v2547_v63, 4 }
 0x46a   :  { %v3184_v24 = vmax.f32 %v3182_v14, %v3183_v34  ;;  %v3189_v18 = vrot.slane %v3188_v43, 2  ;;  %v2549_v41 = vpop.f32.mrf.mxu1  ;;  %v3471_v14 = vsub.s32 3, %v6099_v33 }
 0x46b   :  { %v3195_v29 = vrot.slane %v3194_v58, 2  ;;  %v3200_v45 = vmax.f32 %v2547_v63, %v3199_v10 }
 0x46c   :  { %v3185_v49 = vrot.slane %v3184_v24, 1  ;;  %v3190_v3 = vmax.f32 %v3188_v43, %v3189_v18 }
 0x46d   :  { %v3196_v5 = vmax.f32 %v3194_v58, %v3195_v29  ;;  %v3201_v35 = vrot.slane %v3200_v45, 2 }
 0x46e   :  { %v3186_v40 = vmax.f32 %v3184_v24, %v3185_v49  ;;  %v3191_v11 = vrot.slane %v3190_v3, 1 }
 0x46f   :  { %v3197_v46 = vrot.slane %v3196_v5, 1  ;;  %v3202_v36 = vmax.f32 %v3200_v45, %v3201_v35 }
 0x470   :  { %vm3279_vm3 = vcmp.eq.f32.partialorder %v2504_v7, %v3186_v40  ;;  %v3192_v61 = vmax.f32 %v3190_v3, %v3191_v11  ;;  %v6110_v7 = vld [vmem:[%s6681_s1] sm:$0xff] }
 0x471   :  { %v3295_v23 = vsel %vm3279_vm3, %v6099_v33, 8  ;;  %v3198_v26 = vmax.f32 %v3196_v5, %v3197_v46  ;;  %v3203_v12 = vrot.slane %v3202_v36, 1  ;;  %v6118_v20 = vrot.slane %v6110_v7, %v6104_v42 }
 0x472   :  { %v3311_v6 = vrot.slane %v3295_v23, 4  ;;  %vm3280_vm4 = vcmp.eq.f32.partialorder %v2506_v9, %v3192_v61  ;;  %v3463_v9 = vsub.s32 1, %v6099_v33  ;;  %v6131_v10 = vrot.slane %v6110_v7, %v3471_v14 }
 0x473   :  { %vm3281_vm5 = vcmp.eq.f32.partialorder %v2545_v56, %v3198_v26  ;;  %v3296_v55 = vsel %vm3280_vm4, %v6099_v33, 8  ;;  %v3204_v37 = vmax.f32 %v3202_v36, %v3203_v12  ;;  %vm3537_vm14 = vcmp.eq.s32.totalorder %v6099_v33, %v6118_v20 }
 0x474   :  { %vm3312_vm6 = vcmp.lt.s32.totalorder %v3295_v23, %v3311_v6  ;;  %v3297_v13 = vsel %vm3281_vm5, %v6099_v33, 8  ;;  %v3320_v32 = vrot.slane %v3296_v55, 4  ;;  %v3464_v2 = vrot.slane %v6110_v7, %v3463_v9 }
 0x475   :  { %v3313_v38 = vsel %vm3312_vm6, %v3295_v23, %v3311_v6  ;;  %v3329_v44 = vrot.slane %v3297_v13, 4  ;;  %vm3282_vm7 = vcmp.eq.f32.partialorder %v2547_v63, %v3204_v37  ;;  %v6123_v63 = vrot.slane %v6110_v7, %v3467_v15 }
 0x476   :  { %v3314_v56 = vrot.slane %v3313_v38, 2  ;;  %vm3321_vm8 = vcmp.lt.s32.totalorder %v3296_v55, %v3320_v32  ;;  %v3298_v54 = vsel %vm3282_vm7, %v6099_v33, 8  ;;  %vm3538_vm15 = vcmp.eq.s32.totalorder %v6099_v33, %v3464_v2 }
 0x477   :  { %vm3330_vm9 = vcmp.lt.s32.totalorder %v3297_v13, %v3329_v44  ;;  %v3322_v8 = vsel %vm3321_vm8, %v3296_v55, %v3320_v32  ;;  %v3338_v47 = vrot.slane %v3298_v54, 4  ;;  %vm3540_vm3 = vcmp.eq.s32.totalorder %v6099_v33, %v6131_v10 }
 0x478   :  { %vm3315_vm10 = vcmp.lt.s32.totalorder %v3313_v38, %v3314_v56  ;;  %v3331_v28 = vsel %vm3330_vm9, %v3297_v13, %v3329_v44  ;;  %v3323_v34 = vrot.slane %v3322_v8, 2 }
 0x479   :  { %v3332_v43 = vrot.slane %v3331_v28, 2  ;;  %vm3339_vm11 = vcmp.lt.s32.totalorder %v3298_v54, %v3338_v47  ;;  %v3316_v25 = vsel %vm3315_vm10, %v3313_v38, %v3314_v56 }
 0x47a   :  { %v3340_v58 = vsel %vm3339_vm11, %v3298_v54, %v3338_v47  ;;  %vm3324_vm12 = vcmp.lt.s32.totalorder %v3322_v8, %v3323_v34  ;;  %v3317_v24 = vrot.slane %v3316_v25, 1 }
 0x47b   :  { %vm3333_vm13 = vcmp.lt.s32.totalorder %v3331_v28, %v3332_v43  ;;  %v3341_v18 = vrot.slane %v3340_v58, 2  ;;  %v3325_v41 = vsel %vm3324_vm12, %v3322_v8, %v3323_v34 }
 0x47c   :  { %v3326_v29 = vrot.slane %v3325_v41, 1  ;;  %vm3318_vm0 = vcmp.lt.s32.totalorder %v3316_v25, %v3317_v24  ;;  %v3334_v45 = vsel %vm3333_vm13, %v3331_v28, %v3332_v43 }
 0x47d   :  { %vm3342_vm2 = vcmp.lt.s32.totalorder %v3340_v58, %v3341_v18  ;;  %v3319_v49 = vsel %vm3318_vm0, %v3316_v25, %v3317_v24  ;;  %v3335_v3 = vrot.slane %v3334_v45, 1 }
 0x47e   :  { %vm3327_vm4 = vcmp.lt.s32.totalorder %v3325_v41, %v3326_v29  ;;  %v3343_v35 = vsel %vm3342_vm2, %v3340_v58, %v3341_v18  ;;  %vm3521_vm5 = vcmp.eq.s32.totalorder %v3319_v49, %v6118_v20 }
 0x47f   :  { %v3328_v46 = vsel %vm3327_vm4, %v3325_v41, %v3326_v29  ;;  %v3344_v36 = vrot.slane %v3343_v35, 1  ;;  %v3553_v61 = vsel %vm3521_vm5, 1, %v6800_v4  ;;  %vm6147_vm7 = vcmp.lt.s32.totalorder %v3334_v45, %v3335_v3 }
 0x480   :  { %v2585_v5 = vpop.f32.mrf.mxu0  ;;  %vm3522_vm6 = vcmp.eq.s32.totalorder %v3328_v46, %v3464_v2  ;;  %v3572_v12 = vrot.slane %v3553_v61, %v6104_v42  ;;  %v4523_v61 = vmov 1.0|1.0   ;;  %vm3539_vm5 = vcmp.eq.s32.totalorder %v6099_v33, %v6123_v63 }
 0x481   :  { %v6140_v40 = vadd.f32 %v2585_v5, %v6093_v50  ;;  %v2626_v11 = vpop.f32.mrf.mxu1  ;;  %v3554_v32 = vsel %vm3522_vm6, 1, %v6800_v4  ;;  %vm3345_vm8 = vcmp.lt.s32.totalorder %v3343_v35, %v3344_v36 }
 0x482   :  { %v6144_v23 = vadd.f32 %v2626_v11, %v6093_v50  ;;  %v2587_v26 = vpop.f32.mrf.mxu0  ;;  %v3576_v54 = vrot.slane %v3554_v32, %v6104_v42  ;;  %v3346_v8 = vsel %vm3345_vm8, %v3343_v35, %v3344_v36  ;;  %vm3633_vm10 = vcmp.eq.s32.totalorder %v3572_v12, 1 }
 0x483   :  { %3169 = vst [vmem:[#allocation7 + $0x20] sm:$0xff] %v6140_v40  ;;  %v3205_v55 = vrot.slane %v6140_v40, 4  ;;  %v6154_v37 = vadd.f32 %v2587_v26, %v6093_v50  ;;  %v2628_v13 = vpop.f32.mrf.mxu1  ;;  %vm3524_vm9 = vcmp.eq.s32.totalorder %v3346_v8, %v6131_v10  ;;  %vm6174_vm12 = vmand %vm3537_vm14, %vm3633_vm10  ;;  %v3337_v35 = vsel %vm6147_vm7, %v3334_v45, %v3335_v3 }
 0x484   :  { %3171 = vst [vmem:[#allocation7 + $0x30] sm:$0xff] %v6144_v23  ;;  %v3217_v38 = vrot.slane %v6144_v23, 4  ;;  %v6160_v44 = vadd.f32 %v2628_v13, %v6093_v50  ;;  %v2589_v56 = vpop.f32.mrf.mxu0  ;;  %vm3634_vm11 = vcmp.eq.s32.totalorder %v3576_v54, 1  ;;  %v3556_v24 = vsel %vm3524_vm9, 1, %v6800_v4 }
 0x485   :  { %v3206_v47 = vmax.f32 %v6140_v40, %v3205_v55  ;;  %3170 = vst [vmem:[#allocation7 + $0x28] sm:$0xff] %v6154_v37  ;;  %v3211_v28 = vrot.slane %v6154_v37, 4  ;;  %v2630_v34 = vpop.f32.mrf.mxu1  ;;  %vm3650_vm13 = vmand %vm3538_vm15, %vm3634_vm11  ;;  %v3584_v5 = vrot.slane %v3556_v24, %v6104_v42  ;;  %vm3523_vm14 = vcmp.eq.s32.totalorder %v3337_v35, %v6123_v63 }
 0x486   :  { %v3218_v43 = vmax.f32 %v6144_v23, %v3217_v38  ;;  %3172 = vst [vmem:[#allocation7 + $0x38] sm:$0xff] %v6160_v44  ;;  %v3223_v25 = vrot.slane %v6160_v44, 4  ;;  %v2590_v58 = vpop.f32.mrf.mxu0  ;;  %vm4345_vm0 = vmpackc.low %vm3650_vm13, %vm3650_vm13  ;;  %v3555_v2 = vsel %vm3523_vm14, 1, %v6800_v4  ;;  %v6911_v34 = vpack.c.bf16 %v5670_v16, %v5648_v52 }
 0x487   :  { %v3207_v41 = vrot.slane %v3206_v47, 2  ;;  %v3212_v29 = vmax.f32 %v6154_v37, %v3211_v28  ;;  %v2631_v49 = vpop.f32.mrf.mxu1  ;;  %4346 = vmatprep.subr.msk.bf16.mxu0 %vm4345_vm0, %v4523_v61  ;;  %vm3636_vm2 = vcmp.eq.s32.totalorder %v3584_v5, 1  ;;  %vm4347_vm15 = vmpackc.low %vm6174_vm12, %vm6174_vm12  ;;  %v3580_v3 = vrot.slane %v3555_v2, %v6104_v42  ;;  %v6913_v5 = vld [vmem:[#allocation16_spill] sm:$0xff] }
 0x488   :  { %v3219_v11 = vrot.slane %v3218_v43, 2  ;;  %v3224_v46 = vmax.f32 %v6160_v44, %v3223_v25  ;;  %vm3652_vm4 = vmand %vm3540_vm3, %vm3636_vm2  ;;  %4348 = vmatpush1.bf16.xpose.msk.msra.mxu0 %vm4347_vm15, %v4523_v61  ;;  %v3483_v58 = vsub.s32 6, %v6099_v33  ;;  %v3479_v52 = vsub.s32 5, %v6099_v33 }
 0x489   :  { %v3208_v20 = vmax.f32 %v3206_v47, %v3207_v41  ;;  %v3213_v36 = vrot.slane %v3212_v29, 2  ;;  %vm4349_vm6 = vmpackc.low %vm3652_vm4, %vm3652_vm4  ;;  %vm3635_vm7 = vcmp.eq.s32.totalorder %v3580_v3, 1  ;;  %v3487_v41 = vsub.s32 7, %v6099_v33  ;;  %v6247_v3 = vld [vmem:[%s6681_s1 + $0x8] sm:$0xff] }
 0x48a   :  { %v3220_v26 = vmax.f32 %v3218_v43, %v3219_v11  ;;  %v3225_v45 = vrot.slane %v3224_v46, 2  ;;  %4350 = vmatprep.subr.msk.bf16.mxu1 %vm4349_vm6, %v4523_v61  ;;  %vm3651_vm8 = vmand %vm3539_vm5, %vm3635_vm7  ;;  %v3475_v43 = vsub.s32 4, %v6099_v33  ;;  %v6914_v35 = vpack.c.bf16 %v5683_v22, %v6913_v5 }
 0x48b   :  { %v3209_v12 = vrot.slane %v3208_v20, 1  ;;  %v3214_v6 = vmax.f32 %v3212_v29, %v3213_v36  ;;  %vm4351_vm3 = vmpackc.low %vm3651_vm8, %vm3651_vm8  ;;  %v6229_v11 = vrot.slane %v6110_v7, %v3483_v58  ;;  %v6915_v36 = vpack.c.bf16 %v5713_v60, %v5709_v31 }
 0x48c   :  { %v3221_v55 = vrot.slane %v3220_v26, 1  ;;  %v3226_v13 = vmax.f32 %v3224_v46, %v3225_v45  ;;  %4352 = vmatpush1.bf16.xpose.msk.msra.mxu1 %vm4351_vm3, %v4523_v61  ;;  %v6237_v2 = vrot.slane %v6110_v7, %v3479_v52  ;;  %v6916_v60 = vpack.c.bf16 %v6847_v53, %v5721_v51 }
 0x48d   :  { %v3210_v32 = vmax.f32 %v3208_v20, %v3209_v12  ;;  %v3215_v38 = vrot.slane %v3214_v6, 1 }
 0x48e   :  { %v3222_v10 = vmax.f32 %v3220_v26, %v3221_v55  ;;  %v3227_v56 = vrot.slane %v3226_v13, 1  ;;  %v6242_v26 = vrot.slane %v6110_v7, %v3487_v41  ;;  %vm3542_vm6 = vcmp.eq.s32.totalorder %v6099_v33, %v6237_v2 }
 0x48f   :  { %vm3283_vm9 = vcmp.eq.f32.partialorder %v6140_v40, %v3210_v32  ;;  %v3216_v54 = vmax.f32 %v3214_v6, %v3215_v38  ;;  %3763 = vmatmul.mubr.bf16.vlgmr.msra.gmra.mxu0 %v6911_v34 }
 0x490   :  { %v3299_v63 = vsel %vm3283_vm9, %v6099_v33, 8  ;;  %vm3285_vm10 = vcmp.eq.f32.partialorder %v6144_v23, %v3222_v10  ;;  %v3228_v8 = vmax.f32 %v3226_v13, %v3227_v56  ;;  %v6912_v23 = vpack.c.bf16 %v5701_v21, %v5691_v39 }
 0x491   :  { %v3347_v47 = vrot.slane %v3299_v63, 4  ;;  %v3301_v28 = vsel %vm3285_vm10, %v6099_v33, 8  ;;  %vm3284_vm11 = vcmp.eq.f32.partialorder %v6154_v37, %v3216_v54  ;;  %v6221_v39 = vrot.slane %v6110_v7, %v3475_v43 }
 0x492   :  { %v3365_v40 = vrot.slane %v3301_v28, 4  ;;  %v3300_v25 = vsel %vm3284_vm11, %v6099_v33, 8  ;;  %vm3286_vm12 = vcmp.eq.f32.partialorder %v6160_v44, %v3228_v8  ;;  %3770 = vmatprep.mubr.bf16.mxu0 %v6912_v23  ;;  %v6259_v7 = vrot.slane %v6247_v3, %v3463_v9 }
 0x493   :  { %vm3348_vm13 = vcmp.lt.s32.totalorder %v3299_v63, %v3347_v47  ;;  %v3356_v24 = vrot.slane %v3300_v25, 4  ;;  %v3302_v37 = vsel %vm3286_vm12, %v6099_v33, 8  ;;  %3819 = vmatmul.mubr.bf16.vlgmr.msra.gmra.mxu1 %v6914_v35  ;;  %vm3544_vm8 = vcmp.eq.s32.totalorder %v6099_v33, %v6242_v26 }
 0x494   :  { %v3349_v16 = vsel %vm3348_vm13, %v3299_v63, %v3347_v47  ;;  %vm3366_vm0 = vcmp.lt.s32.totalorder %v3301_v28, %v3365_v40  ;;  %v3374_v18 = vrot.slane %v3302_v37, 4  ;;  %3826 = vmatprep.mubr.bf16.mxu1 %v6915_v36  ;;  %vm3541_vm11 = vcmp.eq.s32.totalorder %v6099_v33, %v6221_v39 }
 0x495   :  { %v3350_v29 = vrot.slane %v3349_v16, 2  ;;  %v3367_v49 = vsel %vm3366_vm0, %v3301_v28, %v3365_v40  ;;  %vm3357_vm14 = vcmp.lt.s32.totalorder %v3300_v25, %v3356_v24 }
 0x496   :  { %v3368_v21 = vrot.slane %v3367_v49, 2  ;;  %v3358_v44 = vsel %vm3357_vm14, %v3300_v25, %v3356_v24  ;;  %vm3375_vm2 = vcmp.lt.s32.totalorder %v3302_v37, %v3374_v18 }
 0x497   :  { %vm3351_vm15 = vcmp.lt.s32.totalorder %v3349_v16, %v3350_v29  ;;  %v3359_v46 = vrot.slane %v3358_v44, 2  ;;  %v3376_v20 = vsel %vm3375_vm2, %v3302_v37, %v3374_v18  ;;  %3771 = vmatmul.mubr.bf16.gmra.mxu0 %v6916_v60  ;;  %v6917_v37 = vld [vmem:[#allocation40_spill] sm:$0xff] }
 0x498   :  { %vm3369_vm4 = vcmp.lt.s32.totalorder %v3367_v49, %v3368_v21  ;;  %v3377_v22 = vrot.slane %v3376_v20, 2  ;;  %v3352_v45 = vsel %vm3351_vm15, %v3349_v16, %v3350_v29  ;;  %3778 = vmatprep.mubr.bf16.mxu0 %v4523_v61  ;;  %v6918_v16 = vld [vmem:[#allocation15_spill] sm:$0xff] }
 0x499   :  { %vm3360_vm5 = vcmp.lt.s32.totalorder %v3358_v44, %v3359_v46  ;;  %v3353_v12 = vrot.slane %v3352_v45, 1  ;;  %v6254_v6 = vsel %vm3369_vm4, %v3367_v49, %v3368_v21  ;;  %v6919_v18 = vpack.c.bf16 %v6917_v37, %v6918_v16 }
 0x49a   :  { %v2667_v31 = vpop.f32.mrf.mxu0  ;;  %v3361_v32 = vsel %vm3360_vm5, %v3358_v44, %v3359_v46  ;;  %vm3378_vm7 = vcmp.lt.s32.totalorder %v3376_v20, %v3377_v22  ;;  %v3371_v51 = vrot.slane %v6254_v6, 1 }
 0x49b   :  { %v6262_v55 = vadd.f32 %v2667_v31, %v6093_v50  ;;  %v2708_v13 = vpop.f32.mrf.mxu1  ;;  %v3362_v10 = vrot.slane %v3361_v32, 1  ;;  %v3379_v56 = vsel %vm3378_vm7, %v3376_v20, %v3377_v22  ;;  %vm3354_vm3 = vcmp.lt.s32.totalorder %v3352_v45, %v3353_v12  ;;  %3827 = vmatmul.mubr.bf16.gmra.mxu1 %v6919_v18 }
 0x49c   :  { %v6267_v53 = vadd.f32 %v2708_v13, %v6093_v50  ;;  %v2669_v38 = vpop.f32.mrf.mxu0  ;;  %v3380_v8 = vrot.slane %v3379_v56, 1  ;;  %v3355_v47 = vsel %vm3354_vm3, %v3352_v45, %v3353_v12  ;;  %3834 = vmatprep.mubr.bf16.mxu1 %v4523_v61  ;;  %vm3372_vm4 = vcmp.lt.s32.totalorder %v6254_v6, %v3371_v51 }
 0x49d   :  { %3173 = vst [vmem:[#allocation7 + $0x40] sm:$0xff] %v6262_v55  ;;  %v3229_v9 = vrot.slane %v6262_v55, 4  ;;  %v6274_v54 = vadd.f32 %v2669_v38, %v6093_v50  ;;  %v2710_v63 = vpop.f32.mrf.mxu1  ;;  %vm3363_vm9 = vcmp.lt.s32.totalorder %v3361_v32, %v3362_v10  ;;  %vm3525_vm10 = vcmp.eq.s32.totalorder %v3355_v47, %v6221_v39 }
 0x49e   :  { %3175 = vst [vmem:[#allocation7 + $0x50] sm:$0xff] %v6267_v53  ;;  %v3241_v28 = vrot.slane %v6267_v53, 4  ;;  %v6279_v34 = vadd.f32 %v2710_v63, %v6093_v50  ;;  %v2671_v40 = vpop.f32.mrf.mxu0  ;;  %v3364_v29 = vsel %vm3363_vm9, %v3361_v32, %v3362_v10  ;;  %vm3381_vm12 = vcmp.lt.s32.totalorder %v3379_v56, %v3380_v8 }
 0x49f   :  { %v3230_v25 = vmax.f32 %v6262_v55, %v3229_v9  ;;  %3174 = vst [vmem:[#allocation7 + $0x48] sm:$0xff] %v6274_v54  ;;  %v3235_v23 = vrot.slane %v6274_v54, 4  ;;  %v2712_v24 = vpop.f32.mrf.mxu1  ;;  %vm3526_vm13 = vcmp.eq.s32.totalorder %v3364_v29, %v6237_v2  ;;  %v3382_v5 = vsel %vm3381_vm12, %v3379_v56, %v3380_v8  ;;  %3779 = vmatmul.mubr.bf16.gmra.mxu0 %v4523_v61 }
 0x4a0   :  { %v3242_v49 = vmax.f32 %v6267_v53, %v3241_v28  ;;  %3176 = vst [vmem:[#allocation7 + $0x58] sm:$0xff] %v6279_v34  ;;  %v3247_v21 = vrot.slane %v6279_v34, 4  ;;  %v2672_v44 = vpop.f32.mrf.mxu0  ;;  %v3558_v36 = vsel %vm3526_vm13, 1, %v6800_v4  ;;  %vm3528_vm0 = vcmp.eq.s32.totalorder %v3382_v5, %v6242_v26 }
 0x4a1   :  { %v3231_v35 = vrot.slane %v3230_v25, 2  ;;  %v3236_v46 = vmax.f32 %v6274_v54, %v3235_v23  ;;  %v2713_v20 = vpop.f32.mrf.mxu1  ;;  %v3592_v31 = vrot.slane %v3558_v36, %v6104_v42  ;;  %v3560_v60 = vsel %vm3528_vm0, 1, %v6800_v4 }
 0x4a2   :  { %v3243_v22 = vrot.slane %v3242_v49, 2  ;;  %v3248_v45 = vmax.f32 %v6279_v34, %v3247_v21  ;;  %v3600_v32 = vrot.slane %v3560_v60, %v6104_v42  ;;  %v3557_v38 = vsel %vm3525_vm10, 1, %v6800_v4 }
 0x4a3   :  { %v3232_v12 = vmax.f32 %v3230_v25, %v3231_v35  ;;  %v3237_v13 = vrot.slane %v3236_v46, 2  ;;  %v6920_v10 = vpack.c.bf16 %v5743_v17, %v5736_v19  ;;  %vm3638_vm14 = vcmp.eq.s32.totalorder %v3592_v31, 1  ;;  %3835 = vmatmul.mubr.bf16.gmra.mxu1 %v4523_v61  ;;  %v6938_v19 = vld [vmem:[#allocation22_spill] sm:$0xff] }
 0x4a4   :  { %v3244_v56 = vmax.f32 %v3242_v49, %v3243_v22  ;;  %v3249_v9 = vrot.slane %v3248_v45, 2  ;;  %v3588_v63 = vrot.slane %v3557_v38, %v6104_v42  ;;  %vm3654_vm2 = vmand %vm3542_vm6, %vm3638_vm14  ;;  %vm3640_vm15 = vcmp.eq.s32.totalorder %v3600_v32, 1 }
 0x4a5   :  { %3874 = vmatprep.mubr.bf16.mxu0 %v6920_v10  ;;  %v3233_v8 = vrot.slane %v3232_v12, 1  ;;  %v3238_v28 = vmax.f32 %v3236_v46, %v3237_v13  ;;  %vm4353_vm5 = vmpackc.low %vm3654_vm2, %vm3654_vm2  ;;  %v3373_v17 = vsel %vm3372_vm4, %v6254_v6, %v3371_v51  ;;  %v6332_v2 = vrot.slane %v6247_v3, %v3471_v14 }
 0x4a6   :  { %v3245_v47 = vrot.slane %v3244_v56, 1  ;;  %v3250_v40 = vmax.f32 %v3248_v45, %v3249_v9  ;;  %vm6316_vm7 = vcmp.eq.s32.totalorder %v3588_v63, 1  ;;  %4354 = vmatprep.subr.msk.bf16.mxu0 %vm4353_vm5, %v4523_v61  ;;  %vm3656_vm6 = vmand %vm3544_vm8, %vm3640_vm15  ;;  %vm3527_vm3 = vcmp.eq.s32.totalorder %v3373_v17, %v6229_v11 }
 0x4a7   :  { %v3234_v25 = vmax.f32 %v3232_v12, %v3233_v8  ;;  %v3239_v23 = vrot.slane %v3238_v28, 1  ;;  %vm4357_vm9 = vmpackc.low %vm3656_vm6, %vm3656_vm6  ;;  %v3559_v6 = vsel %vm3527_vm3, 1, %v6800_v4  ;;  %v6923_v51 = vpack.c.bf16 %v5752_v59, %v5748_v27 }
 0x4a8   :  { %v3246_v24 = vmax.f32 %v3244_v56, %v3245_v47  ;;  %v3251_v37 = vrot.slane %v3250_v40, 1  ;;  %v6340_v26 = vrot.slane %v6247_v3, %v6104_v42  ;;  %4358 = vmatprep.subr.msk.bf16.mxu1 %vm4357_vm9, %v4523_v61  ;;  %vm6349_vm10 = vmand %vm3541_vm11, %vm6316_vm7  ;;  %vm3543_vm12 = vcmp.eq.s32.totalorder %v6099_v33, %v6229_v11 }
 0x4a9   :  { %3930 = vmatprep.mubr.bf16.mxu1 %v6923_v51  ;;  %vm3287_vm8 = vcmp.eq.f32.partialorder %v6262_v55, %v3234_v25  ;;  %v3240_v16 = vmax.f32 %v3238_v28, %v3239_v23  ;;  %v6358_v27 = vrot.slane %v6247_v3, %v3467_v15  ;;  %v6363_v59 = vrot.slane %v6247_v3, %v3479_v52  ;;  %vm4355_vm13 = vmpackc.low %vm6349_vm10, %vm6349_vm10 }
 0x4aa   :  { %v3303_v55 = vsel %vm3287_vm8, %v6099_v33, 8  ;;  %vm3289_vm11 = vcmp.eq.f32.partialorder %v6267_v53, %v3246_v24  ;;  %v3252_v39 = vmax.f32 %v3250_v40, %v3251_v37  ;;  %v2749_v18 = vpop.f32.mrf.mxu0  ;;  %v3596_v29 = vrot.slane %v3559_v6, %v6104_v42  ;;  %4356 = vmatpush1.bf16.xpose.msk.msra.mxu0 %vm4355_vm13, %v4523_v61  ;;  %v6928_v24 = vld [vmem:[#allocation17_spill] sm:$0xff]  ;;  %v6929_v37 = vld [vmem:[#allocation38_spill] sm:$0xff] }
 0x4ab   :  { %v3383_v49 = vrot.slane %v3303_v55, 4  ;;  %v3305_v15 = vsel %vm3289_vm11, %v6099_v33, 8  ;;  %vm3288_vm0 = vcmp.eq.f32.partialorder %v6274_v54, %v3240_v16  ;;  %v6374_v52 = vadd.f32 %v2749_v18, %v6093_v50  ;;  %v2790_v21 = vpop.f32.mrf.mxu1 }
 0x4ac   :  { %v3401_v53 = vrot.slane %v3305_v15, 4  ;;  %v3304_v44 = vsel %vm3288_vm0, %v6099_v33, 8  ;;  %vm3290_vm14 = vcmp.eq.f32.partialorder %v6279_v34, %v3252_v39  ;;  %v6380_v5 = vadd.f32 %v2790_v21, %v6093_v50  ;;  %v2751_v35 = vpop.f32.mrf.mxu0 }
 0x4ad   :  { %vm3384_vm2 = vcmp.lt.s32.totalorder %v3303_v55, %v3383_v49  ;;  %v3392_v46 = vrot.slane %v3304_v44, 4  ;;  %v3306_v20 = vsel %vm3290_vm14, %v6099_v33, 8  ;;  %3177 = vst [vmem:[#allocation7 + $0x60] sm:$0xff] %v6374_v52  ;;  %v3253_v54 = vrot.slane %v6374_v52, 4  ;;  %v2792_v36 = vpop.f32.mrf.mxu1 }
 0x4ae   :  { %v3385_v22 = vsel %vm3384_vm2, %v3303_v55, %v3383_v49  ;;  %vm3402_vm15 = vcmp.lt.s32.totalorder %v3305_v15, %v3401_v53  ;;  %v3410_v45 = vrot.slane %v3306_v20, 4  ;;  %3179 = vst [vmem:[#allocation7 + $0x70] sm:$0xff] %v6380_v5  ;;  %v3265_v34 = vrot.slane %v6380_v5, 4  ;;  %v2753_v31 = vpop.f32.mrf.mxu0 }
 0x4af   :  { %v3386_v60 = vrot.slane %v3385_v22, 2  ;;  %v6387_v12 = vsel %vm3402_vm15, %v3305_v15, %v3401_v53  ;;  %vm3393_vm4 = vcmp.lt.s32.totalorder %v3304_v44, %v3392_v46  ;;  %v3254_v13 = vmax.f32 %v6374_v52, %v3253_v54  ;;  %v2794_v32 = vpop.f32.mrf.mxu1 }
 0x4b0   :  { %v3394_v38 = vsel %vm3393_vm4, %v3304_v44, %v3392_v46  ;;  %vm3411_vm5 = vcmp.lt.s32.totalorder %v3306_v20, %v3410_v45  ;;  %v3266_v10 = vmax.f32 %v6380_v5, %v3265_v34  ;;  %v2754_v56 = vpop.f32.mrf.mxu0  ;;  %v6394_v9 = vrot.slane %v6247_v3, %v3475_v43 }
 0x4b1   :  { %v3404_v63 = vrot.slane %v6387_v12, 2  ;;  %v3395_v8 = vrot.slane %v3394_v38, 2  ;;  %v3412_v28 = vsel %vm3411_vm5, %v3306_v20, %v3410_v45  ;;  %v3255_v47 = vrot.slane %v3254_v13, 2  ;;  %v2795_v40 = vpop.f32.mrf.mxu1  ;;  %v6952_v56 = vld [vmem:[#allocation19_spill] sm:$0xff] }
 0x4b2   :  { %vm6397_vm7 = vcmp.lt.s32.totalorder %v3385_v22, %v3386_v60  ;;  %v3413_v17 = vrot.slane %v3412_v28, 2  ;;  %v3267_v25 = vrot.slane %v3266_v10, 2  ;;  %v6402_v23 = vadd.f32 %v2751_v35, %v6093_v50 }
 0x4b3   :  { %v6930_v6 = vpack.c.bf16 %v6928_v24, %v6929_v37  ;;  %v3256_v43 = vmax.f32 %v3254_v13, %v3255_v47  ;;  %v6408_v51 = vadd.f32 %v2792_v36, %v6093_v50  ;;  %vm3639_vm6 = vcmp.eq.s32.totalorder %v3596_v29, 1 }
 0x4b4   :  { %vm3396_vm3 = vcmp.lt.s32.totalorder %v3394_v38, %v3395_v8  ;;  %vm3546_vm9 = vcmp.eq.s32.totalorder %v6099_v33, %v6259_v7  ;;  %v6931_v16 = vpack.c.bf16 %v5793_v30, %v5782_v1  ;;  %v3268_v14 = vmax.f32 %v3266_v10, %v3267_v25  ;;  %3178 = vst [vmem:[#allocation7 + $0x68] sm:$0xff] %v6402_v23  ;;  %vm3655_vm8 = vmand %vm3543_vm12, %vm3639_vm6 }
 0x4b5   :  { %3875 = vmatmul.mubr.bf16.vlgmr.msra.gmra.mxu0 %v6930_v6  ;;  %v3259_v55 = vrot.slane %v6402_v23, 4  ;;  %v3397_v50 = vsel %vm3396_vm3, %v3394_v38, %v3395_v8  ;;  %vm3414_vm10 = vcmp.lt.s32.totalorder %v3412_v28, %v3413_v17  ;;  %v3257_v39 = vrot.slane %v3256_v43, 1  ;;  %3180 = vst [vmem:[#allocation7 + $0x78] sm:$0xff] %v6408_v51  ;;  %vm4359_vm11 = vmpackc.low %vm3655_vm8, %vm3655_vm8 }
 0x4b6   :  { %3882 = vmatprep.mubr.bf16.mxu0 %v6931_v16  ;;  %v3271_v18 = vrot.slane %v6408_v51, 4  ;;  %v3398_v29 = vrot.slane %v3397_v50, 1  ;;  %v3415_v1 = vsel %vm3414_vm10, %v3412_v28, %v3413_v17  ;;  %v3269_v30 = vrot.slane %v3268_v14, 1  ;;  %4360 = vmatpush1.bf16.xpose.msk.msra.mxu1 %vm4359_vm11, %v4523_v61  ;;  %v6939_v17 = vld [vmem:[#allocation20_spill] sm:$0xff] }
 0x4b7   :  { %v3260_v49 = vmax.f32 %v6402_v23, %v3259_v55  ;;  %v3416_v15 = vrot.slane %v3415_v1, 1  ;;  %vm3548_vm13 = vcmp.eq.s32.totalorder %v6099_v33, %v6332_v2  ;;  %v3388_v11 = vsel %vm6397_vm7, %v3385_v22, %v3386_v60 }
 0x4b8   :  { %v3258_v21 = vmax.f32 %v3256_v43, %v3257_v39  ;;  %v3272_v53 = vmax.f32 %v6408_v51, %v3271_v18  ;;  %vm3399_vm12 = vcmp.lt.s32.totalorder %v3397_v50, %v3398_v29  ;;  %v3389_v44 = vrot.slane %v3388_v11, 1  ;;  %v6944_v39 = vld [vmem:[#allocation23_spill] sm:$0xff] }
 0x4b9   :  { %vm6432_vm0 = vcmp.lt.s32.totalorder %v6387_v12, %v3404_v63  ;;  %v3270_v46 = vmax.f32 %v3268_v14, %v3269_v30  ;;  %v3261_v20 = vrot.slane %v3260_v49, 2  ;;  %v3400_v54 = vsel %vm3399_vm12, %v3397_v50, %v3398_v29 }
 0x4ba   :  { %vm3417_vm14 = vcmp.lt.s32.totalorder %v3415_v1, %v3416_v15  ;;  %vm3291_vm2 = vcmp.eq.f32.partialorder %v6374_v52, %v3258_v21  ;;  %v3273_v36 = vrot.slane %v3272_v53, 2  ;;  %vm3530_vm15 = vcmp.eq.s32.totalorder %v3400_v54, %v6259_v7 }
 0x4bb   :  { %v3418_v22 = vsel %vm3417_vm14, %v3415_v1, %v3416_v15  ;;  %v3307_v45 = vsel %vm3291_vm2, %v6099_v33, 8  ;;  %vm3293_vm4 = vcmp.eq.f32.partialorder %v6380_v5, %v3270_v46  ;;  %v3262_v34 = vmax.f32 %v3260_v49, %v3261_v20 }
 0x4bc   :  { %v3562_v31 = vsel %vm3530_vm15, 1, %v6800_v4  ;;  %vm3545_vm5 = vcmp.eq.s32.totalorder %v6099_v33, %v6340_v26  ;;  %v6934_v60 = vpack.c.bf16 %v6872_v0, %v5810_v57  ;;  %v3419_v13 = vrot.slane %v3307_v45, 4 }
 0x4bd   :  { %v3309_v52 = vsel %vm3293_vm4, %v6099_v33, 8  ;;  %v3274_v32 = vmax.f32 %v3272_v53, %v3273_v36  ;;  %v3608_v38 = vrot.slane %v3562_v31, %v6104_v42  ;;  %v3263_v5 = vrot.slane %v3262_v34, 1 }
 0x4be   :  { %3883 = vmatmul.mubr.bf16.gmra.mxu0 %v6934_v60  ;;  %v3437_v10 = vrot.slane %v3309_v52, 4  ;;  %vm3532_vm7 = vcmp.eq.s32.totalorder %v3418_v22, %v6332_v2  ;;  %vm6450_vm6 = vcmp.lt.s32.totalorder %v3388_v11, %v3389_v44  ;;  %vm3420_vm3 = vcmp.lt.s32.totalorder %v3307_v45, %v3419_v13 }
 0x4bf   :  { %3890 = vmatprep.mubr.bf16.mxu0 %v4523_v61  ;;  %v3275_v8 = vrot.slane %v3274_v32, 1  ;;  %v6937_v57 = vpack.c.bf16 %v5778_v62, %v5767_v48  ;;  %vm3642_vm8 = vcmp.eq.s32.totalorder %v3608_v38, 1  ;;  %v3564_v0 = vsel %vm3532_vm7, 1, %v6800_v4 }
 0x4c0   :  { %v3421_v28 = vsel %vm3420_vm3, %v3307_v45, %v3419_v13  ;;  %vm3438_vm10 = vcmp.lt.s32.totalorder %v3309_v52, %v3437_v10  ;;  %v3264_v47 = vmax.f32 %v3262_v34, %v3263_v5  ;;  %vm3658_vm11 = vmand %vm3546_vm9, %vm3642_vm8  ;;  %v3616_v40 = vrot.slane %v3564_v0, %v6104_v42  ;;  %v6951_v5 = vld [vmem:[#allocation39_spill] sm:$0xff]  ;;  %v6955_v0 = vld [vmem:[#allocation29_spill] sm:$0xff] }
 0x4c1   :  { %3931 = vmatmul.mubr.bf16.vlgmr.msra.gmra.mxu1 %v6937_v57  ;;  %v6940_v25 = vpack.c.bf16 %v6938_v19, %v6939_v17  ;;  %v3422_v24 = vrot.slane %v3421_v28, 2  ;;  %v3439_v37 = vsel %vm3438_vm10, %v3309_v52, %v3437_v10  ;;  %v3276_v48 = vmax.f32 %v3274_v32, %v3275_v8  ;;  %vm4361_vm12 = vmpackc.low %vm3658_vm11, %vm3658_vm11  ;;  %v6954_v57 = vld [vmem:[#allocation26_spill] sm:$0xff]  ;;  %v6960_v19 = vld [vmem:[#allocation45_spill] sm:$0xff] }
 0x4c2   :  { %v3391_v62 = vsel %vm6450_vm6, %v3388_v11, %v3389_v44  ;;  %v3440_v6 = vrot.slane %v3439_v37, 2  ;;  %vm3292_vm14 = vcmp.eq.f32.partialorder %v6402_v23, %v3264_v47  ;;  %4362 = vmatprep.subr.msk.bf16.mxu0 %vm4361_vm12, %v4523_v61  ;;  %vm3644_vm2 = vcmp.eq.s32.totalorder %v3616_v40, 1  ;;  %v6946_v11 = vld [vmem:[#allocation48_spill] sm:$0xff]  ;;  %v6959_v40 = vld [vmem:[#allocation14_spill] sm:$0xff] }
 0x4c3   :  { %3938 = vmatprep.mubr.bf16.mxu1 %v6940_v25  ;;  %vm3529_vm9 = vcmp.eq.s32.totalorder %v3391_v62, %v6340_v26  ;;  %vm6470_vm15 = vcmp.lt.s32.totalorder %v3421_v28, %v3422_v24  ;;  %v3308_v43 = vsel %vm3292_vm14, %v6099_v33, 8  ;;  %vm3294_vm4 = vcmp.eq.f32.partialorder %v6408_v51, %v3276_v48  ;;  %vm3660_vm7 = vmand %vm3548_vm13, %vm3644_vm2  ;;  %v6943_v51 = vld [vmem:[#allocation18_spill] sm:$0xff]  ;;  %v6966_v48 = vld [vmem:[#allocation27_spill] sm:$0xff] }
 0x4c4   :  { %v3561_v16 = vsel %vm3529_vm9, 1, %v6800_v4  ;;  %vm3441_vm6 = vcmp.lt.s32.totalorder %v3439_v37, %v3440_v6  ;;  %v3428_v23 = vrot.slane %v3308_v43, 4  ;;  %v3310_v14 = vsel %vm3294_vm4, %v6099_v33, 8  ;;  %vm4365_vm3 = vmpackc.low %vm3660_vm7, %vm3660_vm7  ;;  %v6968_v62 = vld [vmem:[#allocation50_spill] sm:$0xff] }
 0x4c5   :  { %v3604_v55 = vrot.slane %v3561_v16, %v6104_v42  ;;  %vm3547_vm8 = vcmp.eq.s32.totalorder %v6099_v33, %v6358_v27  ;;  %v3446_v50 = vrot.slane %v3310_v14, 4  ;;  %4366 = vmatprep.subr.msk.bf16.mxu1 %vm4365_vm3, %v4523_v61  ;;  %v3406_v2 = vsel %vm6432_vm0, %v6387_v12, %v3404_v63  ;;  %v6947_v12 = vld [vmem:[#allocation21_spill] sm:$0xff]  ;;  %v6972_v16 = vld [vmem:[#allocation46_spill] sm:$0xff] }
 0x4c6   :  { %3891 = vmatmul.mubr.bf16.gmra.mxu0 %v4523_v61  ;;  %v6945_v18 = vpack.c.bf16 %v6943_v51, %v6944_v39  ;;  %v3424_v29 = vsel %vm6470_vm15, %v3421_v28, %v3422_v24  ;;  %v3442_v1 = vsel %vm3441_vm6, %v3439_v37, %v3440_v6  ;;  %vm3429_vm13 = vcmp.lt.s32.totalorder %v3308_v43, %v3428_v23  ;;  %v6963_v37 = vld [vmem:[#allocation30_spill] sm:$0xff]  ;;  %v6969_v6 = vld [vmem:[#allocation25_spill] sm:$0xff] }
 0x4c7   :  { %vm3641_vm10 = vcmp.eq.s32.totalorder %v3604_v55, 1  ;;  %v3407_v30 = vrot.slane %v3406_v2, 1  ;;  %v3425_v49 = vrot.slane %v3424_v29, 1  ;;  %v3430_v15 = vsel %vm3429_vm13, %v3308_v43, %v3428_v23  ;;  %v6971_v43 = vld [vmem:[#allocation51_spill] sm:$0xff]  ;;  %v6975_v55 = vld [vmem:[#allocation44_spill] sm:$0xff]  ;;  %v6978_v51 = vld [vmem:[#allocation54_spill] sm:$0xff] }
 0x4c8   :  { %3986 = vmatprep.mubr.bf16.mxu0 %v6945_v18  ;;  %vm3447_vm11 = vcmp.lt.s32.totalorder %v3310_v14, %v3446_v50  ;;  %vm3657_vm12 = vmand %vm3545_vm5, %vm3641_vm10  ;;  %v6948_v63 = vpack.c.bf16 %v6946_v11, %v6947_v12  ;;  %v3443_v21 = vrot.slane %v3442_v1, 1  ;;  %v3516_v53 = vrot.slane %v6247_v3, %v3483_v58  ;;  %v6980_v18 = vld [vmem:[#allocation35_spill] sm:$0xff]  ;;  %v6986_v11 = vld [vmem:[#allocation32_spill] sm:$0xff] }
 0x4c9   :  { %v3431_v44 = vrot.slane %v3430_v15, 2  ;;  %v3448_v35 = vsel %vm3447_vm11, %v3310_v14, %v3446_v50  ;;  %vm4363_vm0 = vmpackc.low %vm3657_vm12, %vm3657_vm12  ;;  %vm3408_vm14 = vcmp.lt.s32.totalorder %v3406_v2, %v3407_v30  ;;  %vm3426_vm2 = vcmp.lt.s32.totalorder %v3424_v29, %v3425_v49  ;;  %v6974_v14 = vld [vmem:[#allocation41_spill] sm:$0xff]  ;;  %v6987_v12 = vld [vmem:[#allocation31_spill] sm:$0xff] }
 0x4ca   :  { %3939 = vmatmul.mubr.bf16.gmra.mxu1 %v6948_v63  ;;  %v3449_v46 = vrot.slane %v3448_v35, 2  ;;  %4364 = vmatpush1.bf16.xpose.msk.msra.mxu0 %vm4363_vm0, %v4523_v61  ;;  %v3409_v26 = vsel %vm3408_vm14, %v3406_v2, %v3407_v30  ;;  %v3427_v20 = vsel %vm3426_vm2, %v3424_v29, %v3425_v49  ;;  %vm3444_vm5 = vcmp.lt.s32.totalorder %v3442_v1, %v3443_v21  ;;  %v6977_v2 = vld [vmem:[#allocation55_spill] sm:$0xff]  ;;  %v6981_v29 = vld [vmem:[#allocation33_spill] sm:$0xff]  ;;  %v6984_v49 = vld [vmem:[#allocation42_spill] sm:$0xff] }
 0x4cb   :  { %3946 = vmatprep.mubr.bf16.mxu1 %v4523_v61  ;;  %vm3531_vm9 = vcmp.eq.s32.totalorder %v3409_v26, %v6358_v27  ;;  %vm3432_vm15 = vcmp.lt.s32.totalorder %v3430_v15, %v3431_v44  ;;  %vm3533_vm4 = vcmp.eq.s32.totalorder %v3427_v20, %v6394_v9  ;;  %v3445_v54 = vsel %vm3444_vm5, %v3442_v1, %v3443_v21  ;;  %v6983_v30 = vld [vmem:[#allocation43_spill] sm:$0xff]  ;;  %v6989_v21 = vld [vmem:[#allocation53_spill] sm:$0xff]  ;;  %v6995_v20 = vld [vmem:[#allocation36_spill] sm:$0xff] }
 0x4cc   :  { %v3563_v58 = vsel %vm3531_vm9, 1, %v6800_v4  ;;  %v3433_v36 = vsel %vm3432_vm15, %v3430_v15, %v3431_v44  ;;  %vm3450_vm7 = vcmp.lt.s32.totalorder %v3448_v35, %v3449_v46  ;;  %v3565_v22 = vsel %vm3533_vm4, 1, %v6800_v4 }
 0x4cd   :  { %v3612_v45 = vrot.slane %v3563_v58, %v6104_v42  ;;  %v3434_v34 = vrot.slane %v3433_v36, 1  ;;  %v3451_v31 = vsel %vm3450_vm7, %v3448_v35, %v3449_v46  ;;  %v3620_v60 = vrot.slane %v3565_v22, %v6104_v42  ;;  %v6992_v35 = vld [vmem:[#allocation28_spill] sm:$0xff]  ;;  %v6993_v46 = vld [vmem:[#allocation34_spill] sm:$0xff] }
 0x4ce   :  { %v3452_v13 = vrot.slane %v3451_v31, 1  ;;  %v3520_v52 = vrot.slane %v6247_v3, %v3487_v41  ;;  %vm3549_vm6 = vcmp.eq.s32.totalorder %v6099_v33, %v6394_v9  ;;  %vm3535_vm3 = vcmp.eq.s32.totalorder %v3445_v54, %v3516_v53  ;;  %v6996_v54 = vld [vmem:[#allocation47_spill] sm:$0xff] }
 0x4cf   :  { %vm3643_vm13 = vcmp.eq.s32.totalorder %v3612_v45, 1  ;;  %vm3435_vm10 = vcmp.lt.s32.totalorder %v3433_v36, %v3434_v34  ;;  %vm6518_vm11 = vcmp.eq.s32.totalorder %v3620_v60, 1  ;;  %v3567_v38 = vsel %vm3535_vm3, 1, %v6800_v4 }
 0x4d0   :  { %vm3659_vm12 = vmand %vm3547_vm8, %vm3643_vm13  ;;  %v3436_v10 = vsel %vm3435_vm10, %v3433_v36, %v3434_v34  ;;  %vm3453_vm0 = vcmp.lt.s32.totalorder %v3451_v31, %v3452_v13  ;;  %v3628_v41 = vrot.slane %v3567_v38, %v6104_v42  ;;  %v6953_v8 = vpack.c.bf16 %v6951_v5, %v6952_v56 }
 0x4d1   :  { %vm4367_vm14 = vmpackc.low %vm3659_vm12, %vm3659_vm12  ;;  %vm3534_vm2 = vcmp.eq.s32.totalorder %v3436_v10, %v6363_v59  ;;  %v3454_v3 = vsel %vm3453_vm0, %v3451_v31, %v3452_v13  ;;  %v6956_v28 = vpack.c.bf16 %v6954_v57, %v6955_v0  ;;  %vm3551_vm9 = vcmp.eq.s32.totalorder %v6099_v33, %v3516_v53  ;;  %v6990_v53 = vld [vmem:[#allocation56_spill] sm:$0xff] }
 0x4d2   :  { %3947 = vmatmul.mubr.bf16.gmra.mxu1 %v4523_v61  ;;  %v3566_v27 = vsel %vm3534_vm2, 1, %v6800_v4  ;;  %vm3536_vm8 = vcmp.eq.s32.totalorder %v3454_v3, %v3520_v52  ;;  %vm6542_vm5 = vmand %vm3549_vm6, %vm6518_vm11  ;;  %vm3647_vm15 = vcmp.eq.s32.totalorder %v3628_v41, 1  ;;  %v6961_v17 = vpack.c.bf16 %v6959_v40, %v6960_v19 }
 0x4d3   :  { %4042 = vmatprep.mubr.bf16.mxu1 %v6953_v8  ;;  %3987 = vmatmul.mubr.bf16.vlgmr.msra.gmra.mxu0 %v6956_v28  ;;  %vm3550_vm4 = vcmp.eq.s32.totalorder %v6099_v33, %v6363_v59  ;;  %v3624_v25 = vrot.slane %v3566_v27, %v6104_v42  ;;  %v3568_v24 = vsel %vm3536_vm8, 1, %v6800_v4  ;;  %vm4371_vm7 = vmpackc.low %vm6542_vm5, %vm6542_vm5  ;;  %vm3552_vm3 = vcmp.eq.s32.totalorder %v6099_v33, %v3520_v52  ;;  %v6962_v59 = vld [vmem:[#allocation24_spill] sm:$0xff] }
 0x4d4   :  { %4368 = vmatpush1.bf16.xpose.msk.msra.mxu1 %vm4367_vm14, %v4523_v61  ;;  %3994 = vmatprep.mubr.bf16.mxu0 %v6961_v17  ;;  %v3632_v9 = vrot.slane %v3568_v24, %v6104_v42  ;;  %vm3663_vm13 = vmand %vm3551_vm9, %vm3647_vm15  ;;  %v6964_v4 = vpack.c.bf16 %v6962_v59, %v6963_v37  ;;  %v6965_v42 = vld [vmem:[#allocation37_spill] sm:$0xff]  ;;  %v6970_v7 = vpack.c.bf16 %v6968_v62, %v6969_v6  ;;  %v4524_v36 = vmov 0.0  }
 0x4d5   :  { %vm3646_vm6 = vcmp.eq.s32.totalorder %v3624_v25, 1  ;;  %vm4375_vm2 = vmpackc.low %vm3663_vm13, %vm3663_vm13  ;;  %v6967_v33 = vpack.c.bf16 %v6965_v42, %v6966_v48  ;;  %v6973_v23 = vpack.c.bf16 %v6971_v43, %v6972_v16  ;;  %v6976_v50 = vpack.c.bf16 %v6974_v14, %v6975_v55  ;;  %4182 = vst.msk [vmem:[%s6694_s14] sm:$0xff] %vm190_vm1, %v4524_v36 }
 0x4d6   :  { %vm3662_vm10 = vmand %vm3550_vm4, %vm3646_vm6  ;;  %vm3648_vm11 = vcmp.eq.s32.totalorder %v3632_v9, 1  ;;  %v6979_v39 = vpack.c.bf16 %v6977_v2, %v6978_v51  ;;  %v6982_v1 = vpack.c.bf16 %v6980_v18, %v6981_v29  ;;  %v6985_v15 = vpack.c.bf16 %v6983_v30, %v6984_v49  ;;  %4183 = vst.msk [vmem:[%s6694_s14 + $0x8] sm:$0xff] %vm190_vm1, %v4524_v36 }
 0x4d7   :  { %vm4369_vm12 = vmpackc.low %vm3662_vm10, %vm3662_vm10  ;;  %v6988_v63 = vpack.c.bf16 %v6986_v11, %v6987_v12  ;;  %v6991_v44 = vpack.c.bf16 %v6989_v21, %v6990_v53  ;;  %v6994_v26 = vpack.c.bf16 %v6992_v35, %v6993_v46  ;;  %v6997_v58 = vpack.c.bf16 %v6995_v20, %v6996_v54  ;;  %4184 = vst.msk [vmem:[%s6694_s14 + $0x10] sm:$0xff] %vm190_vm1, %v4524_v36 }
 0x4d8   :  { %4370 = vmatprep.subr.msk.bf16.mxu0 %vm4369_vm12, %v4523_v61  ;;  %vm3664_vm0 = vmand %vm3552_vm3, %vm3648_vm11  ;;  %4185 = vst.msk [vmem:[%s6694_s14 + $0x18] sm:$0xff] %vm190_vm1, %v4524_v36  ;;  %vm4186_vm8 = vcmask 57344  }
 0x4d9   :  { %vm4373_vm14 = vmpackc.low %vm3664_vm0, %vm3664_vm0  ;;  %4372 = vmatpush1.bf16.xpose.msk.msra.mxu0 %vm4371_vm7, %v4523_v61  ;;  %4187 = vst.msk [vmem:[%s6694_s14 + $0x20] sm:$0x1] %vm4186_vm8, %v4524_v36 }
 0x4da   :  { %4374 = vmatprep.subr.msk.bf16.mxu1 %vm4373_vm14, %v4523_v61 }
 0x4db   :  { %4043 = vmatmul.mubr.bf16.vlgmr.msra.gmra.mxu1 %v6964_v4  ;;  %3995 = vmatmul.mubr.bf16.gmra.mxu0 %v6970_v7 }
 0x4dc   :  { %4050 = vmatprep.mubr.bf16.mxu1 %v6967_v33  ;;  %4376 = vmatpush1.bf16.xpose.msk.msra.mxu1 %vm4375_vm2, %v4523_v61 }
 0x4dd   :  { %4002 = vmatprep.mubr.bf16.mxu0 %v4523_v61 }
 0x4e3   :  { %4051 = vmatmul.mubr.bf16.gmra.mxu1 %v6973_v23  ;;  %4003 = vmatmul.mubr.bf16.gmra.mxu0 %v4523_v61 }
 0x4e4   :  { %4058 = vmatprep.mubr.bf16.mxu1 %v4523_v61  ;;  %4098 = vmatprep.mubr.bf16.mxu0 %v6976_v50 }
 0x4eb   :  { %4059 = vmatmul.mubr.bf16.gmra.mxu1 %v4523_v61  ;;  %4099 = vmatmul.mubr.bf16.vlgmr.msra.gmra.mxu0 %v6982_v1 }
 0x4ec   :  { %4154 = vmatprep.mubr.bf16.mxu1 %v6979_v39  ;;  %4106 = vmatprep.mubr.bf16.mxu0 %v6985_v15 }
 0x4f3   :  { %4155 = vmatmul.mubr.bf16.vlgmr.msra.gmra.mxu1 %v6988_v63  ;;  %4107 = vmatmul.mubr.bf16.gmra.mxu0 %v6994_v26 }
 0x4f4   :  { %4162 = vmatprep.mubr.bf16.mxu1 %v6991_v44  ;;  %4114 = vmatprep.mubr.bf16.mxu0 %v4523_v61 }
 0x4fb   :  { %4163 = vmatmul.mubr.bf16.gmra.mxu1 %v6997_v58  ;;  %4115 = vmatmul.mubr.bf16.gmra.mxu0 %v4523_v61 }
 0x4fc   :  { %4170 = vmatprep.mubr.bf16.mxu1 %v4523_v61 }
 0x503   :  { %4171 = vmatmul.mubr.bf16.gmra.mxu1 %v4523_v61 }
 0x504   :  { %4481 = shalt.err (!%p4478_p0)
}
 0x505   :  { %4217 = dma.vmem_to_hbm [thread:$0]  %s4215_s27, 2048, %s6692_s12, [#allocation4]  }
 0x506   :  { %s4490_s15 = scalar_lea.vmem %s4228_s28, 8192  ;;  %p4495_p2 = scmp.lt.s32.totalorder %s4228_s28, %s4228_s28 }
 0x507   :  { %p4491_p1 = scmp.ne.s32.totalorder %s4228_s28, %s4490_s15  ;;  %p4496_p3 = scmp.lt.s32.totalorder %s4490_s15, %s4490_s15 }
 0x509   :  { %p4497_p4 = por %p4496_p3, %p4495_p2 }
 0x50b   :  { %p4498_p5 = pnand %p4497_p4, %p4491_p1 }
 0x50d   :  { %4501 = shalt.err (!%p4498_p5)
}
 0x50e   :  { %s4527_s9 = smov 2048   ;;  %s4528_s11 = smov 128  }
 0x50f   :  { %4233 = dma.vmem_to_hbm [thread:$0]  %s4228_s28, 8192, %s6693_s13, [#allocation9], %s4527_s9, %s4527_s9, %s4528_s11  }
 0x54f   :  { %v3764_v61 = vpop.f32.mrf.mxu0 }
 0x551   :  { %v3766_v22 = vpop.f32.mrf.mxu0 }
 0x553   :  { %v3767_v45 = vpop.f32.mrf.mxu0  ;;  %v3820_v34 = vpop.f32.mrf.mxu1 }
 0x554   :  { %v3821_v31 = vadd.f32 %v3820_v34, %v3764_v61 }
 0x555   :  { %v3769_v60 = vpop.f32.mrf.mxu0  ;;  %v3822_v13 = vpop.f32.mrf.mxu1 }
 0x557   :  { %v3772_v52 = vpop.f32.mrf.mxu0  ;;  %v3823_v32 = vpop.f32.mrf.mxu1 }
 0x558   :  { %v6633_v38 = vadd.f32 %v3823_v32, %v3767_v45 }
 0x559   :  { %v3774_v10 = vpop.f32.mrf.mxu0  ;;  %v3825_v41 = vpop.f32.mrf.mxu1 }
 0x55b   :  { %v3775_v3 = vpop.f32.mrf.mxu0  ;;  %v3828_v5 = vpop.f32.mrf.mxu1 }
 0x55c   :  { %v6635_v56 = vadd.f32 %v3828_v5, %v3772_v52 }
 0x55d   :  { %v3777_v8 = vpop.f32.mrf.mxu0  ;;  %v3830_v57 = vpop.f32.mrf.mxu1 }
 0x55f   :  { %v3780_v0 = vpop.f32.mrf.mxu0  ;;  %v3831_v28 = vpop.f32.mrf.mxu1 }
 0x560   :  { %v6637_v27 = vadd.f32 %v3831_v28, %v3775_v3 }
 0x561   :  { %v3782_v47 = vpop.f32.mrf.mxu0  ;;  %v3833_v40 = vpop.f32.mrf.mxu1 }
 0x563   :  { %v3783_v19 = vpop.f32.mrf.mxu0  ;;  %v3836_v17 = vpop.f32.mrf.mxu1 }
 0x564   :  { %v6639_v25 = vadd.f32 %v3836_v17, %v3780_v0 }
 0x565   :  { %v3784_v24 = vpop.f32.mrf.mxu0  ;;  %v3838_v9 = vpop.f32.mrf.mxu1 }
 0x567   :  { %v3839_v59 = vpop.f32.mrf.mxu1 }
 0x569   :  { %v3840_v37 = vpop.f32.mrf.mxu1 }
 0x575   :  { %v3876_v4 = vpop.f32.mrf.mxu0 }
 0x576   :  { %v3877_v45 = vadd.f32 %v3876_v4, %v3821_v31 }
 0x577   :  { %v3878_v42 = vpop.f32.mrf.mxu0 }
 0x579   :  { %v3879_v48 = vpop.f32.mrf.mxu0 }
 0x57a   :  { %v3880_v10 = vadd.f32 %v3879_v48, %v6633_v38 }
 0x57b   :  { %v3881_v33 = vpop.f32.mrf.mxu0 }
 0x57e   :  { %v3884_v62 = vpop.f32.mrf.mxu0 }
 0x57f   :  { %v3885_v28 = vadd.f32 %v3884_v62, %v6635_v56 }
 0x580   :  { %v3886_v6 = vpop.f32.mrf.mxu0 }
 0x581   :  { %v3932_v7 = vpop.f32.mrf.mxu1  ;;  %v4188_v6 = vld [vmem:[%s6694_s14] sm:$0xff] }
 0x582   :  { %v3887_v43 = vpop.f32.mrf.mxu0  ;;  %v3933_v32 = vadd.f32 %v3932_v7, %v3877_v45 }
 0x583   :  { %v3934_v16 = vpop.f32.mrf.mxu1  ;;  %v3888_v59 = vadd.f32 %v3887_v43, %v6637_v27 }
 0x584   :  { %v3889_v23 = vpop.f32.mrf.mxu0 }
 0x585   :  { %v3935_v14 = vpop.f32.mrf.mxu1 }
 0x586   :  { %v3892_v55 = vpop.f32.mrf.mxu0  ;;  %v3936_v0 = vadd.f32 %v3935_v14, %v3880_v10 }
 0x587   :  { %v3937_v50 = vpop.f32.mrf.mxu1  ;;  %v3893_v7 = vadd.f32 %v3892_v55, %v6639_v25 }
 0x588   :  { %v3894_v2 = vpop.f32.mrf.mxu0 }
 0x58a   :  { %v3940_v51 = vpop.f32.mrf.mxu1  ;;  %v3895_v39 = vpop.f32.mrf.mxu0 }
 0x58b   :  { %v3941_v9 = vadd.f32 %v3940_v51, %v3885_v28  ;;  %v4189_v39 = vld [vmem:[%s6694_s14 + $0x8] sm:$0xff] }
 0x58c   :  { %v3942_v18 = vpop.f32.mrf.mxu1  ;;  %v3896_v29 = vpop.f32.mrf.mxu0 }
 0x58e   :  { %v3943_v1 = vpop.f32.mrf.mxu1 }
 0x58f   :  { %v3944_v62 = vadd.f32 %v3943_v1, %v3888_v59 }
 0x590   :  { %v3945_v30 = vpop.f32.mrf.mxu1 }
 0x592   :  { %v3948_v49 = vpop.f32.mrf.mxu1 }
 0x593   :  { %v3988_v15 = vpop.f32.mrf.mxu0  ;;  %v3949_v29 = vadd.f32 %v3948_v49, %v3893_v7 }
 0x594   :  { %v3950_v11 = vpop.f32.mrf.mxu1  ;;  %v3989_v5 = vadd.f32 %v3988_v15, %v3933_v32 }
 0x595   :  { %v3990_v12 = vpop.f32.mrf.mxu0 }
 0x596   :  { %v3951_v63 = vpop.f32.mrf.mxu1 }
 0x597   :  { %v3991_v21 = vpop.f32.mrf.mxu0 }
 0x598   :  { %v3952_v53 = vpop.f32.mrf.mxu1  ;;  %v3992_v17 = vadd.f32 %v3991_v21, %v3936_v0  ;;  %v4190_v21 = vld [vmem:[%s6694_s14 + $0x10] sm:$0xff] }
 0x599   :  { %v3993_v44 = vpop.f32.mrf.mxu0 }
 0x59b   :  { %v4044_v35 = vpop.f32.mrf.mxu1  ;;  %v3996_v26 = vpop.f32.mrf.mxu0 }
 0x59c   :  { %v4045_v19 = vadd.f32 %v4044_v35, %v3989_v5  ;;  %v3997_v48 = vadd.f32 %v3996_v26, %v3941_v9 }
 0x59d   :  { %v4046_v46 = vpop.f32.mrf.mxu1  ;;  %v3998_v54 = vpop.f32.mrf.mxu0 }
 0x59f   :  { %v4047_v20 = vpop.f32.mrf.mxu1  ;;  %v3999_v36 = vpop.f32.mrf.mxu0 }
 0x5a0   :  { %v4048_v42 = vadd.f32 %v4047_v20, %v3992_v17  ;;  %v4000_v27 = vadd.f32 %v3999_v36, %v3944_v62 }
 0x5a1   :  { %v4049_v58 = vpop.f32.mrf.mxu1  ;;  %v4001_v22 = vpop.f32.mrf.mxu0 }
 0x5a2   :  { %v4191_v58 = vld [vmem:[%s6694_s14 + $0x18] sm:$0xff] }
 0x5a3   :  { %v4052_v61 = vpop.f32.mrf.mxu1  ;;  %v4004_v60 = vpop.f32.mrf.mxu0 }
 0x5a4   :  { %v4053_v2 = vadd.f32 %v4052_v61, %v3997_v48  ;;  %v4005_v11 = vadd.f32 %v4004_v60, %v3949_v29 }
 0x5a5   :  { %v4054_v34 = vpop.f32.mrf.mxu1  ;;  %v4006_v52 = vpop.f32.mrf.mxu0 }
 0x5a6   :  { %v4192_v52 = vld [vmem:[%s6694_s14 + $0x20] sm:$0x1] }
 0x5a7   :  { %v4055_v13 = vpop.f32.mrf.mxu1  ;;  %v4007_v3 = vpop.f32.mrf.mxu0 }
 0x5a8   :  { %v4056_v15 = vadd.f32 %v4055_v13, %v4000_v27 }
 0x5a9   :  { %v4057_v41 = vpop.f32.mrf.mxu1  ;;  %v4008_v57 = vpop.f32.mrf.mxu0 }
 0x5ab   :  { %v4060_v8 = vpop.f32.mrf.mxu1  ;;  %v4100_v40 = vpop.f32.mrf.mxu0 }
 0x5ac   :  { %v4101_v37 = vadd.f32 %v4100_v40, %v4045_v19  ;;  %v4061_v26 = vadd.f32 %v4060_v8, %v4005_v11 }
 0x5ad   :  { %v4062_v47 = vpop.f32.mrf.mxu1  ;;  %v4102_v24 = vpop.f32.mrf.mxu0 }
 0x5af   :  { %v4063_v31 = vpop.f32.mrf.mxu1  ;;  %v4103_v38 = vpop.f32.mrf.mxu0 }
 0x5b0   :  { %v4104_v23 = vadd.f32 %v4103_v38, %v4048_v42 }
 0x5b1   :  { %v4064_v4 = vpop.f32.mrf.mxu1  ;;  %v4105_v56 = vpop.f32.mrf.mxu0 }
 0x5b3   :  { %v4156_v33 = vpop.f32.mrf.mxu1  ;;  %v4108_v50 = vpop.f32.mrf.mxu0 }
 0x5b4   :  { %v4157_v16 = vadd.f32 %v4156_v33, %v4101_v37  ;;  %v4109_v55 = vadd.f32 %v4108_v50, %v4053_v2 }
 0x5b5   :  { %v4158_v14 = vpop.f32.mrf.mxu1  ;;  %v4110_v18 = vpop.f32.mrf.mxu0 }
 0x5b6   :  { %v4193_v43 = vadd.f32 %v4188_v6, %v4157_v16 }
 0x5b7   :  { %v4159_v51 = vpop.f32.mrf.mxu1  ;;  %v4111_v30 = vpop.f32.mrf.mxu0 }
 0x5b8   :  { %4198 = vst.msk [vmem:[%s6694_s14] sm:$0xff] %vm190_vm1, %v4193_v43  ;;  %v4160_v25 = vadd.f32 %v4159_v51, %v4104_v23  ;;  %v4112_v44 = vadd.f32 %v4111_v30, %v4056_v15 }
 0x5b9   :  { %v4161_v1 = vpop.f32.mrf.mxu1  ;;  %v4113_v53 = vpop.f32.mrf.mxu0 }
 0x5ba   :  { %v4194_v12 = vadd.f32 %v4189_v39, %v4160_v25 }
 0x5bb   :  { %v4164_v63 = vpop.f32.mrf.mxu1  ;;  %v4116_v46 = vpop.f32.mrf.mxu0 }
 0x5bc   :  { %4199 = vst.msk [vmem:[%s6694_s14 + $0x8] sm:$0xff] %vm190_vm1, %v4194_v12  ;;  %v4165_v49 = vadd.f32 %v4164_v63, %v4109_v55  ;;  %v4117_v22 = vadd.f32 %v4116_v46, %v4061_v26 }
 0x5bd   :  { %v4166_v35 = vpop.f32.mrf.mxu1  ;;  %v4118_v36 = vpop.f32.mrf.mxu0 }
 0x5be   :  { %v4195_v20 = vadd.f32 %v4190_v21, %v4165_v49 }
 0x5bf   :  { %v4167_v54 = vpop.f32.mrf.mxu1  ;;  %v4119_v34 = vpop.f32.mrf.mxu0 }
 0x5c0   :  { %4200 = vst.msk [vmem:[%s6694_s14 + $0x10] sm:$0xff] %vm190_vm1, %v4195_v20  ;;  %v4168_v61 = vadd.f32 %v4167_v54, %v4112_v44 }
 0x5c1   :  { %v4169_v45 = vpop.f32.mrf.mxu1  ;;  %v4120_v32 = vpop.f32.mrf.mxu0 }
 0x5c2   :  { %v4196_v60 = vadd.f32 %v4191_v58, %v4168_v61 }
 0x5c3   :  { %v4172_v13 = vpop.f32.mrf.mxu1 }
 0x5c4   :  { %4201 = vst.msk [vmem:[%s6694_s14 + $0x18] sm:$0xff] %vm190_vm1, %v4196_v60  ;;  %v4173_v10 = vadd.f32 %v4172_v13, %v4117_v22 }
 0x5c5   :  { %v4174_v41 = vpop.f32.mrf.mxu1 }
 0x5c6   :  { %v4197_v3 = vadd.f32 %v4192_v52, %v4173_v10 }
 0x5c7   :  { %v4175_v5 = vpop.f32.mrf.mxu1 }
 0x5c8   :  { %4203 = vst.msk [vmem:[%s6694_s14 + $0x20] sm:$0x1] %vm4186_vm8, %v4197_v3 }
 0x5c9   :  { %v4176_v8 = vpop.f32.mrf.mxu1 }
 0x5ca   :  { %4514 = dma.done.wait [#allocation4], 2048  }
 0x5cb   :  { %4515 = vsyncadd [#allocation4], 4294965248 }
 0x5cc   :  { %4516 = dma.done.wait [#allocation9], 8192  }
 0x5cd   :  { %4517 = vsyncadd [#allocation9], 4294959104 }
 0x5ce   :  { %4244 = vsyncpa [#allocation3], 1 }
 0x5cf   :  { %4245 = vsyncpa [#allocation6], 1 }
 0x5d0   :  { %4246 = vsyncpa [#allocation4], 1 }
 0x5d1   :  { %4247 = vsyncpa [#allocation9], 1 }

</bundles_post_ra>
